<compile_context>
chip_gen: v5e
topology: v5e:2x2
jax: 0.10.0
libtpu: 0.0.40
codegen_flags: <defaults>
</compile_context>

<pallas_src>
import math

import jax
import jax.numpy as jnp
from jax import lax
from jax.experimental import pallas as pl
from jax.experimental.pallas import tpu as pltpu  # noqa: F401  (used when scaling up)

# ---------------- model hyper-parameters (small, synthetic CLIP ViT) ---------
B = 2          # batch
C_IN = 3       # input channels
IMG = 16       # spatial size
PATCH = 8      # patch size (conv kernel == stride, bias=False)
GRID = IMG // PATCH
NUM_PATCHES = GRID * GRID
SEQ = NUM_PATCHES + 1          # +1 class token (= 5)
SEQ_PAD = 8                    # padded to a sublane multiple
WIDTH = 32                     # transformer width
HEADS = 4
HEAD_DIM = WIDTH // HEADS
MLP_DIM = 4 * WIDTH
LAYERS = 2
EMBED_DIM = 16                 # output embedding dim (visual.proj)
LN_EPS = 1e-5
PATCH_DIM = C_IN * PATCH * PATCH

# ---------------- packed parameter slab layout (static row offsets) ----------
SLAB_LANES = 128
# bf16 matmul-weight slab
CONV_W_R = 0                                # (PATCH_DIM, WIDTH)
PROJ_R = CONV_W_R + PATCH_DIM               # (WIDTH, EMBED_DIM)
LYR_W_R = PROJ_R + WIDTH                    # per-layer blocks start here
QKV_W_OFF = 0                               # (WIDTH, 3*WIDTH)
OUT_W_OFF = QKV_W_OFF + WIDTH               # (WIDTH, WIDTH)
FC_W_OFF = OUT_W_OFF + WIDTH                # (WIDTH, MLP_DIM)
CPROJ_W_OFF = FC_W_OFF + WIDTH              # (MLP_DIM, WIDTH)
LYR_W_ROWS = CPROJ_W_OFF + MLP_DIM
W_ROWS = LYR_W_R + LAYERS * LYR_W_ROWS
# f32 vector slab (tok + LN params + biases, one row each)
TOK_R = 0                                   # (SEQ_PAD, WIDTH), pad rows zero
LN_PRE_G_R, LN_PRE_B_R, LN_POST_G_R, LN_POST_B_R = 8, 9, 10, 11
LYR_V_R = 16
(LN1_G_O, LN1_B_O, QKV_B_O, OUT_B_O,
 LN2_G_O, LN2_B_O, FC_B_O, CPROJ_B_O) = range(8)
LYR_V_ROWS = 8
V_ROWS = LYR_V_R + LAYERS * LYR_V_ROWS


# ---------------- fully fused Pallas kernel ----------------------------------
def _layernorm(x, g, b):
    x = x.astype(jnp.float32)
    mean = jnp.mean(x, axis=-1, keepdims=True)
    var = jnp.mean(jnp.square(x - mean), axis=-1, keepdims=True)
    return (x - mean) * lax.rsqrt(var + LN_EPS) * g + b


def _clip_visual_kernel(patches_ref, w_ref, v_ref, o_ref):
    scale = 1.0 / math.sqrt(HEAD_DIM)

    # additive mask for padded key columns (tokens SEQ..SEQ_PAD-1)
    kidx = lax.broadcasted_iota(jnp.int32, (SEQ_PAD, SEQ_PAD), 1)
    pad_mask = jnp.where(kidx < SEQ, 0.0, -1e30).astype(jnp.float32)

    # --- patch embedding (conv1 as one bf16 matmul; cls/pad rows of `patches`
    #     are zero) + class/positional embedding (pre-folded into tok rows of
    #     the vector slab), then ln_pre.  Residual stream x: (B*SEQ_PAD, WIDTH)
    conv_w = w_ref[CONV_W_R:CONV_W_R + PATCH_DIM, 0:WIDTH]          # bf16
    tok = v_ref[TOK_R:TOK_R + SEQ_PAD, 0:WIDTH]                     # f32
    x = jnp.dot(patches_ref[...], conv_w, preferred_element_type=jnp.float32)
    x = x + jnp.tile(tok, (B, 1))
    x = _layernorm(x,
                   v_ref[LN_PRE_G_R:LN_PRE_G_R + 1, 0:WIDTH],
                   v_ref[LN_PRE_B_R:LN_PRE_B_R + 1, 0:WIDTH])

    for l in range(LAYERS):                     # static unrolled layer loop
        wb = LYR_W_R + l * LYR_W_ROWS
        vb = LYR_V_R + l * LYR_V_ROWS
        qkv_w = w_ref[wb + QKV_W_OFF:wb + QKV_W_OFF + WIDTH, 0:3 * WIDTH]
        out_w = w_ref[wb + OUT_W_OFF:wb + OUT_W_OFF + WIDTH, 0:WIDTH]
        fc_w = w_ref[wb + FC_W_OFF:wb + FC_W_OFF + WIDTH, 0:MLP_DIM]
        cproj_w = w_ref[wb + CPROJ_W_OFF:wb + CPROJ_W_OFF + MLP_DIM, 0:WIDTH]
        ln1_g = v_ref[vb + LN1_G_O:vb + LN1_G_O + 1, 0:WIDTH]
        ln1_b = v_ref[vb + LN1_B_O:vb + LN1_B_O + 1, 0:WIDTH]
        qkv_b = v_ref[vb + QKV_B_O:vb + QKV_B_O + 1, 0:3 * WIDTH]
        out_b = v_ref[vb + OUT_B_O:vb + OUT_B_O + 1, 0:WIDTH]
        ln2_g = v_ref[vb + LN2_G_O:vb + LN2_G_O + 1, 0:WIDTH]
        ln2_b = v_ref[vb + LN2_B_O:vb + LN2_B_O + 1, 0:WIDTH]
        fc_b = v_ref[vb + FC_B_O:vb + FC_B_O + 1, 0:MLP_DIM]
        cproj_b = v_ref[vb + CPROJ_B_O:vb + CPROJ_B_O + 1, 0:WIDTH]

        # ---------- attention branch: x = x + out_proj(MHA(ln_1(x))) ---------
        h = _layernorm(x, ln1_g, ln1_b)
        qkv = jnp.dot(h.astype(jnp.bfloat16), qkv_w,
                      preferred_element_type=jnp.float32) + qkv_b

        batch_out = []
        for b in range(B):                                  # static, aligned
            r0 = b * SEQ_PAD
            blk = qkv[r0:r0 + SEQ_PAD, :].astype(jnp.bfloat16)   # (8, 3W)
            acc = None
            for hh in range(HEADS):                         # static
                c0 = hh * HEAD_DIM
                qh = blk[:, c0:c0 + HEAD_DIM]
                kh = blk[:, WIDTH + c0:WIDTH + c0 + HEAD_DIM]
                vh = blk[:, 2 * WIDTH + c0:2 * WIDTH + c0 + HEAD_DIM]
                # contraction on dim 1 of both -> no materialized transpose
                s = lax.dot_general(qh, kh, (((1,), (1,)), ((), ())),
                                    preferred_element_type=jnp.float32)
                s = s * scale + pad_mask
                s = s - jnp.max(s, axis=-1, keepdims=True)
                p = jnp.exp(s)
                p = p * pl.reciprocal(jnp.sum(p, axis=-1, keepdims=True),
                                      approx=True)
                ho = jnp.dot(p.astype(jnp.bfloat16), vh,
                             preferred_element_type=jnp.float32)
                # fold the output projection into the head loop (no lane
                # concat of HEAD_DIM=8 pieces is ever materialized)
                contrib = jnp.dot(ho.astype(jnp.bfloat16),
                                  out_w[c0:c0 + HEAD_DIM, :],
                                  preferred_element_type=jnp.float32)
                acc = contrib if acc is None else acc + contrib
            batch_out.append(acc)
        x = x + jnp.concatenate(batch_out, axis=0) + out_b

        # ---------- MLP branch: x = x + c_proj(QuickGELU(c_fc(ln_2(x)))) -----
        h = _layernorm(x, ln2_g, ln2_b)
        h = jnp.dot(h.astype(jnp.bfloat16), fc_w,
                    preferred_element_type=jnp.float32) + fc_b
        # QuickGELU: x * sigmoid(1.702 x); reciprocal goes to the EUP slot.
        h = h * pl.reciprocal(1.0 + jnp.exp(-1.702 * h), approx=True)
        h = jnp.dot(h.astype(jnp.bfloat16), cproj_w,
                    preferred_element_type=jnp.float32) + cproj_b
        x = x + h

    # --- batched epilogue: ln_post on both class tokens at once, one dot -----
    cls = jnp.concatenate([x[b * SEQ_PAD:b * SEQ_PAD + 1, :] for b in range(B)],
                          axis=0)                           # (B, WIDTH)
    cls = _layernorm(cls,
                     v_ref[LN_POST_G_R:LN_POST_G_R + 1, 0:WIDTH],
                     v_ref[LN_POST_B_R:LN_POST_B_R + 1, 0:WIDTH])
    proj_w = w_ref[PROJ_R:PROJ_R + WIDTH, 0:EMBED_DIM]
    o_ref[...] = jnp.dot(cls.astype(jnp.bfloat16), proj_w,
                         preferred_element_type=jnp.float32).astype(o_ref.dtype)


# ---------------- CLIP visual encoder (encode_image) -------------------------
def encode_image(packed, image):
    """image: (B, C, H, W) float32, NCHW like the PyTorch module."""
    Bn, C, H, W = image.shape
    assert (Bn, C, H, W) == (B, C_IN, IMG, IMG)
    P = PATCH
    Gh, Gw = H // P, W // P
    # im2col for the stride==kernel patch conv.  Row 0 of each batch is the
    # (zero) class-token row, rows SEQ..SEQ_PAD-1 are zero sequence padding, so
    # the in-kernel matmul directly yields the aligned (B*SEQ_PAD, W) slab.
    patches = image.reshape(Bn, C, Gh, P, Gw, P)
    patches = patches.transpose(0, 2, 4, 1, 3, 5).reshape(Bn, Gh * Gw, PATCH_DIM)
    slab = jnp.zeros((Bn, SEQ_PAD, PATCH_DIM), jnp.float32)
    slab = slab.at[:, 1:1 + NUM_PATCHES, :].set(patches)
    slab = slab.reshape(Bn * SEQ_PAD, PATCH_DIM).astype(jnp.bfloat16)

    return pl.pallas_call(
        _clip_visual_kernel,
        out_shape=jax.ShapeDtypeStruct((Bn, EMBED_DIM), jnp.float32),
    )(slab, packed["wslab"], packed["vslab"])


# ---------------- deterministic parameter init + host-side packing -----------
def init_params(key):
    ks = iter(jax.random.split(key, 24))

    def nrm(shape, scale=0.02):
        return scale * jax.random.normal(next(ks), shape, dtype=jnp.float32)

    L = LAYERS
    return {
        "conv_w": nrm((PATCH_DIM, WIDTH)),
        "class_emb": nrm((WIDTH,)),
        "pos_emb": nrm((SEQ, WIDTH)),
        "ln_pre_g": jnp.ones((WIDTH,), jnp.float32),
        "ln_pre_b": jnp.zeros((WIDTH,), jnp.float32),
        "ln1_g": jnp.ones((L, WIDTH), jnp.float32),
        "ln1_b": jnp.zeros((L, WIDTH), jnp.float32),
        "qkv_w": nrm((L, WIDTH, 3 * WIDTH)),
        "qkv_b": nrm((L, 3 * WIDTH)),
        "out_w": nrm((L, WIDTH, WIDTH)),
        "out_b": nrm((L, WIDTH)),
        "ln2_g": jnp.ones((L, WIDTH), jnp.float32),
        "ln2_b": jnp.zeros((L, WIDTH), jnp.float32),
        "fc_w": nrm((L, WIDTH, MLP_DIM)),
        "fc_b": nrm((L, MLP_DIM)),
        "cproj_w": nrm((L, MLP_DIM, WIDTH)),
        "cproj_b": nrm((L, WIDTH)),
        "ln_post_g": jnp.ones((WIDTH,), jnp.float32),
        "ln_post_b": jnp.zeros((WIDTH,), jnp.float32),
        "proj": nrm((WIDTH, EMBED_DIM)),
    }


def pack_params(p):
    """Pack all parameters into two contiguous lane-padded slabs (2 DMAs)."""
    w = jnp.zeros((W_ROWS, SLAB_LANES), jnp.float32)
    w = w.at[CONV_W_R:CONV_W_R + PATCH_DIM, 0:WIDTH].set(p["conv_w"])
    w = w.at[PROJ_R:PROJ_R + WIDTH, 0:EMBED_DIM].set(p["proj"])
    for l in range(LAYERS):
        b0 = LYR_W_R + l * LYR_W_ROWS
        w = w.at[b0 + QKV_W_OFF:b0 + QKV_W_OFF + WIDTH, 0:3 * WIDTH].set(p["qkv_w"][l])
        w = w.at[b0 + OUT_W_OFF:b0 + OUT_W_OFF + WIDTH, 0:WIDTH].set(p["out_w"][l])
        w = w.at[b0 + FC_W_OFF:b0 + FC_W_OFF + WIDTH, 0:MLP_DIM].set(p["fc_w"][l])
        w = w.at[b0 + CPROJ_W_OFF:b0 + CPROJ_W_OFF + MLP_DIM, 0:WIDTH].set(p["cproj_w"][l])
    wslab = w.astype(jnp.bfloat16)          # MXU-native dtype; halves DMA bytes

    v = jnp.zeros((V_ROWS, SLAB_LANES), jnp.float32)
    tok = p["pos_emb"].at[0, :].add(p["class_emb"])      # cls folded into pos 0
    v = v.at[TOK_R:TOK_R + SEQ, 0:WIDTH].set(tok)        # pad rows stay zero
    v = v.at[LN_PRE_G_R, 0:WIDTH].set(p["ln_pre_g"])
    v = v.at[LN_PRE_B_R, 0:WIDTH].set(p["ln_pre_b"])
    v = v.at[LN_POST_G_R, 0:WIDTH].set(p["ln_post_g"])
    v = v.at[LN_POST_B_R, 0:WIDTH].set(p["ln_post_b"])
    for l in range(LAYERS):
        b0 = LYR_V_R + l * LYR_V_ROWS
        v = v.at[b0 + LN1_G_O, 0:WIDTH].set(p["ln1_g"][l])
        v = v.at[b0 + LN1_B_O, 0:WIDTH].set(p["ln1_b"][l])
        v = v.at[b0 + QKV_B_O, 0:3 * WIDTH].set(p["qkv_b"][l])
        v = v.at[b0 + OUT_B_O, 0:WIDTH].set(p["out_b"][l])
        v = v.at[b0 + LN2_G_O, 0:WIDTH].set(p["ln2_g"][l])
        v = v.at[b0 + LN2_B_O, 0:WIDTH].set(p["ln2_b"][l])
        v = v.at[b0 + FC_B_O, 0:MLP_DIM].set(p["fc_b"][l])
        v = v.at[b0 + CPROJ_B_O, 0:WIDTH].set(p["cproj_b"][l])
    return {"wslab": wslab, "vslab": v}


if __name__ == "__main__":
    root = jax.random.PRNGKey(0)
    k_param, k_img = jax.random.split(root)
    params = init_params(k_param)
    packed = jax.tree_util.tree_map(jnp.asarray, pack_params(params))
    image = jax.random.normal(k_img, (B, C_IN, IMG, IMG), dtype=jnp.float32)

    image_clip_forward = jax.jit(encode_image)
    out = jax.block_until_ready(image_clip_forward(packed, image))
    assert out.shape == (B, EMBED_DIM), out.shape
    assert bool(jnp.all(jnp.isfinite(out)))
    print("KERNEL_OK")
</pallas_src>

<mosaic_0001>
module attributes {stable_mosaic.version = 11 : i64} {
  func.func @_clip_visual_kernel(%arg0: memref<16x192xbf16, #tpu.memory_space<vmem>>, %arg1: memref<672x128xbf16, #tpu.memory_space<vmem>>, %arg2: memref<32x128xf32, #tpu.memory_space<vmem>>, %arg3: memref<2x16xf32, #tpu.memory_space<vmem>>) attributes {dimension_semantics = [], scalar_prefetch = 0 : i64, scratch_operands = 0 : i64, tpu.core_type = #tpu.core_type<tc>} {
    %0 = tpu.iota {dimensions = array<i32: 1>} : vector<8x8xi32>
    %c5_i32 = arith.constant 5 : i32
    %1 = vector.broadcast %c5_i32 : i32 to vector<8x8xi32>
    %2 = arith.cmpi slt, %0, %1 : vector<8x8xi32>
    %cst = arith.constant 0.000000e+00 : f32
    %cst_0 = arith.constant -1.000000e+30 : f32
    %3 = vector.broadcast %cst : f32 to vector<8x8xf32>
    %4 = vector.broadcast %cst_0 : f32 to vector<8x8xf32>
    %5 = arith.select %2, %3, %4 : vector<8x8xi1>, vector<8x8xf32>
    %c0 = arith.constant 0 : index
    %c0_1 = arith.constant 0 : index
    %6 = vector.load %arg1[%c0, %c0_1] : memref<672x128xbf16, #tpu.memory_space<vmem>>, vector<192x32xbf16>
    %c0_2 = arith.constant 0 : index
    %c0_3 = arith.constant 0 : index
    %7 = vector.load %arg2[%c0_2, %c0_3] : memref<32x128xf32, #tpu.memory_space<vmem>>, vector<8x32xf32>
    %c0_4 = arith.constant 0 : index
    %c0_5 = arith.constant 0 : index
    %8 = vector.load %arg0[%c0_4, %c0_5] : memref<16x192xbf16, #tpu.memory_space<vmem>>, vector<16x192xbf16>
    %cst_6 = arith.constant dense<0.000000e+00> : vector<16x32xf32>
    %9 = tpu.matmul %8, %6, %cst_6 {dimension_numbers = #tpu.dot_dimension_numbers<[1], [0], [0], [1], [0, 0, 1, 1], [], []>} : vector<16x192xbf16>, vector<192x32xbf16>, vector<16x32xf32> -> vector<16x32xf32>
    %10 = tpu.concatenate %7, %7 in 0 : vector<8x32xf32>, vector<8x32xf32> -> vector<16x32xf32>
    %11 = arith.addf %9, %10 : vector<16x32xf32>
    %c8 = arith.constant 8 : index
    %c0_7 = arith.constant 0 : index
    %12 = vector.load %arg2[%c8, %c0_7] : memref<32x128xf32, #tpu.memory_space<vmem>>, vector<1x32xf32>
    %c9 = arith.constant 9 : index
    %c0_8 = arith.constant 0 : index
    %13 = vector.load %arg2[%c9, %c0_8] : memref<32x128xf32, #tpu.memory_space<vmem>>, vector<1x32xf32>
    %cst_9 = arith.constant dense<0.000000e+00> : vector<16xf32>
    %14 = vector.multi_reduction <add>, %11, %cst_9 [1] : vector<16x32xf32> to vector<16xf32>
    %15 = vector.shape_cast %14 : vector<16xf32> to vector<16x1xf32>
    %cst_10 = arith.constant 3.200000e+01 : f32
    %16 = vector.broadcast %cst_10 : f32 to vector<16x1xf32>
    %17 = arith.divf %15, %16 : vector<16x1xf32>
    %18 = vector.broadcast %17 : vector<16x1xf32> to vector<16x32xf32>
    %19 = arith.subf %11, %18 : vector<16x32xf32>
    %20 = arith.mulf %19, %19 : vector<16x32xf32>
    %cst_11 = arith.constant dense<0.000000e+00> : vector<16xf32>
    %21 = vector.multi_reduction <add>, %20, %cst_11 [1] : vector<16x32xf32> to vector<16xf32>
    %22 = vector.shape_cast %21 : vector<16xf32> to vector<16x1xf32>
    %cst_12 = arith.constant 3.200000e+01 : f32
    %23 = vector.broadcast %cst_12 : f32 to vector<16x1xf32>
    %24 = arith.divf %22, %23 : vector<16x1xf32>
    %25 = vector.broadcast %17 : vector<16x1xf32> to vector<16x32xf32>
    %26 = arith.subf %11, %25 : vector<16x32xf32>
    %cst_13 = arith.constant 9.99999974E-6 : f32
    %27 = vector.broadcast %cst_13 : f32 to vector<16x1xf32>
    %28 = arith.addf %24, %27 : vector<16x1xf32>
    %29 = math.rsqrt %28 : vector<16x1xf32>
    %30 = vector.broadcast %29 : vector<16x1xf32> to vector<16x32xf32>
    %31 = arith.mulf %26, %30 : vector<16x32xf32>
    %32 = vector.broadcast %12 : vector<1x32xf32> to vector<16x32xf32>
    %33 = arith.mulf %31, %32 : vector<16x32xf32>
    %34 = vector.broadcast %13 : vector<1x32xf32> to vector<16x32xf32>
    %35 = arith.addf %33, %34 : vector<16x32xf32>
    %c224 = arith.constant 224 : index
    %c0_14 = arith.constant 0 : index
    %36 = vector.load %arg1[%c224, %c0_14] : memref<672x128xbf16, #tpu.memory_space<vmem>>, vector<32x96xbf16>
    %c256 = arith.constant 256 : index
    %c0_15 = arith.constant 0 : index
    %37 = vector.load %arg1[%c256, %c0_15] : memref<672x128xbf16, #tpu.memory_space<vmem>>, vector<32x32xbf16>
    %c288 = arith.constant 288 : index
    %c0_16 = arith.constant 0 : index
    %38 = vector.load %arg1[%c288, %c0_16] : memref<672x128xbf16, #tpu.memory_space<vmem>>, vector<32x128xbf16>
    %c320 = arith.constant 320 : index
    %c0_17 = arith.constant 0 : index
    %39 = vector.load %arg1[%c320, %c0_17] : memref<672x128xbf16, #tpu.memory_space<vmem>>, vector<128x32xbf16>
    %c16 = arith.constant 16 : index
    %c0_18 = arith.constant 0 : index
    %40 = vector.load %arg2[%c16, %c0_18] : memref<32x128xf32, #tpu.memory_space<vmem>>, vector<1x32xf32>
    %c17 = arith.constant 17 : index
    %c0_19 = arith.constant 0 : index
    %41 = vector.load %arg2[%c17, %c0_19] : memref<32x128xf32, #tpu.memory_space<vmem>>, vector<1x32xf32>
    %c18 = arith.constant 18 : index
    %c0_20 = arith.constant 0 : index
    %42 = vector.load %arg2[%c18, %c0_20] : memref<32x128xf32, #tpu.memory_space<vmem>>, vector<1x96xf32>
    %c19 = arith.constant 19 : index
    %c0_21 = arith.constant 0 : index
    %43 = vector.load %arg2[%c19, %c0_21] : memref<32x128xf32, #tpu.memory_space<vmem>>, vector<1x32xf32>
    %c20 = arith.constant 20 : index
    %c0_22 = arith.constant 0 : index
    %44 = vector.load %arg2[%c20, %c0_22] : memref<32x128xf32, #tpu.memory_space<vmem>>, vector<1x32xf32>
    %c21 = arith.constant 21 : index
    %c0_23 = arith.constant 0 : index
    %45 = vector.load %arg2[%c21, %c0_23] : memref<32x128xf32, #tpu.memory_space<vmem>>, vector<1x32xf32>
    %c22 = arith.constant 22 : index
    %c0_24 = arith.constant 0 : index
    %46 = vector.load %arg2[%c22, %c0_24] : memref<32x128xf32, #tpu.memory_space<vmem>>, vector<1x128xf32>
    %c23 = arith.constant 23 : index
    %c0_25 = arith.constant 0 : index
    %47 = vector.load %arg2[%c23, %c0_25] : memref<32x128xf32, #tpu.memory_space<vmem>>, vector<1x32xf32>
    %cst_26 = arith.constant dense<0.000000e+00> : vector<16xf32>
    %48 = vector.multi_reduction <add>, %35, %cst_26 [1] : vector<16x32xf32> to vector<16xf32>
    %49 = vector.shape_cast %48 : vector<16xf32> to vector<16x1xf32>
    %cst_27 = arith.constant 3.200000e+01 : f32
    %50 = vector.broadcast %cst_27 : f32 to vector<16x1xf32>
    %51 = arith.divf %49, %50 : vector<16x1xf32>
    %52 = vector.broadcast %51 : vector<16x1xf32> to vector<16x32xf32>
    %53 = arith.subf %35, %52 : vector<16x32xf32>
    %54 = arith.mulf %53, %53 : vector<16x32xf32>
    %cst_28 = arith.constant dense<0.000000e+00> : vector<16xf32>
    %55 = vector.multi_reduction <add>, %54, %cst_28 [1] : vector<16x32xf32> to vector<16xf32>
    %56 = vector.shape_cast %55 : vector<16xf32> to vector<16x1xf32>
    %cst_29 = arith.constant 3.200000e+01 : f32
    %57 = vector.broadcast %cst_29 : f32 to vector<16x1xf32>
    %58 = arith.divf %56, %57 : vector<16x1xf32>
    %59 = vector.broadcast %51 : vector<16x1xf32> to vector<16x32xf32>
    %60 = arith.subf %35, %59 : vector<16x32xf32>
    %cst_30 = arith.constant 9.99999974E-6 : f32
    %61 = vector.broadcast %cst_30 : f32 to vector<16x1xf32>
    %62 = arith.addf %58, %61 : vector<16x1xf32>
    %63 = math.rsqrt %62 : vector<16x1xf32>
    %64 = vector.broadcast %63 : vector<16x1xf32> to vector<16x32xf32>
    %65 = arith.mulf %60, %64 : vector<16x32xf32>
    %66 = vector.broadcast %40 : vector<1x32xf32> to vector<16x32xf32>
    %67 = arith.mulf %65, %66 : vector<16x32xf32>
    %68 = vector.broadcast %41 : vector<1x32xf32> to vector<16x32xf32>
    %69 = arith.addf %67, %68 : vector<16x32xf32>
    %70 = arith.truncf %69 : vector<16x32xf32> to vector<16x32xbf16>
    %cst_31 = arith.constant dense<0.000000e+00> : vector<16x96xf32>
    %71 = tpu.matmul %70, %36, %cst_31 {dimension_numbers = #tpu.dot_dimension_numbers<[1], [0], [0], [1], [0, 0, 1, 1], [], []>} : vector<16x32xbf16>, vector<32x96xbf16>, vector<16x96xf32> -> vector<16x96xf32>
    %72 = vector.broadcast %42 : vector<1x96xf32> to vector<16x96xf32>
    %73 = arith.addf %71, %72 : vector<16x96xf32>
    %74 = vector.extract_strided_slice %73 {offsets = [0, 0], sizes = [8, 96], strides = [1, 1]} : vector<16x96xf32> to vector<8x96xf32>
    %75 = arith.truncf %74 : vector<8x96xf32> to vector<8x96xbf16>
    %76 = vector.extract_strided_slice %75 {offsets = [0, 0], sizes = [8, 8], strides = [1, 1]} : vector<8x96xbf16> to vector<8x8xbf16>
    %77 = vector.extract_strided_slice %75 {offsets = [0, 32], sizes = [8, 8], strides = [1, 1]} : vector<8x96xbf16> to vector<8x8xbf16>
    %78 = vector.extract_strided_slice %75 {offsets = [0, 64], sizes = [8, 8], strides = [1, 1]} : vector<8x96xbf16> to vector<8x8xbf16>
    %cst_32 = arith.constant dense<0.000000e+00> : vector<8x8xf32>
    %79 = tpu.matmul %76, %77, %cst_32 {dimension_numbers = #tpu.dot_dimension_numbers<[1], [1], [0], [0], [0, 0, 1, 0], [], []>} : vector<8x8xbf16>, vector<8x8xbf16>, vector<8x8xf32> -> vector<8x8xf32>
    %cst_33 = arith.constant 0.353553385 : f32
    %80 = vector.broadcast %cst_33 : f32 to vector<8x8xf32>
    %81 = arith.mulf %79, %80 : vector<8x8xf32>
    %82 = arith.addf %81, %5 : vector<8x8xf32>
    %cst_34 = arith.constant dense<0xFF800000> : vector<8xf32>
    %83 = vector.multi_reduction <maximumf>, %82, %cst_34 [1] : vector<8x8xf32> to vector<8xf32>
    %84 = vector.shape_cast %83 : vector<8xf32> to vector<8x1xf32>
    %85 = vector.broadcast %84 : vector<8x1xf32> to vector<8x8xf32>
    %86 = arith.subf %82, %85 : vector<8x8xf32>
    %87 = math.exp %86 : vector<8x8xf32>
    %cst_35 = arith.constant dense<0.000000e+00> : vector<8xf32>
    %88 = vector.multi_reduction <add>, %87, %cst_35 [1] : vector<8x8xf32> to vector<8xf32>
    %89 = vector.shape_cast %88 : vector<8xf32> to vector<8x1xf32>
    %90 = tpu.reciprocal %89 {approx = true} : vector<8x1xf32> -> vector<8x1xf32>
    %91 = vector.broadcast %90 : vector<8x1xf32> to vector<8x8xf32>
    %92 = arith.mulf %87, %91 : vector<8x8xf32>
    %93 = arith.truncf %92 : vector<8x8xf32> to vector<8x8xbf16>
    %cst_36 = arith.constant dense<0.000000e+00> : vector<8x8xf32>
    %94 = tpu.matmul %93, %78, %cst_36 {dimension_numbers = #tpu.dot_dimension_numbers<[1], [0], [0], [1], [0, 0, 1, 1], [], []>} : vector<8x8xbf16>, vector<8x8xbf16>, vector<8x8xf32> -> vector<8x8xf32>
    %95 = arith.truncf %94 : vector<8x8xf32> to vector<8x8xbf16>
    %96 = vector.extract_strided_slice %37 {offsets = [0, 0], sizes = [8, 32], strides = [1, 1]} : vector<32x32xbf16> to vector<8x32xbf16>
    %cst_37 = arith.constant dense<0.000000e+00> : vector<8x32xf32>
    %97 = tpu.matmul %95, %96, %cst_37 {dimension_numbers = #tpu.dot_dimension_numbers<[1], [0], [0], [1], [0, 0, 1, 1], [], []>} : vector<8x8xbf16>, vector<8x32xbf16>, vector<8x32xf32> -> vector<8x32xf32>
    %98 = vector.extract_strided_slice %75 {offsets = [0, 8], sizes = [8, 8], strides = [1, 1]} : vector<8x96xbf16> to vector<8x8xbf16>
    %99 = vector.extract_strided_slice %75 {offsets = [0, 40], sizes = [8, 8], strides = [1, 1]} : vector<8x96xbf16> to vector<8x8xbf16>
    %100 = vector.extract_strided_slice %75 {offsets = [0, 72], sizes = [8, 8], strides = [1, 1]} : vector<8x96xbf16> to vector<8x8xbf16>
    %cst_38 = arith.constant dense<0.000000e+00> : vector<8x8xf32>
    %101 = tpu.matmul %98, %99, %cst_38 {dimension_numbers = #tpu.dot_dimension_numbers<[1], [1], [0], [0], [0, 0, 1, 0], [], []>} : vector<8x8xbf16>, vector<8x8xbf16>, vector<8x8xf32> -> vector<8x8xf32>
    %cst_39 = arith.constant 0.353553385 : f32
    %102 = vector.broadcast %cst_39 : f32 to vector<8x8xf32>
    %103 = arith.mulf %101, %102 : vector<8x8xf32>
    %104 = arith.addf %103, %5 : vector<8x8xf32>
    %cst_40 = arith.constant dense<0xFF800000> : vector<8xf32>
    %105 = vector.multi_reduction <maximumf>, %104, %cst_40 [1] : vector<8x8xf32> to vector<8xf32>
    %106 = vector.shape_cast %105 : vector<8xf32> to vector<8x1xf32>
    %107 = vector.broadcast %106 : vector<8x1xf32> to vector<8x8xf32>
    %108 = arith.subf %104, %107 : vector<8x8xf32>
    %109 = math.exp %108 : vector<8x8xf32>
    %cst_41 = arith.constant dense<0.000000e+00> : vector<8xf32>
    %110 = vector.multi_reduction <add>, %109, %cst_41 [1] : vector<8x8xf32> to vector<8xf32>
    %111 = vector.shape_cast %110 : vector<8xf32> to vector<8x1xf32>
    %112 = tpu.reciprocal %111 {approx = true} : vector<8x1xf32> -> vector<8x1xf32>
    %113 = vector.broadcast %112 : vector<8x1xf32> to vector<8x8xf32>
    %114 = arith.mulf %109, %113 : vector<8x8xf32>
    %115 = arith.truncf %114 : vector<8x8xf32> to vector<8x8xbf16>
    %cst_42 = arith.constant dense<0.000000e+00> : vector<8x8xf32>
    %116 = tpu.matmul %115, %100, %cst_42 {dimension_numbers = #tpu.dot_dimension_numbers<[1], [0], [0], [1], [0, 0, 1, 1], [], []>} : vector<8x8xbf16>, vector<8x8xbf16>, vector<8x8xf32> -> vector<8x8xf32>
    %117 = arith.truncf %116 : vector<8x8xf32> to vector<8x8xbf16>
    %118 = vector.extract_strided_slice %37 {offsets = [8, 0], sizes = [8, 32], strides = [1, 1]} : vector<32x32xbf16> to vector<8x32xbf16>
    %cst_43 = arith.constant dense<0.000000e+00> : vector<8x32xf32>
    %119 = tpu.matmul %117, %118, %cst_43 {dimension_numbers = #tpu.dot_dimension_numbers<[1], [0], [0], [1], [0, 0, 1, 1], [], []>} : vector<8x8xbf16>, vector<8x32xbf16>, vector<8x32xf32> -> vector<8x32xf32>
    %120 = arith.addf %97, %119 : vector<8x32xf32>
    %121 = vector.extract_strided_slice %75 {offsets = [0, 16], sizes = [8, 8], strides = [1, 1]} : vector<8x96xbf16> to vector<8x8xbf16>
    %122 = vector.extract_strided_slice %75 {offsets = [0, 48], sizes = [8, 8], strides = [1, 1]} : vector<8x96xbf16> to vector<8x8xbf16>
    %123 = vector.extract_strided_slice %75 {offsets = [0, 80], sizes = [8, 8], strides = [1, 1]} : vector<8x96xbf16> to vector<8x8xbf16>
    %cst_44 = arith.constant dense<0.000000e+00> : vector<8x8xf32>
    %124 = tpu.matmul %121, %122, %cst_44 {dimension_numbers = #tpu.dot_dimension_numbers<[1], [1], [0], [0], [0, 0, 1, 0], [], []>} : vector<8x8xbf16>, vector<8x8xbf16>, vector<8x8xf32> -> vector<8x8xf32>
    %cst_45 = arith.constant 0.353553385 : f32
    %125 = vector.broadcast %cst_45 : f32 to vector<8x8xf32>
    %126 = arith.mulf %124, %125 : vector<8x8xf32>
    %127 = arith.addf %126, %5 : vector<8x8xf32>
    %cst_46 = arith.constant dense<0xFF800000> : vector<8xf32>
    %128 = vector.multi_reduction <maximumf>, %127, %cst_46 [1] : vector<8x8xf32> to vector<8xf32>
    %129 = vector.shape_cast %128 : vector<8xf32> to vector<8x1xf32>
    %130 = vector.broadcast %129 : vector<8x1xf32> to vector<8x8xf32>
    %131 = arith.subf %127, %130 : vector<8x8xf32>
    %132 = math.exp %131 : vector<8x8xf32>
    %cst_47 = arith.constant dense<0.000000e+00> : vector<8xf32>
    %133 = vector.multi_reduction <add>, %132, %cst_47 [1] : vector<8x8xf32> to vector<8xf32>
    %134 = vector.shape_cast %133 : vector<8xf32> to vector<8x1xf32>
    %135 = tpu.reciprocal %134 {approx = true} : vector<8x1xf32> -> vector<8x1xf32>
    %136 = vector.broadcast %135 : vector<8x1xf32> to vector<8x8xf32>
    %137 = arith.mulf %132, %136 : vector<8x8xf32>
    %138 = arith.truncf %137 : vector<8x8xf32> to vector<8x8xbf16>
    %cst_48 = arith.constant dense<0.000000e+00> : vector<8x8xf32>
    %139 = tpu.matmul %138, %123, %cst_48 {dimension_numbers = #tpu.dot_dimension_numbers<[1], [0], [0], [1], [0, 0, 1, 1], [], []>} : vector<8x8xbf16>, vector<8x8xbf16>, vector<8x8xf32> -> vector<8x8xf32>
    %140 = arith.truncf %139 : vector<8x8xf32> to vector<8x8xbf16>
    %141 = vector.extract_strided_slice %37 {offsets = [16, 0], sizes = [8, 32], strides = [1, 1]} : vector<32x32xbf16> to vector<8x32xbf16>
    %cst_49 = arith.constant dense<0.000000e+00> : vector<8x32xf32>
    %142 = tpu.matmul %140, %141, %cst_49 {dimension_numbers = #tpu.dot_dimension_numbers<[1], [0], [0], [1], [0, 0, 1, 1], [], []>} : vector<8x8xbf16>, vector<8x32xbf16>, vector<8x32xf32> -> vector<8x32xf32>
    %143 = arith.addf %120, %142 : vector<8x32xf32>
    %144 = vector.extract_strided_slice %75 {offsets = [0, 24], sizes = [8, 8], strides = [1, 1]} : vector<8x96xbf16> to vector<8x8xbf16>
    %145 = vector.extract_strided_slice %75 {offsets = [0, 56], sizes = [8, 8], strides = [1, 1]} : vector<8x96xbf16> to vector<8x8xbf16>
    %146 = vector.extract_strided_slice %75 {offsets = [0, 88], sizes = [8, 8], strides = [1, 1]} : vector<8x96xbf16> to vector<8x8xbf16>
    %cst_50 = arith.constant dense<0.000000e+00> : vector<8x8xf32>
    %147 = tpu.matmul %144, %145, %cst_50 {dimension_numbers = #tpu.dot_dimension_numbers<[1], [1], [0], [0], [0, 0, 1, 0], [], []>} : vector<8x8xbf16>, vector<8x8xbf16>, vector<8x8xf32> -> vector<8x8xf32>
    %cst_51 = arith.constant 0.353553385 : f32
    %148 = vector.broadcast %cst_51 : f32 to vector<8x8xf32>
    %149 = arith.mulf %147, %148 : vector<8x8xf32>
    %150 = arith.addf %149, %5 : vector<8x8xf32>
    %cst_52 = arith.constant dense<0xFF800000> : vector<8xf32>
    %151 = vector.multi_reduction <maximumf>, %150, %cst_52 [1] : vector<8x8xf32> to vector<8xf32>
    %152 = vector.shape_cast %151 : vector<8xf32> to vector<8x1xf32>
    %153 = vector.broadcast %152 : vector<8x1xf32> to vector<8x8xf32>
    %154 = arith.subf %150, %153 : vector<8x8xf32>
    %155 = math.exp %154 : vector<8x8xf32>
    %cst_53 = arith.constant dense<0.000000e+00> : vector<8xf32>
    %156 = vector.multi_reduction <add>, %155, %cst_53 [1] : vector<8x8xf32> to vector<8xf32>
    %157 = vector.shape_cast %156 : vector<8xf32> to vector<8x1xf32>
    %158 = tpu.reciprocal %157 {approx = true} : vector<8x1xf32> -> vector<8x1xf32>
    %159 = vector.broadcast %158 : vector<8x1xf32> to vector<8x8xf32>
    %160 = arith.mulf %155, %159 : vector<8x8xf32>
    %161 = arith.truncf %160 : vector<8x8xf32> to vector<8x8xbf16>
    %cst_54 = arith.constant dense<0.000000e+00> : vector<8x8xf32>
    %162 = tpu.matmul %161, %146, %cst_54 {dimension_numbers = #tpu.dot_dimension_numbers<[1], [0], [0], [1], [0, 0, 1, 1], [], []>} : vector<8x8xbf16>, vector<8x8xbf16>, vector<8x8xf32> -> vector<8x8xf32>
    %163 = arith.truncf %162 : vector<8x8xf32> to vector<8x8xbf16>
    %164 = vector.extract_strided_slice %37 {offsets = [24, 0], sizes = [8, 32], strides = [1, 1]} : vector<32x32xbf16> to vector<8x32xbf16>
    %cst_55 = arith.constant dense<0.000000e+00> : vector<8x32xf32>
    %165 = tpu.matmul %163, %164, %cst_55 {dimension_numbers = #tpu.dot_dimension_numbers<[1], [0], [0], [1], [0, 0, 1, 1], [], []>} : vector<8x8xbf16>, vector<8x32xbf16>, vector<8x32xf32> -> vector<8x32xf32>
    %166 = arith.addf %143, %165 : vector<8x32xf32>
    %167 = vector.extract_strided_slice %73 {offsets = [8, 0], sizes = [8, 96], strides = [1, 1]} : vector<16x96xf32> to vector<8x96xf32>
    %168 = arith.truncf %167 : vector<8x96xf32> to vector<8x96xbf16>
    %169 = vector.extract_strided_slice %168 {offsets = [0, 0], sizes = [8, 8], strides = [1, 1]} : vector<8x96xbf16> to vector<8x8xbf16>
    %170 = vector.extract_strided_slice %168 {offsets = [0, 32], sizes = [8, 8], strides = [1, 1]} : vector<8x96xbf16> to vector<8x8xbf16>
    %171 = vector.extract_strided_slice %168 {offsets = [0, 64], sizes = [8, 8], strides = [1, 1]} : vector<8x96xbf16> to vector<8x8xbf16>
    %cst_56 = arith.constant dense<0.000000e+00> : vector<8x8xf32>
    %172 = tpu.matmul %169, %170, %cst_56 {dimension_numbers = #tpu.dot_dimension_numbers<[1], [1], [0], [0], [0, 0, 1, 0], [], []>} : vector<8x8xbf16>, vector<8x8xbf16>, vector<8x8xf32> -> vector<8x8xf32>
    %cst_57 = arith.constant 0.353553385 : f32
    %173 = vector.broadcast %cst_57 : f32 to vector<8x8xf32>
    %174 = arith.mulf %172, %173 : vector<8x8xf32>
    %175 = arith.addf %174, %5 : vector<8x8xf32>
    %cst_58 = arith.constant dense<0xFF800000> : vector<8xf32>
    %176 = vector.multi_reduction <maximumf>, %175, %cst_58 [1] : vector<8x8xf32> to vector<8xf32>
    %177 = vector.shape_cast %176 : vector<8xf32> to vector<8x1xf32>
    %178 = vector.broadcast %177 : vector<8x1xf32> to vector<8x8xf32>
    %179 = arith.subf %175, %178 : vector<8x8xf32>
    %180 = math.exp %179 : vector<8x8xf32>
    %cst_59 = arith.constant dense<0.000000e+00> : vector<8xf32>
    %181 = vector.multi_reduction <add>, %180, %cst_59 [1] : vector<8x8xf32> to vector<8xf32>
    %182 = vector.shape_cast %181 : vector<8xf32> to vector<8x1xf32>
    %183 = tpu.reciprocal %182 {approx = true} : vector<8x1xf32> -> vector<8x1xf32>
    %184 = vector.broadcast %183 : vector<8x1xf32> to vector<8x8xf32>
    %185 = arith.mulf %180, %184 : vector<8x8xf32>
    %186 = arith.truncf %185 : vector<8x8xf32> to vector<8x8xbf16>
    %cst_60 = arith.constant dense<0.000000e+00> : vector<8x8xf32>
    %187 = tpu.matmul %186, %171, %cst_60 {dimension_numbers = #tpu.dot_dimension_numbers<[1], [0], [0], [1], [0, 0, 1, 1], [], []>} : vector<8x8xbf16>, vector<8x8xbf16>, vector<8x8xf32> -> vector<8x8xf32>
    %188 = arith.truncf %187 : vector<8x8xf32> to vector<8x8xbf16>
    %189 = vector.extract_strided_slice %37 {offsets = [0, 0], sizes = [8, 32], strides = [1, 1]} : vector<32x32xbf16> to vector<8x32xbf16>
    %cst_61 = arith.constant dense<0.000000e+00> : vector<8x32xf32>
    %190 = tpu.matmul %188, %189, %cst_61 {dimension_numbers = #tpu.dot_dimension_numbers<[1], [0], [0], [1], [0, 0, 1, 1], [], []>} : vector<8x8xbf16>, vector<8x32xbf16>, vector<8x32xf32> -> vector<8x32xf32>
    %191 = vector.extract_strided_slice %168 {offsets = [0, 8], sizes = [8, 8], strides = [1, 1]} : vector<8x96xbf16> to vector<8x8xbf16>
    %192 = vector.extract_strided_slice %168 {offsets = [0, 40], sizes = [8, 8], strides = [1, 1]} : vector<8x96xbf16> to vector<8x8xbf16>
    %193 = vector.extract_strided_slice %168 {offsets = [0, 72], sizes = [8, 8], strides = [1, 1]} : vector<8x96xbf16> to vector<8x8xbf16>
    %cst_62 = arith.constant dense<0.000000e+00> : vector<8x8xf32>
    %194 = tpu.matmul %191, %192, %cst_62 {dimension_numbers = #tpu.dot_dimension_numbers<[1], [1], [0], [0], [0, 0, 1, 0], [], []>} : vector<8x8xbf16>, vector<8x8xbf16>, vector<8x8xf32> -> vector<8x8xf32>
    %cst_63 = arith.constant 0.353553385 : f32
    %195 = vector.broadcast %cst_63 : f32 to vector<8x8xf32>
    %196 = arith.mulf %194, %195 : vector<8x8xf32>
    %197 = arith.addf %196, %5 : vector<8x8xf32>
    %cst_64 = arith.constant dense<0xFF800000> : vector<8xf32>
    %198 = vector.multi_reduction <maximumf>, %197, %cst_64 [1] : vector<8x8xf32> to vector<8xf32>
    %199 = vector.shape_cast %198 : vector<8xf32> to vector<8x1xf32>
    %200 = vector.broadcast %199 : vector<8x1xf32> to vector<8x8xf32>
    %201 = arith.subf %197, %200 : vector<8x8xf32>
    %202 = math.exp %201 : vector<8x8xf32>
    %cst_65 = arith.constant dense<0.000000e+00> : vector<8xf32>
    %203 = vector.multi_reduction <add>, %202, %cst_65 [1] : vector<8x8xf32> to vector<8xf32>
    %204 = vector.shape_cast %203 : vector<8xf32> to vector<8x1xf32>
    %205 = tpu.reciprocal %204 {approx = true} : vector<8x1xf32> -> vector<8x1xf32>
    %206 = vector.broadcast %205 : vector<8x1xf32> to vector<8x8xf32>
    %207 = arith.mulf %202, %206 : vector<8x8xf32>
    %208 = arith.truncf %207 : vector<8x8xf32> to vector<8x8xbf16>
    %cst_66 = arith.constant dense<0.000000e+00> : vector<8x8xf32>
    %209 = tpu.matmul %208, %193, %cst_66 {dimension_numbers = #tpu.dot_dimension_numbers<[1], [0], [0], [1], [0, 0, 1, 1], [], []>} : vector<8x8xbf16>, vector<8x8xbf16>, vector<8x8xf32> -> vector<8x8xf32>
    %210 = arith.truncf %209 : vector<8x8xf32> to vector<8x8xbf16>
    %211 = vector.extract_strided_slice %37 {offsets = [8, 0], sizes = [8, 32], strides = [1, 1]} : vector<32x32xbf16> to vector<8x32xbf16>
    %cst_67 = arith.constant dense<0.000000e+00> : vector<8x32xf32>
    %212 = tpu.matmul %210, %211, %cst_67 {dimension_numbers = #tpu.dot_dimension_numbers<[1], [0], [0], [1], [0, 0, 1, 1], [], []>} : vector<8x8xbf16>, vector<8x32xbf16>, vector<8x32xf32> -> vector<8x32xf32>
    %213 = arith.addf %190, %212 : vector<8x32xf32>
    %214 = vector.extract_strided_slice %168 {offsets = [0, 16], sizes = [8, 8], strides = [1, 1]} : vector<8x96xbf16> to vector<8x8xbf16>
    %215 = vector.extract_strided_slice %168 {offsets = [0, 48], sizes = [8, 8], strides = [1, 1]} : vector<8x96xbf16> to vector<8x8xbf16>
    %216 = vector.extract_strided_slice %168 {offsets = [0, 80], sizes = [8, 8], strides = [1, 1]} : vector<8x96xbf16> to vector<8x8xbf16>
    %cst_68 = arith.constant dense<0.000000e+00> : vector<8x8xf32>
    %217 = tpu.matmul %214, %215, %cst_68 {dimension_numbers = #tpu.dot_dimension_numbers<[1], [1], [0], [0], [0, 0, 1, 0], [], []>} : vector<8x8xbf16>, vector<8x8xbf16>, vector<8x8xf32> -> vector<8x8xf32>
    %cst_69 = arith.constant 0.353553385 : f32
    %218 = vector.broadcast %cst_69 : f32 to vector<8x8xf32>
    %219 = arith.mulf %217, %218 : vector<8x8xf32>
    %220 = arith.addf %219, %5 : vector<8x8xf32>
    %cst_70 = arith.constant dense<0xFF800000> : vector<8xf32>
    %221 = vector.multi_reduction <maximumf>, %220, %cst_70 [1] : vector<8x8xf32> to vector<8xf32>
    %222 = vector.shape_cast %221 : vector<8xf32> to vector<8x1xf32>
    %223 = vector.broadcast %222 : vector<8x1xf32> to vector<8x8xf32>
    %224 = arith.subf %220, %223 : vector<8x8xf32>
    %225 = math.exp %224 : vector<8x8xf32>
    %cst_71 = arith.constant dense<0.000000e+00> : vector<8xf32>
    %226 = vector.multi_reduction <add>, %225, %cst_71 [1] : vector<8x8xf32> to vector<8xf32>
    %227 = vector.shape_cast %226 : vector<8xf32> to vector<8x1xf32>
    %228 = tpu.reciprocal %227 {approx = true} : vector<8x1xf32> -> vector<8x1xf32>
    %229 = vector.broadcast %228 : vector<8x1xf32> to vector<8x8xf32>
    %230 = arith.mulf %225, %229 : vector<8x8xf32>
    %231 = arith.truncf %230 : vector<8x8xf32> to vector<8x8xbf16>
    %cst_72 = arith.constant dense<0.000000e+00> : vector<8x8xf32>
    %232 = tpu.matmul %231, %216, %cst_72 {dimension_numbers = #tpu.dot_dimension_numbers<[1], [0], [0], [1], [0, 0, 1, 1], [], []>} : vector<8x8xbf16>, vector<8x8xbf16>, vector<8x8xf32> -> vector<8x8xf32>
    %233 = arith.truncf %232 : vector<8x8xf32> to vector<8x8xbf16>
    %234 = vector.extract_strided_slice %37 {offsets = [16, 0], sizes = [8, 32], strides = [1, 1]} : vector<32x32xbf16> to vector<8x32xbf16>
    %cst_73 = arith.constant dense<0.000000e+00> : vector<8x32xf32>
    %235 = tpu.matmul %233, %234, %cst_73 {dimension_numbers = #tpu.dot_dimension_numbers<[1], [0], [0], [1], [0, 0, 1, 1], [], []>} : vector<8x8xbf16>, vector<8x32xbf16>, vector<8x32xf32> -> vector<8x32xf32>
    %236 = arith.addf %213, %235 : vector<8x32xf32>
    %237 = vector.extract_strided_slice %168 {offsets = [0, 24], sizes = [8, 8], strides = [1, 1]} : vector<8x96xbf16> to vector<8x8xbf16>
    %238 = vector.extract_strided_slice %168 {offsets = [0, 56], sizes = [8, 8], strides = [1, 1]} : vector<8x96xbf16> to vector<8x8xbf16>
    %239 = vector.extract_strided_slice %168 {offsets = [0, 88], sizes = [8, 8], strides = [1, 1]} : vector<8x96xbf16> to vector<8x8xbf16>
    %cst_74 = arith.constant dense<0.000000e+00> : vector<8x8xf32>
    %240 = tpu.matmul %237, %238, %cst_74 {dimension_numbers = #tpu.dot_dimension_numbers<[1], [1], [0], [0], [0, 0, 1, 0], [], []>} : vector<8x8xbf16>, vector<8x8xbf16>, vector<8x8xf32> -> vector<8x8xf32>
    %cst_75 = arith.constant 0.353553385 : f32
    %241 = vector.broadcast %cst_75 : f32 to vector<8x8xf32>
    %242 = arith.mulf %240, %241 : vector<8x8xf32>
    %243 = arith.addf %242, %5 : vector<8x8xf32>
    %cst_76 = arith.constant dense<0xFF800000> : vector<8xf32>
    %244 = vector.multi_reduction <maximumf>, %243, %cst_76 [1] : vector<8x8xf32> to vector<8xf32>
    %245 = vector.shape_cast %244 : vector<8xf32> to vector<8x1xf32>
    %246 = vector.broadcast %245 : vector<8x1xf32> to vector<8x8xf32>
    %247 = arith.subf %243, %246 : vector<8x8xf32>
    %248 = math.exp %247 : vector<8x8xf32>
    %cst_77 = arith.constant dense<0.000000e+00> : vector<8xf32>
    %249 = vector.multi_reduction <add>, %248, %cst_77 [1] : vector<8x8xf32> to vector<8xf32>
    %250 = vector.shape_cast %249 : vector<8xf32> to vector<8x1xf32>
    %251 = tpu.reciprocal %250 {approx = true} : vector<8x1xf32> -> vector<8x1xf32>
    %252 = vector.broadcast %251 : vector<8x1xf32> to vector<8x8xf32>
    %253 = arith.mulf %248, %252 : vector<8x8xf32>
    %254 = arith.truncf %253 : vector<8x8xf32> to vector<8x8xbf16>
    %cst_78 = arith.constant dense<0.000000e+00> : vector<8x8xf32>
    %255 = tpu.matmul %254, %239, %cst_78 {dimension_numbers = #tpu.dot_dimension_numbers<[1], [0], [0], [1], [0, 0, 1, 1], [], []>} : vector<8x8xbf16>, vector<8x8xbf16>, vector<8x8xf32> -> vector<8x8xf32>
    %256 = arith.truncf %255 : vector<8x8xf32> to vector<8x8xbf16>
    %257 = vector.extract_strided_slice %37 {offsets = [24, 0], sizes = [8, 32], strides = [1, 1]} : vector<32x32xbf16> to vector<8x32xbf16>
    %cst_79 = arith.constant dense<0.000000e+00> : vector<8x32xf32>
    %258 = tpu.matmul %256, %257, %cst_79 {dimension_numbers = #tpu.dot_dimension_numbers<[1], [0], [0], [1], [0, 0, 1, 1], [], []>} : vector<8x8xbf16>, vector<8x32xbf16>, vector<8x32xf32> -> vector<8x32xf32>
    %259 = arith.addf %236, %258 : vector<8x32xf32>
    %260 = tpu.concatenate %166, %259 in 0 : vector<8x32xf32>, vector<8x32xf32> -> vector<16x32xf32>
    %261 = arith.addf %35, %260 : vector<16x32xf32>
    %262 = vector.broadcast %43 : vector<1x32xf32> to vector<16x32xf32>
    %263 = arith.addf %261, %262 : vector<16x32xf32>
    %cst_80 = arith.constant dense<0.000000e+00> : vector<16xf32>
    %264 = vector.multi_reduction <add>, %263, %cst_80 [1] : vector<16x32xf32> to vector<16xf32>
    %265 = vector.shape_cast %264 : vector<16xf32> to vector<16x1xf32>
    %cst_81 = arith.constant 3.200000e+01 : f32
    %266 = vector.broadcast %cst_81 : f32 to vector<16x1xf32>
    %267 = arith.divf %265, %266 : vector<16x1xf32>
    %268 = vector.broadcast %267 : vector<16x1xf32> to vector<16x32xf32>
    %269 = arith.subf %263, %268 : vector<16x32xf32>
    %270 = arith.mulf %269, %269 : vector<16x32xf32>
    %cst_82 = arith.constant dense<0.000000e+00> : vector<16xf32>
    %271 = vector.multi_reduction <add>, %270, %cst_82 [1] : vector<16x32xf32> to vector<16xf32>
    %272 = vector.shape_cast %271 : vector<16xf32> to vector<16x1xf32>
    %cst_83 = arith.constant 3.200000e+01 : f32
    %273 = vector.broadcast %cst_83 : f32 to vector<16x1xf32>
    %274 = arith.divf %272, %273 : vector<16x1xf32>
    %275 = vector.broadcast %267 : vector<16x1xf32> to vector<16x32xf32>
    %276 = arith.subf %263, %275 : vector<16x32xf32>
    %cst_84 = arith.constant 9.99999974E-6 : f32
    %277 = vector.broadcast %cst_84 : f32 to vector<16x1xf32>
    %278 = arith.addf %274, %277 : vector<16x1xf32>
    %279 = math.rsqrt %278 : vector<16x1xf32>
    %280 = vector.broadcast %279 : vector<16x1xf32> to vector<16x32xf32>
    %281 = arith.mulf %276, %280 : vector<16x32xf32>
    %282 = vector.broadcast %44 : vector<1x32xf32> to vector<16x32xf32>
    %283 = arith.mulf %281, %282 : vector<16x32xf32>
    %284 = vector.broadcast %45 : vector<1x32xf32> to vector<16x32xf32>
    %285 = arith.addf %283, %284 : vector<16x32xf32>
    %286 = arith.truncf %285 : vector<16x32xf32> to vector<16x32xbf16>
    %cst_85 = arith.constant dense<0.000000e+00> : vector<16x128xf32>
    %287 = tpu.matmul %286, %38, %cst_85 {dimension_numbers = #tpu.dot_dimension_numbers<[1], [0], [0], [1], [0, 0, 1, 1], [], []>} : vector<16x32xbf16>, vector<32x128xbf16>, vector<16x128xf32> -> vector<16x128xf32>
    %288 = vector.broadcast %46 : vector<1x128xf32> to vector<16x128xf32>
    %289 = arith.addf %287, %288 : vector<16x128xf32>
    %cst_86 = arith.constant -1.702000e+00 : f32
    %290 = vector.broadcast %cst_86 : f32 to vector<16x128xf32>
    %291 = arith.mulf %290, %289 : vector<16x128xf32>
    %292 = math.exp %291 : vector<16x128xf32>
    %cst_87 = arith.constant 1.000000e+00 : f32
    %293 = vector.broadcast %cst_87 : f32 to vector<16x128xf32>
    %294 = arith.addf %293, %292 : vector<16x128xf32>
    %295 = tpu.reciprocal %294 {approx = true} : vector<16x128xf32> -> vector<16x128xf32>
    %296 = arith.mulf %289, %295 : vector<16x128xf32>
    %297 = arith.truncf %296 : vector<16x128xf32> to vector<16x128xbf16>
    %cst_88 = arith.constant dense<0.000000e+00> : vector<16x32xf32>
    %298 = tpu.matmul %297, %39, %cst_88 {dimension_numbers = #tpu.dot_dimension_numbers<[1], [0], [0], [1], [0, 0, 1, 1], [], []>} : vector<16x128xbf16>, vector<128x32xbf16>, vector<16x32xf32> -> vector<16x32xf32>
    %299 = vector.broadcast %47 : vector<1x32xf32> to vector<16x32xf32>
    %300 = arith.addf %298, %299 : vector<16x32xf32>
    %301 = arith.addf %263, %300 : vector<16x32xf32>
    %c448 = arith.constant 448 : index
    %c0_89 = arith.constant 0 : index
    %302 = vector.load %arg1[%c448, %c0_89] : memref<672x128xbf16, #tpu.memory_space<vmem>>, vector<32x96xbf16>
    %c480 = arith.constant 480 : index
    %c0_90 = arith.constant 0 : index
    %303 = vector.load %arg1[%c480, %c0_90] : memref<672x128xbf16, #tpu.memory_space<vmem>>, vector<32x32xbf16>
    %c512 = arith.constant 512 : index
    %c0_91 = arith.constant 0 : index
    %304 = vector.load %arg1[%c512, %c0_91] : memref<672x128xbf16, #tpu.memory_space<vmem>>, vector<32x128xbf16>
    %c544 = arith.constant 544 : index
    %c0_92 = arith.constant 0 : index
    %305 = vector.load %arg1[%c544, %c0_92] : memref<672x128xbf16, #tpu.memory_space<vmem>>, vector<128x32xbf16>
    %c24 = arith.constant 24 : index
    %c0_93 = arith.constant 0 : index
    %306 = vector.load %arg2[%c24, %c0_93] : memref<32x128xf32, #tpu.memory_space<vmem>>, vector<1x32xf32>
    %c25 = arith.constant 25 : index
    %c0_94 = arith.constant 0 : index
    %307 = vector.load %arg2[%c25, %c0_94] : memref<32x128xf32, #tpu.memory_space<vmem>>, vector<1x32xf32>
    %c26 = arith.constant 26 : index
    %c0_95 = arith.constant 0 : index
    %308 = vector.load %arg2[%c26, %c0_95] : memref<32x128xf32, #tpu.memory_space<vmem>>, vector<1x96xf32>
    %c27 = arith.constant 27 : index
    %c0_96 = arith.constant 0 : index
    %309 = vector.load %arg2[%c27, %c0_96] : memref<32x128xf32, #tpu.memory_space<vmem>>, vector<1x32xf32>
    %c28 = arith.constant 28 : index
    %c0_97 = arith.constant 0 : index
    %310 = vector.load %arg2[%c28, %c0_97] : memref<32x128xf32, #tpu.memory_space<vmem>>, vector<1x32xf32>
    %c29 = arith.constant 29 : index
    %c0_98 = arith.constant 0 : index
    %311 = vector.load %arg2[%c29, %c0_98] : memref<32x128xf32, #tpu.memory_space<vmem>>, vector<1x32xf32>
    %c30 = arith.constant 30 : index
    %c0_99 = arith.constant 0 : index
    %312 = vector.load %arg2[%c30, %c0_99] : memref<32x128xf32, #tpu.memory_space<vmem>>, vector<1x128xf32>
    %c31 = arith.constant 31 : index
    %c0_100 = arith.constant 0 : index
    %313 = vector.load %arg2[%c31, %c0_100] : memref<32x128xf32, #tpu.memory_space<vmem>>, vector<1x32xf32>
    %cst_101 = arith.constant dense<0.000000e+00> : vector<16xf32>
    %314 = vector.multi_reduction <add>, %301, %cst_101 [1] : vector<16x32xf32> to vector<16xf32>
    %315 = vector.shape_cast %314 : vector<16xf32> to vector<16x1xf32>
    %cst_102 = arith.constant 3.200000e+01 : f32
    %316 = vector.broadcast %cst_102 : f32 to vector<16x1xf32>
    %317 = arith.divf %315, %316 : vector<16x1xf32>
    %318 = vector.broadcast %317 : vector<16x1xf32> to vector<16x32xf32>
    %319 = arith.subf %301, %318 : vector<16x32xf32>
    %320 = arith.mulf %319, %319 : vector<16x32xf32>
    %cst_103 = arith.constant dense<0.000000e+00> : vector<16xf32>
    %321 = vector.multi_reduction <add>, %320, %cst_103 [1] : vector<16x32xf32> to vector<16xf32>
    %322 = vector.shape_cast %321 : vector<16xf32> to vector<16x1xf32>
    %cst_104 = arith.constant 3.200000e+01 : f32
    %323 = vector.broadcast %cst_104 : f32 to vector<16x1xf32>
    %324 = arith.divf %322, %323 : vector<16x1xf32>
    %325 = vector.broadcast %317 : vector<16x1xf32> to vector<16x32xf32>
    %326 = arith.subf %301, %325 : vector<16x32xf32>
    %cst_105 = arith.constant 9.99999974E-6 : f32
    %327 = vector.broadcast %cst_105 : f32 to vector<16x1xf32>
    %328 = arith.addf %324, %327 : vector<16x1xf32>
    %329 = math.rsqrt %328 : vector<16x1xf32>
    %330 = vector.broadcast %329 : vector<16x1xf32> to vector<16x32xf32>
    %331 = arith.mulf %326, %330 : vector<16x32xf32>
    %332 = vector.broadcast %306 : vector<1x32xf32> to vector<16x32xf32>
    %333 = arith.mulf %331, %332 : vector<16x32xf32>
    %334 = vector.broadcast %307 : vector<1x32xf32> to vector<16x32xf32>
    %335 = arith.addf %333, %334 : vector<16x32xf32>
    %336 = arith.truncf %335 : vector<16x32xf32> to vector<16x32xbf16>
    %cst_106 = arith.constant dense<0.000000e+00> : vector<16x96xf32>
    %337 = tpu.matmul %336, %302, %cst_106 {dimension_numbers = #tpu.dot_dimension_numbers<[1], [0], [0], [1], [0, 0, 1, 1], [], []>} : vector<16x32xbf16>, vector<32x96xbf16>, vector<16x96xf32> -> vector<16x96xf32>
    %338 = vector.broadcast %308 : vector<1x96xf32> to vector<16x96xf32>
    %339 = arith.addf %337, %338 : vector<16x96xf32>
    %340 = vector.extract_strided_slice %339 {offsets = [0, 0], sizes = [8, 96], strides = [1, 1]} : vector<16x96xf32> to vector<8x96xf32>
    %341 = arith.truncf %340 : vector<8x96xf32> to vector<8x96xbf16>
    %342 = vector.extract_strided_slice %341 {offsets = [0, 0], sizes = [8, 8], strides = [1, 1]} : vector<8x96xbf16> to vector<8x8xbf16>
    %343 = vector.extract_strided_slice %341 {offsets = [0, 32], sizes = [8, 8], strides = [1, 1]} : vector<8x96xbf16> to vector<8x8xbf16>
    %344 = vector.extract_strided_slice %341 {offsets = [0, 64], sizes = [8, 8], strides = [1, 1]} : vector<8x96xbf16> to vector<8x8xbf16>
    %cst_107 = arith.constant dense<0.000000e+00> : vector<8x8xf32>
    %345 = tpu.matmul %342, %343, %cst_107 {dimension_numbers = #tpu.dot_dimension_numbers<[1], [1], [0], [0], [0, 0, 1, 0], [], []>} : vector<8x8xbf16>, vector<8x8xbf16>, vector<8x8xf32> -> vector<8x8xf32>
    %cst_108 = arith.constant 0.353553385 : f32
    %346 = vector.broadcast %cst_108 : f32 to vector<8x8xf32>
    %347 = arith.mulf %345, %346 : vector<8x8xf32>
    %348 = arith.addf %347, %5 : vector<8x8xf32>
    %cst_109 = arith.constant dense<0xFF800000> : vector<8xf32>
    %349 = vector.multi_reduction <maximumf>, %348, %cst_109 [1] : vector<8x8xf32> to vector<8xf32>
    %350 = vector.shape_cast %349 : vector<8xf32> to vector<8x1xf32>
    %351 = vector.broadcast %350 : vector<8x1xf32> to vector<8x8xf32>
    %352 = arith.subf %348, %351 : vector<8x8xf32>
    %353 = math.exp %352 : vector<8x8xf32>
    %cst_110 = arith.constant dense<0.000000e+00> : vector<8xf32>
    %354 = vector.multi_reduction <add>, %353, %cst_110 [1] : vector<8x8xf32> to vector<8xf32>
    %355 = vector.shape_cast %354 : vector<8xf32> to vector<8x1xf32>
    %356 = tpu.reciprocal %355 {approx = true} : vector<8x1xf32> -> vector<8x1xf32>
    %357 = vector.broadcast %356 : vector<8x1xf32> to vector<8x8xf32>
    %358 = arith.mulf %353, %357 : vector<8x8xf32>
    %359 = arith.truncf %358 : vector<8x8xf32> to vector<8x8xbf16>
    %cst_111 = arith.constant dense<0.000000e+00> : vector<8x8xf32>
    %360 = tpu.matmul %359, %344, %cst_111 {dimension_numbers = #tpu.dot_dimension_numbers<[1], [0], [0], [1], [0, 0, 1, 1], [], []>} : vector<8x8xbf16>, vector<8x8xbf16>, vector<8x8xf32> -> vector<8x8xf32>
    %361 = arith.truncf %360 : vector<8x8xf32> to vector<8x8xbf16>
    %362 = vector.extract_strided_slice %303 {offsets = [0, 0], sizes = [8, 32], strides = [1, 1]} : vector<32x32xbf16> to vector<8x32xbf16>
    %cst_112 = arith.constant dense<0.000000e+00> : vector<8x32xf32>
    %363 = tpu.matmul %361, %362, %cst_112 {dimension_numbers = #tpu.dot_dimension_numbers<[1], [0], [0], [1], [0, 0, 1, 1], [], []>} : vector<8x8xbf16>, vector<8x32xbf16>, vector<8x32xf32> -> vector<8x32xf32>
    %364 = vector.extract_strided_slice %341 {offsets = [0, 8], sizes = [8, 8], strides = [1, 1]} : vector<8x96xbf16> to vector<8x8xbf16>
    %365 = vector.extract_strided_slice %341 {offsets = [0, 40], sizes = [8, 8], strides = [1, 1]} : vector<8x96xbf16> to vector<8x8xbf16>
    %366 = vector.extract_strided_slice %341 {offsets = [0, 72], sizes = [8, 8], strides = [1, 1]} : vector<8x96xbf16> to vector<8x8xbf16>
    %cst_113 = arith.constant dense<0.000000e+00> : vector<8x8xf32>
    %367 = tpu.matmul %364, %365, %cst_113 {dimension_numbers = #tpu.dot_dimension_numbers<[1], [1], [0], [0], [0, 0, 1, 0], [], []>} : vector<8x8xbf16>, vector<8x8xbf16>, vector<8x8xf32> -> vector<8x8xf32>
    %cst_114 = arith.constant 0.353553385 : f32
    %368 = vector.broadcast %cst_114 : f32 to vector<8x8xf32>
    %369 = arith.mulf %367, %368 : vector<8x8xf32>
    %370 = arith.addf %369, %5 : vector<8x8xf32>
    %cst_115 = arith.constant dense<0xFF800000> : vector<8xf32>
    %371 = vector.multi_reduction <maximumf>, %370, %cst_115 [1] : vector<8x8xf32> to vector<8xf32>
    %372 = vector.shape_cast %371 : vector<8xf32> to vector<8x1xf32>
    %373 = vector.broadcast %372 : vector<8x1xf32> to vector<8x8xf32>
    %374 = arith.subf %370, %373 : vector<8x8xf32>
    %375 = math.exp %374 : vector<8x8xf32>
    %cst_116 = arith.constant dense<0.000000e+00> : vector<8xf32>
    %376 = vector.multi_reduction <add>, %375, %cst_116 [1] : vector<8x8xf32> to vector<8xf32>
    %377 = vector.shape_cast %376 : vector<8xf32> to vector<8x1xf32>
    %378 = tpu.reciprocal %377 {approx = true} : vector<8x1xf32> -> vector<8x1xf32>
    %379 = vector.broadcast %378 : vector<8x1xf32> to vector<8x8xf32>
    %380 = arith.mulf %375, %379 : vector<8x8xf32>
    %381 = arith.truncf %380 : vector<8x8xf32> to vector<8x8xbf16>
    %cst_117 = arith.constant dense<0.000000e+00> : vector<8x8xf32>
    %382 = tpu.matmul %381, %366, %cst_117 {dimension_numbers = #tpu.dot_dimension_numbers<[1], [0], [0], [1], [0, 0, 1, 1], [], []>} : vector<8x8xbf16>, vector<8x8xbf16>, vector<8x8xf32> -> vector<8x8xf32>
    %383 = arith.truncf %382 : vector<8x8xf32> to vector<8x8xbf16>
    %384 = vector.extract_strided_slice %303 {offsets = [8, 0], sizes = [8, 32], strides = [1, 1]} : vector<32x32xbf16> to vector<8x32xbf16>
    %cst_118 = arith.constant dense<0.000000e+00> : vector<8x32xf32>
    %385 = tpu.matmul %383, %384, %cst_118 {dimension_numbers = #tpu.dot_dimension_numbers<[1], [0], [0], [1], [0, 0, 1, 1], [], []>} : vector<8x8xbf16>, vector<8x32xbf16>, vector<8x32xf32> -> vector<8x32xf32>
    %386 = arith.addf %363, %385 : vector<8x32xf32>
    %387 = vector.extract_strided_slice %341 {offsets = [0, 16], sizes = [8, 8], strides = [1, 1]} : vector<8x96xbf16> to vector<8x8xbf16>
    %388 = vector.extract_strided_slice %341 {offsets = [0, 48], sizes = [8, 8], strides = [1, 1]} : vector<8x96xbf16> to vector<8x8xbf16>
    %389 = vector.extract_strided_slice %341 {offsets = [0, 80], sizes = [8, 8], strides = [1, 1]} : vector<8x96xbf16> to vector<8x8xbf16>
    %cst_119 = arith.constant dense<0.000000e+00> : vector<8x8xf32>
    %390 = tpu.matmul %387, %388, %cst_119 {dimension_numbers = #tpu.dot_dimension_numbers<[1], [1], [0], [0], [0, 0, 1, 0], [], []>} : vector<8x8xbf16>, vector<8x8xbf16>, vector<8x8xf32> -> vector<8x8xf32>
    %cst_120 = arith.constant 0.353553385 : f32
    %391 = vector.broadcast %cst_120 : f32 to vector<8x8xf32>
    %392 = arith.mulf %390, %391 : vector<8x8xf32>
    %393 = arith.addf %392, %5 : vector<8x8xf32>
    %cst_121 = arith.constant dense<0xFF800000> : vector<8xf32>
    %394 = vector.multi_reduction <maximumf>, %393, %cst_121 [1] : vector<8x8xf32> to vector<8xf32>
    %395 = vector.shape_cast %394 : vector<8xf32> to vector<8x1xf32>
    %396 = vector.broadcast %395 : vector<8x1xf32> to vector<8x8xf32>
    %397 = arith.subf %393, %396 : vector<8x8xf32>
    %398 = math.exp %397 : vector<8x8xf32>
    %cst_122 = arith.constant dense<0.000000e+00> : vector<8xf32>
    %399 = vector.multi_reduction <add>, %398, %cst_122 [1] : vector<8x8xf32> to vector<8xf32>
    %400 = vector.shape_cast %399 : vector<8xf32> to vector<8x1xf32>
    %401 = tpu.reciprocal %400 {approx = true} : vector<8x1xf32> -> vector<8x1xf32>
    %402 = vector.broadcast %401 : vector<8x1xf32> to vector<8x8xf32>
    %403 = arith.mulf %398, %402 : vector<8x8xf32>
    %404 = arith.truncf %403 : vector<8x8xf32> to vector<8x8xbf16>
    %cst_123 = arith.constant dense<0.000000e+00> : vector<8x8xf32>
    %405 = tpu.matmul %404, %389, %cst_123 {dimension_numbers = #tpu.dot_dimension_numbers<[1], [0], [0], [1], [0, 0, 1, 1], [], []>} : vector<8x8xbf16>, vector<8x8xbf16>, vector<8x8xf32> -> vector<8x8xf32>
    %406 = arith.truncf %405 : vector<8x8xf32> to vector<8x8xbf16>
    %407 = vector.extract_strided_slice %303 {offsets = [16, 0], sizes = [8, 32], strides = [1, 1]} : vector<32x32xbf16> to vector<8x32xbf16>
    %cst_124 = arith.constant dense<0.000000e+00> : vector<8x32xf32>
    %408 = tpu.matmul %406, %407, %cst_124 {dimension_numbers = #tpu.dot_dimension_numbers<[1], [0], [0], [1], [0, 0, 1, 1], [], []>} : vector<8x8xbf16>, vector<8x32xbf16>, vector<8x32xf32> -> vector<8x32xf32>
    %409 = arith.addf %386, %408 : vector<8x32xf32>
    %410 = vector.extract_strided_slice %341 {offsets = [0, 24], sizes = [8, 8], strides = [1, 1]} : vector<8x96xbf16> to vector<8x8xbf16>
    %411 = vector.extract_strided_slice %341 {offsets = [0, 56], sizes = [8, 8], strides = [1, 1]} : vector<8x96xbf16> to vector<8x8xbf16>
    %412 = vector.extract_strided_slice %341 {offsets = [0, 88], sizes = [8, 8], strides = [1, 1]} : vector<8x96xbf16> to vector<8x8xbf16>
    %cst_125 = arith.constant dense<0.000000e+00> : vector<8x8xf32>
    %413 = tpu.matmul %410, %411, %cst_125 {dimension_numbers = #tpu.dot_dimension_numbers<[1], [1], [0], [0], [0, 0, 1, 0], [], []>} : vector<8x8xbf16>, vector<8x8xbf16>, vector<8x8xf32> -> vector<8x8xf32>
    %cst_126 = arith.constant 0.353553385 : f32
    %414 = vector.broadcast %cst_126 : f32 to vector<8x8xf32>
    %415 = arith.mulf %413, %414 : vector<8x8xf32>
    %416 = arith.addf %415, %5 : vector<8x8xf32>
    %cst_127 = arith.constant dense<0xFF800000> : vector<8xf32>
    %417 = vector.multi_reduction <maximumf>, %416, %cst_127 [1] : vector<8x8xf32> to vector<8xf32>
    %418 = vector.shape_cast %417 : vector<8xf32> to vector<8x1xf32>
    %419 = vector.broadcast %418 : vector<8x1xf32> to vector<8x8xf32>
    %420 = arith.subf %416, %419 : vector<8x8xf32>
    %421 = math.exp %420 : vector<8x8xf32>
    %cst_128 = arith.constant dense<0.000000e+00> : vector<8xf32>
    %422 = vector.multi_reduction <add>, %421, %cst_128 [1] : vector<8x8xf32> to vector<8xf32>
    %423 = vector.shape_cast %422 : vector<8xf32> to vector<8x1xf32>
    %424 = tpu.reciprocal %423 {approx = true} : vector<8x1xf32> -> vector<8x1xf32>
    %425 = vector.broadcast %424 : vector<8x1xf32> to vector<8x8xf32>
    %426 = arith.mulf %421, %425 : vector<8x8xf32>
    %427 = arith.truncf %426 : vector<8x8xf32> to vector<8x8xbf16>
    %cst_129 = arith.constant dense<0.000000e+00> : vector<8x8xf32>
    %428 = tpu.matmul %427, %412, %cst_129 {dimension_numbers = #tpu.dot_dimension_numbers<[1], [0], [0], [1], [0, 0, 1, 1], [], []>} : vector<8x8xbf16>, vector<8x8xbf16>, vector<8x8xf32> -> vector<8x8xf32>
    %429 = arith.truncf %428 : vector<8x8xf32> to vector<8x8xbf16>
    %430 = vector.extract_strided_slice %303 {offsets = [24, 0], sizes = [8, 32], strides = [1, 1]} : vector<32x32xbf16> to vector<8x32xbf16>
    %cst_130 = arith.constant dense<0.000000e+00> : vector<8x32xf32>
    %431 = tpu.matmul %429, %430, %cst_130 {dimension_numbers = #tpu.dot_dimension_numbers<[1], [0], [0], [1], [0, 0, 1, 1], [], []>} : vector<8x8xbf16>, vector<8x32xbf16>, vector<8x32xf32> -> vector<8x32xf32>
    %432 = arith.addf %409, %431 : vector<8x32xf32>
    %433 = vector.extract_strided_slice %339 {offsets = [8, 0], sizes = [8, 96], strides = [1, 1]} : vector<16x96xf32> to vector<8x96xf32>
    %434 = arith.truncf %433 : vector<8x96xf32> to vector<8x96xbf16>
    %435 = vector.extract_strided_slice %434 {offsets = [0, 0], sizes = [8, 8], strides = [1, 1]} : vector<8x96xbf16> to vector<8x8xbf16>
    %436 = vector.extract_strided_slice %434 {offsets = [0, 32], sizes = [8, 8], strides = [1, 1]} : vector<8x96xbf16> to vector<8x8xbf16>
    %437 = vector.extract_strided_slice %434 {offsets = [0, 64], sizes = [8, 8], strides = [1, 1]} : vector<8x96xbf16> to vector<8x8xbf16>
    %cst_131 = arith.constant dense<0.000000e+00> : vector<8x8xf32>
    %438 = tpu.matmul %435, %436, %cst_131 {dimension_numbers = #tpu.dot_dimension_numbers<[1], [1], [0], [0], [0, 0, 1, 0], [], []>} : vector<8x8xbf16>, vector<8x8xbf16>, vector<8x8xf32> -> vector<8x8xf32>
    %cst_132 = arith.constant 0.353553385 : f32
    %439 = vector.broadcast %cst_132 : f32 to vector<8x8xf32>
    %440 = arith.mulf %438, %439 : vector<8x8xf32>
    %441 = arith.addf %440, %5 : vector<8x8xf32>
    %cst_133 = arith.constant dense<0xFF800000> : vector<8xf32>
    %442 = vector.multi_reduction <maximumf>, %441, %cst_133 [1] : vector<8x8xf32> to vector<8xf32>
    %443 = vector.shape_cast %442 : vector<8xf32> to vector<8x1xf32>
    %444 = vector.broadcast %443 : vector<8x1xf32> to vector<8x8xf32>
    %445 = arith.subf %441, %444 : vector<8x8xf32>
    %446 = math.exp %445 : vector<8x8xf32>
    %cst_134 = arith.constant dense<0.000000e+00> : vector<8xf32>
    %447 = vector.multi_reduction <add>, %446, %cst_134 [1] : vector<8x8xf32> to vector<8xf32>
    %448 = vector.shape_cast %447 : vector<8xf32> to vector<8x1xf32>
    %449 = tpu.reciprocal %448 {approx = true} : vector<8x1xf32> -> vector<8x1xf32>
    %450 = vector.broadcast %449 : vector<8x1xf32> to vector<8x8xf32>
    %451 = arith.mulf %446, %450 : vector<8x8xf32>
    %452 = arith.truncf %451 : vector<8x8xf32> to vector<8x8xbf16>
    %cst_135 = arith.constant dense<0.000000e+00> : vector<8x8xf32>
    %453 = tpu.matmul %452, %437, %cst_135 {dimension_numbers = #tpu.dot_dimension_numbers<[1], [0], [0], [1], [0, 0, 1, 1], [], []>} : vector<8x8xbf16>, vector<8x8xbf16>, vector<8x8xf32> -> vector<8x8xf32>
    %454 = arith.truncf %453 : vector<8x8xf32> to vector<8x8xbf16>
    %455 = vector.extract_strided_slice %303 {offsets = [0, 0], sizes = [8, 32], strides = [1, 1]} : vector<32x32xbf16> to vector<8x32xbf16>
    %cst_136 = arith.constant dense<0.000000e+00> : vector<8x32xf32>
    %456 = tpu.matmul %454, %455, %cst_136 {dimension_numbers = #tpu.dot_dimension_numbers<[1], [0], [0], [1], [0, 0, 1, 1], [], []>} : vector<8x8xbf16>, vector<8x32xbf16>, vector<8x32xf32> -> vector<8x32xf32>
    %457 = vector.extract_strided_slice %434 {offsets = [0, 8], sizes = [8, 8], strides = [1, 1]} : vector<8x96xbf16> to vector<8x8xbf16>
    %458 = vector.extract_strided_slice %434 {offsets = [0, 40], sizes = [8, 8], strides = [1, 1]} : vector<8x96xbf16> to vector<8x8xbf16>
    %459 = vector.extract_strided_slice %434 {offsets = [0, 72], sizes = [8, 8], strides = [1, 1]} : vector<8x96xbf16> to vector<8x8xbf16>
    %cst_137 = arith.constant dense<0.000000e+00> : vector<8x8xf32>
    %460 = tpu.matmul %457, %458, %cst_137 {dimension_numbers = #tpu.dot_dimension_numbers<[1], [1], [0], [0], [0, 0, 1, 0], [], []>} : vector<8x8xbf16>, vector<8x8xbf16>, vector<8x8xf32> -> vector<8x8xf32>
    %cst_138 = arith.constant 0.353553385 : f32
    %461 = vector.broadcast %cst_138 : f32 to vector<8x8xf32>
    %462 = arith.mulf %460, %461 : vector<8x8xf32>
    %463 = arith.addf %462, %5 : vector<8x8xf32>
    %cst_139 = arith.constant dense<0xFF800000> : vector<8xf32>
    %464 = vector.multi_reduction <maximumf>, %463, %cst_139 [1] : vector<8x8xf32> to vector<8xf32>
    %465 = vector.shape_cast %464 : vector<8xf32> to vector<8x1xf32>
    %466 = vector.broadcast %465 : vector<8x1xf32> to vector<8x8xf32>
    %467 = arith.subf %463, %466 : vector<8x8xf32>
    %468 = math.exp %467 : vector<8x8xf32>
    %cst_140 = arith.constant dense<0.000000e+00> : vector<8xf32>
    %469 = vector.multi_reduction <add>, %468, %cst_140 [1] : vector<8x8xf32> to vector<8xf32>
    %470 = vector.shape_cast %469 : vector<8xf32> to vector<8x1xf32>
    %471 = tpu.reciprocal %470 {approx = true} : vector<8x1xf32> -> vector<8x1xf32>
    %472 = vector.broadcast %471 : vector<8x1xf32> to vector<8x8xf32>
    %473 = arith.mulf %468, %472 : vector<8x8xf32>
    %474 = arith.truncf %473 : vector<8x8xf32> to vector<8x8xbf16>
    %cst_141 = arith.constant dense<0.000000e+00> : vector<8x8xf32>
    %475 = tpu.matmul %474, %459, %cst_141 {dimension_numbers = #tpu.dot_dimension_numbers<[1], [0], [0], [1], [0, 0, 1, 1], [], []>} : vector<8x8xbf16>, vector<8x8xbf16>, vector<8x8xf32> -> vector<8x8xf32>
    %476 = arith.truncf %475 : vector<8x8xf32> to vector<8x8xbf16>
    %477 = vector.extract_strided_slice %303 {offsets = [8, 0], sizes = [8, 32], strides = [1, 1]} : vector<32x32xbf16> to vector<8x32xbf16>
    %cst_142 = arith.constant dense<0.000000e+00> : vector<8x32xf32>
    %478 = tpu.matmul %476, %477, %cst_142 {dimension_numbers = #tpu.dot_dimension_numbers<[1], [0], [0], [1], [0, 0, 1, 1], [], []>} : vector<8x8xbf16>, vector<8x32xbf16>, vector<8x32xf32> -> vector<8x32xf32>
    %479 = arith.addf %456, %478 : vector<8x32xf32>
    %480 = vector.extract_strided_slice %434 {offsets = [0, 16], sizes = [8, 8], strides = [1, 1]} : vector<8x96xbf16> to vector<8x8xbf16>
    %481 = vector.extract_strided_slice %434 {offsets = [0, 48], sizes = [8, 8], strides = [1, 1]} : vector<8x96xbf16> to vector<8x8xbf16>
    %482 = vector.extract_strided_slice %434 {offsets = [0, 80], sizes = [8, 8], strides = [1, 1]} : vector<8x96xbf16> to vector<8x8xbf16>
    %cst_143 = arith.constant dense<0.000000e+00> : vector<8x8xf32>
    %483 = tpu.matmul %480, %481, %cst_143 {dimension_numbers = #tpu.dot_dimension_numbers<[1], [1], [0], [0], [0, 0, 1, 0], [], []>} : vector<8x8xbf16>, vector<8x8xbf16>, vector<8x8xf32> -> vector<8x8xf32>
    %cst_144 = arith.constant 0.353553385 : f32
    %484 = vector.broadcast %cst_144 : f32 to vector<8x8xf32>
    %485 = arith.mulf %483, %484 : vector<8x8xf32>
    %486 = arith.addf %485, %5 : vector<8x8xf32>
    %cst_145 = arith.constant dense<0xFF800000> : vector<8xf32>
    %487 = vector.multi_reduction <maximumf>, %486, %cst_145 [1] : vector<8x8xf32> to vector<8xf32>
    %488 = vector.shape_cast %487 : vector<8xf32> to vector<8x1xf32>
    %489 = vector.broadcast %488 : vector<8x1xf32> to vector<8x8xf32>
    %490 = arith.subf %486, %489 : vector<8x8xf32>
    %491 = math.exp %490 : vector<8x8xf32>
    %cst_146 = arith.constant dense<0.000000e+00> : vector<8xf32>
    %492 = vector.multi_reduction <add>, %491, %cst_146 [1] : vector<8x8xf32> to vector<8xf32>
    %493 = vector.shape_cast %492 : vector<8xf32> to vector<8x1xf32>
    %494 = tpu.reciprocal %493 {approx = true} : vector<8x1xf32> -> vector<8x1xf32>
    %495 = vector.broadcast %494 : vector<8x1xf32> to vector<8x8xf32>
    %496 = arith.mulf %491, %495 : vector<8x8xf32>
    %497 = arith.truncf %496 : vector<8x8xf32> to vector<8x8xbf16>
    %cst_147 = arith.constant dense<0.000000e+00> : vector<8x8xf32>
    %498 = tpu.matmul %497, %482, %cst_147 {dimension_numbers = #tpu.dot_dimension_numbers<[1], [0], [0], [1], [0, 0, 1, 1], [], []>} : vector<8x8xbf16>, vector<8x8xbf16>, vector<8x8xf32> -> vector<8x8xf32>
    %499 = arith.truncf %498 : vector<8x8xf32> to vector<8x8xbf16>
    %500 = vector.extract_strided_slice %303 {offsets = [16, 0], sizes = [8, 32], strides = [1, 1]} : vector<32x32xbf16> to vector<8x32xbf16>
    %cst_148 = arith.constant dense<0.000000e+00> : vector<8x32xf32>
    %501 = tpu.matmul %499, %500, %cst_148 {dimension_numbers = #tpu.dot_dimension_numbers<[1], [0], [0], [1], [0, 0, 1, 1], [], []>} : vector<8x8xbf16>, vector<8x32xbf16>, vector<8x32xf32> -> vector<8x32xf32>
    %502 = arith.addf %479, %501 : vector<8x32xf32>
    %503 = vector.extract_strided_slice %434 {offsets = [0, 24], sizes = [8, 8], strides = [1, 1]} : vector<8x96xbf16> to vector<8x8xbf16>
    %504 = vector.extract_strided_slice %434 {offsets = [0, 56], sizes = [8, 8], strides = [1, 1]} : vector<8x96xbf16> to vector<8x8xbf16>
    %505 = vector.extract_strided_slice %434 {offsets = [0, 88], sizes = [8, 8], strides = [1, 1]} : vector<8x96xbf16> to vector<8x8xbf16>
    %cst_149 = arith.constant dense<0.000000e+00> : vector<8x8xf32>
    %506 = tpu.matmul %503, %504, %cst_149 {dimension_numbers = #tpu.dot_dimension_numbers<[1], [1], [0], [0], [0, 0, 1, 0], [], []>} : vector<8x8xbf16>, vector<8x8xbf16>, vector<8x8xf32> -> vector<8x8xf32>
    %cst_150 = arith.constant 0.353553385 : f32
    %507 = vector.broadcast %cst_150 : f32 to vector<8x8xf32>
    %508 = arith.mulf %506, %507 : vector<8x8xf32>
    %509 = arith.addf %508, %5 : vector<8x8xf32>
    %cst_151 = arith.constant dense<0xFF800000> : vector<8xf32>
    %510 = vector.multi_reduction <maximumf>, %509, %cst_151 [1] : vector<8x8xf32> to vector<8xf32>
    %511 = vector.shape_cast %510 : vector<8xf32> to vector<8x1xf32>
    %512 = vector.broadcast %511 : vector<8x1xf32> to vector<8x8xf32>
    %513 = arith.subf %509, %512 : vector<8x8xf32>
    %514 = math.exp %513 : vector<8x8xf32>
    %cst_152 = arith.constant dense<0.000000e+00> : vector<8xf32>
    %515 = vector.multi_reduction <add>, %514, %cst_152 [1] : vector<8x8xf32> to vector<8xf32>
    %516 = vector.shape_cast %515 : vector<8xf32> to vector<8x1xf32>
    %517 = tpu.reciprocal %516 {approx = true} : vector<8x1xf32> -> vector<8x1xf32>
    %518 = vector.broadcast %517 : vector<8x1xf32> to vector<8x8xf32>
    %519 = arith.mulf %514, %518 : vector<8x8xf32>
    %520 = arith.truncf %519 : vector<8x8xf32> to vector<8x8xbf16>
    %cst_153 = arith.constant dense<0.000000e+00> : vector<8x8xf32>
    %521 = tpu.matmul %520, %505, %cst_153 {dimension_numbers = #tpu.dot_dimension_numbers<[1], [0], [0], [1], [0, 0, 1, 1], [], []>} : vector<8x8xbf16>, vector<8x8xbf16>, vector<8x8xf32> -> vector<8x8xf32>
    %522 = arith.truncf %521 : vector<8x8xf32> to vector<8x8xbf16>
    %523 = vector.extract_strided_slice %303 {offsets = [24, 0], sizes = [8, 32], strides = [1, 1]} : vector<32x32xbf16> to vector<8x32xbf16>
    %cst_154 = arith.constant dense<0.000000e+00> : vector<8x32xf32>
    %524 = tpu.matmul %522, %523, %cst_154 {dimension_numbers = #tpu.dot_dimension_numbers<[1], [0], [0], [1], [0, 0, 1, 1], [], []>} : vector<8x8xbf16>, vector<8x32xbf16>, vector<8x32xf32> -> vector<8x32xf32>
    %525 = arith.addf %502, %524 : vector<8x32xf32>
    %526 = tpu.concatenate %432, %525 in 0 : vector<8x32xf32>, vector<8x32xf32> -> vector<16x32xf32>
    %527 = arith.addf %301, %526 : vector<16x32xf32>
    %528 = vector.broadcast %309 : vector<1x32xf32> to vector<16x32xf32>
    %529 = arith.addf %527, %528 : vector<16x32xf32>
    %cst_155 = arith.constant dense<0.000000e+00> : vector<16xf32>
    %530 = vector.multi_reduction <add>, %529, %cst_155 [1] : vector<16x32xf32> to vector<16xf32>
    %531 = vector.shape_cast %530 : vector<16xf32> to vector<16x1xf32>
    %cst_156 = arith.constant 3.200000e+01 : f32
    %532 = vector.broadcast %cst_156 : f32 to vector<16x1xf32>
    %533 = arith.divf %531, %532 : vector<16x1xf32>
    %534 = vector.broadcast %533 : vector<16x1xf32> to vector<16x32xf32>
    %535 = arith.subf %529, %534 : vector<16x32xf32>
    %536 = arith.mulf %535, %535 : vector<16x32xf32>
    %cst_157 = arith.constant dense<0.000000e+00> : vector<16xf32>
    %537 = vector.multi_reduction <add>, %536, %cst_157 [1] : vector<16x32xf32> to vector<16xf32>
    %538 = vector.shape_cast %537 : vector<16xf32> to vector<16x1xf32>
    %cst_158 = arith.constant 3.200000e+01 : f32
    %539 = vector.broadcast %cst_158 : f32 to vector<16x1xf32>
    %540 = arith.divf %538, %539 : vector<16x1xf32>
    %541 = vector.broadcast %533 : vector<16x1xf32> to vector<16x32xf32>
    %542 = arith.subf %529, %541 : vector<16x32xf32>
    %cst_159 = arith.constant 9.99999974E-6 : f32
    %543 = vector.broadcast %cst_159 : f32 to vector<16x1xf32>
    %544 = arith.addf %540, %543 : vector<16x1xf32>
    %545 = math.rsqrt %544 : vector<16x1xf32>
    %546 = vector.broadcast %545 : vector<16x1xf32> to vector<16x32xf32>
    %547 = arith.mulf %542, %546 : vector<16x32xf32>
    %548 = vector.broadcast %310 : vector<1x32xf32> to vector<16x32xf32>
    %549 = arith.mulf %547, %548 : vector<16x32xf32>
    %550 = vector.broadcast %311 : vector<1x32xf32> to vector<16x32xf32>
    %551 = arith.addf %549, %550 : vector<16x32xf32>
    %552 = arith.truncf %551 : vector<16x32xf32> to vector<16x32xbf16>
    %cst_160 = arith.constant dense<0.000000e+00> : vector<16x128xf32>
    %553 = tpu.matmul %552, %304, %cst_160 {dimension_numbers = #tpu.dot_dimension_numbers<[1], [0], [0], [1], [0, 0, 1, 1], [], []>} : vector<16x32xbf16>, vector<32x128xbf16>, vector<16x128xf32> -> vector<16x128xf32>
    %554 = vector.broadcast %312 : vector<1x128xf32> to vector<16x128xf32>
    %555 = arith.addf %553, %554 : vector<16x128xf32>
    %cst_161 = arith.constant -1.702000e+00 : f32
    %556 = vector.broadcast %cst_161 : f32 to vector<16x128xf32>
    %557 = arith.mulf %556, %555 : vector<16x128xf32>
    %558 = math.exp %557 : vector<16x128xf32>
    %cst_162 = arith.constant 1.000000e+00 : f32
    %559 = vector.broadcast %cst_162 : f32 to vector<16x128xf32>
    %560 = arith.addf %559, %558 : vector<16x128xf32>
    %561 = tpu.reciprocal %560 {approx = true} : vector<16x128xf32> -> vector<16x128xf32>
    %562 = arith.mulf %555, %561 : vector<16x128xf32>
    %563 = arith.truncf %562 : vector<16x128xf32> to vector<16x128xbf16>
    %cst_163 = arith.constant dense<0.000000e+00> : vector<16x32xf32>
    %564 = tpu.matmul %563, %305, %cst_163 {dimension_numbers = #tpu.dot_dimension_numbers<[1], [0], [0], [1], [0, 0, 1, 1], [], []>} : vector<16x128xbf16>, vector<128x32xbf16>, vector<16x32xf32> -> vector<16x32xf32>
    %565 = vector.broadcast %313 : vector<1x32xf32> to vector<16x32xf32>
    %566 = arith.addf %564, %565 : vector<16x32xf32>
    %567 = arith.addf %529, %566 : vector<16x32xf32>
    %568 = vector.extract_strided_slice %567 {offsets = [0, 0], sizes = [1, 32], strides = [1, 1]} : vector<16x32xf32> to vector<1x32xf32>
    %569 = vector.extract_strided_slice %567 {offsets = [8, 0], sizes = [1, 32], strides = [1, 1]} : vector<16x32xf32> to vector<1x32xf32>
    %570 = tpu.concatenate %568, %569 in 0 : vector<1x32xf32>, vector<1x32xf32> -> vector<2x32xf32>
    %c10 = arith.constant 10 : index
    %c0_164 = arith.constant 0 : index
    %571 = vector.load %arg2[%c10, %c0_164] : memref<32x128xf32, #tpu.memory_space<vmem>>, vector<1x32xf32>
    %c11 = arith.constant 11 : index
    %c0_165 = arith.constant 0 : index
    %572 = vector.load %arg2[%c11, %c0_165] : memref<32x128xf32, #tpu.memory_space<vmem>>, vector<1x32xf32>
    %cst_166 = arith.constant dense<0.000000e+00> : vector<2xf32>
    %573 = vector.multi_reduction <add>, %570, %cst_166 [1] : vector<2x32xf32> to vector<2xf32>
    %574 = vector.shape_cast %573 : vector<2xf32> to vector<2x1xf32>
    %cst_167 = arith.constant 3.200000e+01 : f32
    %575 = vector.broadcast %cst_167 : f32 to vector<2x1xf32>
    %576 = arith.divf %574, %575 : vector<2x1xf32>
    %577 = vector.broadcast %576 : vector<2x1xf32> to vector<2x32xf32>
    %578 = arith.subf %570, %577 : vector<2x32xf32>
    %579 = arith.mulf %578, %578 : vector<2x32xf32>
    %cst_168 = arith.constant dense<0.000000e+00> : vector<2xf32>
    %580 = vector.multi_reduction <add>, %579, %cst_168 [1] : vector<2x32xf32> to vector<2xf32>
    %581 = vector.shape_cast %580 : vector<2xf32> to vector<2x1xf32>
    %cst_169 = arith.constant 3.200000e+01 : f32
    %582 = vector.broadcast %cst_169 : f32 to vector<2x1xf32>
    %583 = arith.divf %581, %582 : vector<2x1xf32>
    %584 = vector.broadcast %576 : vector<2x1xf32> to vector<2x32xf32>
    %585 = arith.subf %570, %584 : vector<2x32xf32>
    %cst_170 = arith.constant 9.99999974E-6 : f32
    %586 = vector.broadcast %cst_170 : f32 to vector<2x1xf32>
    %587 = arith.addf %583, %586 : vector<2x1xf32>
    %588 = math.rsqrt %587 : vector<2x1xf32>
    %589 = vector.broadcast %588 : vector<2x1xf32> to vector<2x32xf32>
    %590 = arith.mulf %585, %589 : vector<2x32xf32>
    %591 = vector.broadcast %571 : vector<1x32xf32> to vector<2x32xf32>
    %592 = arith.mulf %590, %591 : vector<2x32xf32>
    %593 = vector.broadcast %572 : vector<1x32xf32> to vector<2x32xf32>
    %594 = arith.addf %592, %593 : vector<2x32xf32>
    %c192 = arith.constant 192 : index
    %c0_171 = arith.constant 0 : index
    %595 = vector.load %arg1[%c192, %c0_171] : memref<672x128xbf16, #tpu.memory_space<vmem>>, vector<32x16xbf16>
    %596 = arith.truncf %594 : vector<2x32xf32> to vector<2x32xbf16>
    %cst_172 = arith.constant dense<0.000000e+00> : vector<2x16xf32>
    %597 = tpu.matmul %596, %595, %cst_172 {dimension_numbers = #tpu.dot_dimension_numbers<[1], [0], [0], [1], [0, 0, 1, 1], [], []>} : vector<2x32xbf16>, vector<32x16xbf16>, vector<2x16xf32> -> vector<2x16xf32>
    %c0_173 = arith.constant 0 : index
    %c0_174 = arith.constant 0 : index
    %598 = vector.load %arg3[%c0_173, %c0_174] : memref<2x16xf32, #tpu.memory_space<vmem>>, vector<2x16xf32>
    tpu.vector_store %arg3[%c0_173, %c0_174], %597 {strides = array<i32>} : memref<2x16xf32, #tpu.memory_space<vmem>>, vector<2x16xf32>,
    return
  }
}

</mosaic_0001>

<bundles_post_ra>
// kernel: encode_image.1
= control target key start
LH: loop header
LB: loop body
LE: loop exit
PB: predicated region body
PF: predicated region fallthrough
CT: control target
= control target key end

     0   :  { %s3165_s0 = inlined_call_operand.vmem [shape: bf16[16,192], index: 0, kind: input, shape index: {}]   ;;  %s3166_s1 = inlined_call_operand.vmem [shape: bf16[672,128], index: 1, kind: input, shape index: {}]   ;;  %s3167_s2 = inlined_call_operand.vmem [shape: f32[32,128], index: 2, kind: input, shape index: {}]   ;;  %s3168_s3 = inlined_call_operand.hbm [shape: f32[2,16], index: 3, kind: output, shape index: {}]  }
   0x1   :  { %v2330_v0 = vld [vmem:[%s3166_s1 + $0x38] sm:$0xff]  ;;  %v2329_v2 = vld [vmem:[%s3166_s1 + $0x30] sm:$0xff]  ;;  %v2328_v4 = vld [vmem:[%s3166_s1 + $0x28] sm:$0xff] }
   0x2   :  { %v2334_v1 = vld [vmem:[%s3166_s1 + $0x58] sm:$0xff]  ;;  %132 = vmatpush.bf16.msra.mxu0 %v2330_v0  ;;  %v2333_v3 = vld [vmem:[%s3166_s1 + $0x50] sm:$0xff]  ;;  %v2332_v5 = vld [vmem:[%s3166_s1 + $0x48] sm:$0xff] }
   0x3   :  { %150 = vmatpush.bf16.msra.mxu1 %v2334_v1  ;;  %v2327_v6 = vld [vmem:[%s3166_s1 + $0x20] sm:$0xff]  ;;  %v2113_v9 = vld [vmem:[%s3165_s0 + $0x8] sm:$0xf0] }
   0x4   :  { %v2331_v7 = vld [vmem:[%s3166_s1 + $0x40] sm:$0xff] }
   0x5   :  { %v2335_v8 = vld [vmem:[%s3165_s0 + $0x4] sm:$0xf] }
   0x6   :  { %133 = vmatpush.bf16.msra.mxu0 %v2329_v2 }
   0x7   :  { %151 = vmatpush.bf16.msra.mxu1 %v2333_v3 }
   0xa   :  { %134 = vmatpush.bf16.msra.mxu0 %v2328_v4 }
   0xb   :  { %152 = vmatpush.bf16.msra.mxu1 %v2332_v5 }
   0xc   :  { %8 = vsyncpa [#allocation3], 0  ;;  %v2326_v10 = vld [vmem:[%s3166_s1 + $0x18] sm:$0xff]  ;;  %v2116_v11 = vor.u32 %v2335_v8, %v2113_v9  ;;  %vm128_vm0 = vcmask 523264   ;;  %v2325_v12 = vld [vmem:[%s3166_s1 + $0x10] sm:$0xff]  ;;  %vm162_vm1 = vcmask 261120  }
   0xd   :  { %v2324_v13 = vld [vmem:[%s3166_s1 + $0x8] sm:$0xff]  ;;  %v2323_v14 = vld [vmem:[%s3166_s1] sm:$0xff]  ;;  %v2527_v29 = vmov 32.0   ;;  %s2528_s5 = smov 80   ;;  %s2529_s6 = smov 120   ;;  %vm343_vm15 = vcmask 64512  }
   0xe   :  { %135 = vmatpush.bf16.msra.mxu0 %v2327_v6  ;;  %v2111_v15 = vld [vmem:[%s3165_s0] sm:$0xf]  ;;  %v2336_v16 = vld [vmem:[%s3165_s0 + $0x4] sm:$0xf0]  ;;  %2397 = vrcp.f32 %v2527_v29  ;;  %s2530_s7 = smov 88   ;;  %s2531_s8 = smov 96  }
   0xf   :  { %153 = vmatpush.bf16.msra.mxu1 %v2331_v7  ;;  %v2112_v17 = vor.u32 %v2336_v16, %v2111_v15  ;;  %v44_v18 = vld [vmem:[%s3167_s2] sm:$0xff]  ;;  %v2377_v60 = vld [vmem:[%s3167_s2 + $0x8] ss:$0 sm:$0xff]  ;;  %v2378_v0 = vld [vmem:[%s3167_s2 + $0x9] ss:$0 sm:$0xff]  ;;  %s2532_s9 = smov 112  }
  0x10   :  { %s2534_s10 = smov 56   ;;  %s2535_s11 = smov 64  }
  0x11   :  { %s2536_s12 = smov 104   ;;  %s2537_s13 = smov 48  }
  0x12   :  { %136 = vmatpush.bf16.msra.mxu0 %v2326_v10  ;;  %2165 = vmatmul.msk.bf16.vlgmr.msra.gmra.mxu1 %vm128_vm0, %v2116_v11  ;;  %s2538_s14 = smov 72   ;;  %s2539_s20 = smov 40  }
  0x13   :  { %s2540_s18 = smov [#allocation2]   ;;  %s2100_s22 = sshll.u32 %s3168_s3, 4  ;;  %s2101_s22 = int_to_ptr.hbm [resolvable:$true] %s2100_s22 }
  0x14   :  { %v2398_v30 = vpop.eup %2397  ;;  %s2098_s0 = sshll.u32 %s2540_s18, 4  ;;  %s2099_s0 = int_to_ptr.vmem [resolvable:$true] %s2098_s0 }
  0x15   :  { %v170_v31 = vmul.f32 32.0, %v2398_v30  ;;  %vm174_vm2 = vweird.f32 %v2398_v30 }
  0x16   :  { %137 = vmatpush.bf16.msra.mxu0 %v2325_v12 }
  0x17   :  { %v171_v32 = vsub.f32 1.0, %v170_v31 }
  0x19   :  { %v172_v33 = vmul.f32 %v2398_v30, %v171_v32 }
  0x1a   :  { %138 = vmatpush.bf16.msra.mxu0 %v2324_v13 }
  0x1b   :  { %v173_v34 = vadd.f32 %v2398_v30, %v172_v33 }
  0x1d   :  { %v2614_v35 = vsel %vm174_vm2, %v2398_v30, %v173_v34  ;;  %vm382_vm2 = vcmask 1043456  }
  0x1e   :  { %139 = vmatpush.bf16.msra.mxu0 %v2323_v14 }
  0x21   :  { %140 = vmatmul.bf16.vlgmr.msra.gmra.mxu0 %v2112_v17 }
  0x8f   :  { %v155_v19 = vpop.f32.mrf.mxu1 }
  0x97   :  { %v157_v26 = vpop.f32.mrf.mxu1 }
  0x9e   :  { %v141_v20 = vpop.f32.mrf.mxu0 }
  0x9f   :  { %v142_v21 = vadd.f32 %v141_v20, %v44_v18 }
  0xa1   :  { %v156_v22 = vadd.f32 %v155_v19, %v142_v21 }
  0xa3   :  { %v163_v23 = vsel %vm162_vm1, %v156_v22, 0.0 }
  0xa4   :  { %164 = vadd.xlane.f32.xlu0 %v163_v23 }
  0xa6   :  { %v143_v24 = vpop.f32.mrf.mxu0 }
  0xa7   :  { %v144_v25 = vadd.f32 %v143_v24, %v44_v18  ;;  %v2337_v24 = vld [vmem:[%s3166_s1 + $0x70] sm:$0xff] }
  0xa9   :  { %v158_v27 = vadd.f32 %v157_v26, %v144_v25 }
  0xab   :  { %v166_v28 = vsel %vm162_vm1, %v158_v27, 0.0 }
  0xac   :  { %167 = vadd.xlane.f32.xlu0 %v166_v28 }
 0x117   :  { %v165_v36 = vpop.xlane.xlu0 %164 }
 0x118   :  { %v176_v37 = vmul.f32 %v2614_v35, %v165_v36 }
 0x11a   :  { %v178_v38 = vsub.f32 %v156_v22, %v176_v37  ;;  %v2338_v22 = vld [vmem:[%s3166_s1 + $0x78] sm:$0xff] }
 0x11b   :  { %329 = vmatpush.bf16.msra.mxu2 %v2338_v22 }
 0x11c   :  { %v180_v39 = vmul.f32 %v178_v38, %v178_v38 }
 0x11e   :  { %v182_v40 = vsel %vm162_vm1, %v180_v39, 0.0 }
 0x11f   :  { %183 = vadd.xlane.f32.xlu1 %v182_v40  ;;  %v168_v41 = vpop.xlane.xlu0 %167  ;;  %330 = vmatpush.bf16.msra.mxu2 %v2337_v24 }
 0x120   :  { %v177_v42 = vmul.f32 %v2614_v35, %v168_v41 }
 0x122   :  { %v179_v43 = vsub.f32 %v158_v27, %v177_v42 }
 0x124   :  { %v181_v44 = vmul.f32 %v179_v43, %v179_v43 }
 0x126   :  { %v185_v45 = vsel %vm162_vm1, %v181_v44, 0.0  ;;  %v2379_v44 = vld [vmem:[%s3167_s2 + $0x10] ss:$0 sm:$0xff] }
 0x127   :  { %186 = vadd.xlane.f32.xlu1 %v185_v45 }
 0x192   :  { %v184_v46 = vpop.xlane.xlu1 %183 }
 0x193   :  { %v188_v47 = vmul.f32 %v184_v46, %v2614_v35 }
 0x195   :  { %v190_v48 = vadd.f32 1e-05, %v188_v47 }
 0x197   :  { %2399 = vrsqrt.f32 %v190_v48  ;;  %vm198_vm4 = vweird.f32 %v190_v48 }
 0x19a   :  { %v187_v49 = vpop.xlane.xlu1 %186 }
 0x19b   :  { %v189_v50 = vmul.f32 %v187_v49, %v2614_v35  ;;  %v2380_v49 = vld [vmem:[%s3167_s2 + $0x11] ss:$0 sm:$0xff] }
 0x19d   :  { %v2400_v51 = vpop.eup %2399  ;;  %v191_v52 = vadd.f32 1e-05, %v189_v50 }
 0x19e   :  { %v193_v53 = vmul.f32 %v2400_v51, %v190_v48  ;;  %vm199_vm3 = vweird.f32 %v2400_v51 }
 0x19f   :  { %2401 = vrsqrt.f32 %v191_v52  ;;  %vm200_vm5 = vmor %vm198_vm4, %vm199_vm3  ;;  %vm208_vm7 = vweird.f32 %v191_v52 }
 0x1a0   :  { %v194_v54 = vmul.f32 %v2400_v51, %v193_v53 }
 0x1a2   :  { %v195_v55 = vmul.f32 0.5, %v194_v54  ;;  %v2660_v54 = vld [vmem:[%s3167_s2 + $0x12] ss:$0 sm:$0xff] }
 0x1a4   :  { %v196_v56 = vsub.f32 1.5, %v195_v55 }
 0x1a5   :  { %v2402_v57 = vpop.eup %2401 }
 0x1a6   :  { %v197_v58 = vmul.f32 %v2400_v51, %v196_v56  ;;  %v203_v59 = vmul.f32 %v2402_v57, %v191_v52  ;;  %vm209_vm6 = vweird.f32 %v2402_v57 }
 0x1a7   :  { %vm210_vm8 = vmor %vm208_vm7, %vm209_vm6 }
 0x1a8   :  { %v201_v61 = vsel %vm200_vm5, %v2400_v51, %v197_v58  ;;  %v204_v62 = vmul.f32 %v2402_v57, %v203_v59 }
 0x1a9   :  { %v212_v63 = vmul.f32 %v201_v61, %v178_v38 }
 0x1aa   :  { %v205_v1 = vmul.f32 0.5, %v204_v62 }
 0x1ab   :  { %v215_v2 = vmul.f32 %v2377_v60, %v212_v63 }
 0x1ac   :  { %v206_v3 = vsub.f32 1.5, %v205_v1 }
 0x1ad   :  { %v2628_v4 = vadd.f32 %v2378_v0, %v215_v2 }
 0x1ae   :  { %v207_v5 = vmul.f32 %v2402_v57, %v206_v3 }
 0x1af   :  { %v256_v6 = vsel %vm162_vm1, %v2628_v4, 0.0 }
 0x1b0   :  { %v211_v7 = vsel %vm210_vm8, %v2402_v57, %v207_v5  ;;  %257 = vadd.xlane.f32.xlu2 %v256_v6  ;;  %v16_v5 = vlaneseq }
 0x1b1   :  { %v213_v8 = vmul.f32 %v211_v7, %v179_v43 }
 0x1b2   :  { %v17_v6 = vand.u32 127, %v16_v5 }
 0x1b3   :  { %v216_v9 = vmul.f32 %v2377_v60, %v213_v8  ;;  %v2533_v8 = vmov -1e+30  }
 0x1b4   :  { %vm18_vm0 = vcmp.lt.s32.totalorder %v17_v6, 5  ;;  %v226_v6 = vld [vmem:[%s3166_s1 + $0x88] sm:$0xf] }
 0x1b5   :  { %v2632_v10 = vadd.f32 %v2378_v0, %v216_v9  ;;  %v2681_v9 = vsel %vm18_vm0, 0.0, %v2533_v8 }
 0x1b7   :  { %v259_v11 = vsel %vm162_vm1, %v2632_v10, 0.0 }
 0x1b8   :  { %260 = vadd.xlane.f32.xlu2 %v259_v11 }
 0x223   :  { %v258_v12 = vpop.xlane.xlu2 %257 }
 0x224   :  { %v262_v13 = vmul.f32 %v258_v12, %v2614_v35 }
 0x226   :  { %v264_v14 = vsub.f32 %v2628_v4, %v262_v13 }
 0x228   :  { %v266_v15 = vmul.f32 %v264_v14, %v264_v14 }
 0x22a   :  { %v268_v16 = vsel %vm162_vm1, %v266_v15, 0.0 }
 0x22b   :  { %269 = vadd.xlane.f32.xlu0 %v268_v16  ;;  %v261_v17 = vpop.xlane.xlu2 %260 }
 0x22c   :  { %v263_v18 = vmul.f32 %v261_v17, %v2614_v35 }
 0x22e   :  { %v265_v19 = vsub.f32 %v2632_v10, %v263_v18 }
 0x230   :  { %v267_v20 = vmul.f32 %v265_v19, %v265_v19 }
 0x232   :  { %v271_v21 = vsel %vm162_vm1, %v267_v20, 0.0 }
 0x233   :  { %272 = vadd.xlane.f32.xlu1 %v271_v21 }
 0x29e   :  { %v270_v23 = vpop.xlane.xlu0 %269 }
 0x29f   :  { %v274_v25 = vmul.f32 %v270_v23, %v2614_v35 }
 0x2a1   :  { %v276_v26 = vadd.f32 1e-05, %v274_v25 }
 0x2a3   :  { %2403 = vrsqrt.f32 %v276_v26  ;;  %vm284_vm10 = vweird.f32 %v276_v26 }
 0x2a6   :  { %v273_v27 = vpop.xlane.xlu1 %272 }
 0x2a7   :  { %v275_v28 = vmul.f32 %v273_v27, %v2614_v35 }
 0x2a9   :  { %v2404_v29 = vpop.eup %2403  ;;  %v277_v30 = vadd.f32 1e-05, %v275_v28 }
 0x2aa   :  { %v279_v31 = vmul.f32 %v2404_v29, %v276_v26  ;;  %vm285_vm9 = vweird.f32 %v2404_v29 }
 0x2ab   :  { %2405 = vrsqrt.f32 %v277_v30  ;;  %vm286_vm11 = vmor %vm284_vm10, %vm285_vm9  ;;  %vm294_vm13 = vweird.f32 %v277_v30 }
 0x2ac   :  { %v280_v32 = vmul.f32 %v2404_v29, %v279_v31 }
 0x2ae   :  { %v281_v33 = vmul.f32 0.5, %v280_v32 }
 0x2b0   :  { %v282_v34 = vsub.f32 1.5, %v281_v33 }
 0x2b1   :  { %v2406_v36 = vpop.eup %2405 }
 0x2b2   :  { %v283_v37 = vmul.f32 %v2404_v29, %v282_v34  ;;  %v289_v38 = vmul.f32 %v2406_v36, %v277_v30  ;;  %vm295_vm12 = vweird.f32 %v2406_v36 }
 0x2b3   :  { %vm296_vm14 = vmor %vm294_vm13, %vm295_vm12 }
 0x2b4   :  { %v290_v39 = vmul.f32 %v2406_v36, %v289_v38  ;;  %v287_v40 = vsel %vm286_vm11, %v2404_v29, %v283_v37 }
 0x2b5   :  { %v298_v43 = vmul.f32 %v287_v40, %v264_v14 }
 0x2b6   :  { %v291_v41 = vmul.f32 0.5, %v290_v39 }
 0x2b7   :  { %v301_v48 = vmul.f32 %v2379_v44, %v298_v43 }
 0x2b8   :  { %v292_v42 = vsub.f32 1.5, %v291_v41 }
 0x2b9   :  { %v304_v51 = vadd.f32 %v2380_v49, %v301_v48 }
 0x2ba   :  { %v293_v45 = vmul.f32 %v2406_v36, %v292_v42 }
 0x2bc   :  { %v297_v46 = vsel %vm296_vm14, %v2406_v36, %v293_v45 }
 0x2bd   :  { %v299_v47 = vmul.f32 %v297_v46, %v265_v19 }
 0x2bf   :  { %v302_v50 = vmul.f32 %v2379_v44, %v299_v47 }
 0x2c1   :  { %v305_v52 = vadd.f32 %v2380_v49, %v302_v50 }
 0x2c3   :  { %v306_v53 = vpack.c.bf16 %v305_v52, %v304_v51 }
 0x2c5   :  { %2174 = vmatmul.msk.bf16.vlgmr.msra.gmra.mxu2 %vm162_vm1, %v306_v53 }
 0x348   :  { %v332_v55 = vpop.f32.mrf.mxu2 }
 0x349   :  { %v333_v56 = vadd.f32 %v2660_v54, %v332_v55 }
 0x34b   :  { %v337_v57 = vpack.c.bf16 %v333_v56, %v333_v56 }
 0x34d   :  { %v339_v58 = vunpack.c.l.b16 %v337_v57 }
 0x34f   :  { %v2663_v59 = vpack.c.b16 %v339_v58, %v339_v58 }
 0x350   :  { %v334_v40 = vpop.f32.mrf.mxu2 }
 0x351   :  { %499 = vrot.lane.b32.xlu1 %v2663_v59, %s2528_s5  ;;  %400 = vrot.lane.b32.xlu0 %v2663_v59, %s2529_s6  ;;  %v335_v41 = vadd.f32 %v2660_v54, %v334_v40 }
 0x352   :  { %402 = vrot.lane.b32.xlu2 %v2663_v59, %s2530_s7 }
 0x353   :  { %v655_v42 = vpack.c.bf16 %v335_v41, %v335_v41 }
 0x355   :  { %v657_v43 = vunpack.c.l.b16 %v655_v42 }
 0x357   :  { %v2702_v44 = vpack.c.b16 %v657_v43, %v657_v43 }
 0x359   :  { %341 = vrot.lane.b32.xlu0 %v2663_v59, %s2531_s8 }
 0x35a   :  { %497 = vrot.lane.b32.xlu2 %v2663_v59, %s2532_s9 }
 0x3ac   :  { %v403_v60 = vpop.permute.xlu2 %402 }
 0x3ad   :  { %v408_v61 = vsel %vm343_vm15, %v403_v60, 0 }
 0x3ae   :  { %417 = vmatpush.bf16.xpose.msra.mxu3 %v408_v61  ;;  %v225_v61 = vld [vmem:[%s3166_s1 + $0x84] sm:$0xf] }
 0x3b4   :  { %v498_v1 = vpop.permute.xlu2 %497 }
 0x3c3   :  { %v500_v62 = vpop.permute.xlu1 %499  ;;  %v401_v63 = vpop.permute.xlu0 %400 }
 0x3c4   :  { %2177 = vmatmul.msk.bf16.vlgmr.msra.gmra.mxu3 %vm343_vm15, %v401_v63  ;;  %v505_v0 = vsel %vm343_vm15, %v500_v62, 0  ;;  %v463_v62 = vsel %vm382_vm2, %v225_v61, 0  ;;  %v224_v63 = vld [vmem:[%s3166_s1 + $0x80] sm:$0xf] }
 0x3c5   :  { %514 = vmatpush.bf16.xpose.msrb.mxu0 %v505_v0  ;;  %v482_v0 = vsel %vm382_vm2, %v224_v63, 0 }
 0x3c6   :  { %491 = vmatpush.bf16.msrb.mxu3 %v482_v0 }
 0x3cb   :  { %v342_v2 = vpop.permute.xlu0 %341 }
 0x3cc   :  { %2181 = vmatmul.msk.bf16.vlgmr.msrb.gmra.mxu0 %vm343_vm15, %v498_v1  ;;  %v348_v3 = vsel %vm343_vm15, %v342_v2, 0 }
 0x3cd   :  { %357 = vmatpush.bf16.xpose.msrb.mxu1 %v348_v3 }
 0x3d4   :  { %2175 = vmatmul.msk.bf16.vlgmr.msrb.gmra.mxu1 %vm343_vm15, %v337_v57 }
 0x447   :  { %v419_v7 = vpop.f32.mrf.mxu3 }
 0x448   :  { %v423_v11 = vmul.f32 0.35355338, %v419_v7 }
 0x449   :  { %v516_v12 = vpop.f32.mrf.mxu0 }
 0x44a   :  { %v520_v13 = vmul.f32 0.35355338, %v516_v12  ;;  %v424_v14 = vadd.f32 %v423_v11, %v2681_v9  ;;  %v560_v11 = vsel %vm382_vm2, %v226_v6, 0 }
 0x44c   :  { %v425_v15 = vsel %vm343_vm15, %v424_v14, -inf  ;;  %v521_v16 = vadd.f32 %v520_v13, %v2681_v9 }
 0x44d   :  { %426 = vmax.xlane.f32.xlu2 %v425_v15 }
 0x44e   :  { %v522_v17 = vsel %vm343_vm15, %v521_v16, -inf }
 0x44f   :  { %v421_v18 = vpop.f32.mrf.mxu3  ;;  %523 = vmax.xlane.f32.xlu1 %v522_v17 }
 0x451   :  { %v359_v19 = vpop.f32.mrf.mxu1  ;;  %v518_v20 = vpop.f32.mrf.mxu0 }
 0x452   :  { %v363_v33 = vmul.f32 0.35355338, %v359_v19 }
 0x454   :  { %v364_v38 = vadd.f32 %v363_v33, %v2681_v9 }
 0x456   :  { %v365_v39 = vsel %vm343_vm15, %v364_v38, -inf }
 0x459   :  { %v361_v21 = vpop.f32.mrf.mxu1 }
 0x465   :  { %437 = vrot.lane.b32.xlu2 %v2663_v59, %s2534_s10 }
 0x46d   :  { %377 = vrot.lane.b32.xlu2 %v2663_v59, %s2535_s11 }
 0x475   :  { %576 = vrot.lane.b32.xlu2 %v2663_v59, %s2536_s12 }
 0x4c0   :  { %v427_v22 = vpop.xlane.xlu2 %426 }
 0x4c1   :  { %v428_v23 = vsub.f32 %v424_v14, %v427_v22 }
 0x4c2   :  { %v524_v24 = vpop.xlane.xlu1 %523 }
 0x4c3   :  { %v429_v25 = vmul.f32 1.442695, %v428_v23  ;;  %v525_v26 = vsub.f32 %v521_v16, %v524_v24 }
 0x4c5   :  { %2407 = vpow2.f32 %v429_v25  ;;  %v526_v27 = vmul.f32 1.442695, %v525_v26 }
 0x4c7   :  { %2409 = vpow2.f32 %v526_v27 }
 0x4c8   :  { %v438_v28 = vpop.permute.xlu2 %437 }
 0x4c9   :  { %v443_v29 = vsel %vm382_vm2, %v438_v28, 0 }
 0x4ca   :  { %452 = vmatpush.bf16.msra.mxu1 %v443_v29 }
 0x4cb   :  { %v2408_v30 = vpop.eup %2407 }
 0x4cc   :  { %v431_v31 = vsel %vm343_vm15, %v2408_v30, 0.0 }
 0x4cd   :  { %v2410_v32 = vpop.eup %2409  ;;  %432 = vadd.xlane.f32.xlu0 %v431_v31 }
 0x4ce   :  { %v528_v34 = vsel %vm343_vm15, %v2410_v32, 0.0 }
 0x4cf   :  { %529 = vadd.xlane.f32.xlu1 %v528_v34 }
 0x4d0   :  { %v378_v36 = vpop.permute.xlu2 %377 }
 0x4d1   :  { %v384_v37 = vsel %vm382_vm2, %v378_v36, 0 }
 0x4d2   :  { %393 = vmatpush.bf16.msrb.mxu2 %v384_v37 }
 0x4d6   :  { %472 = vmatpush.bf16.msra.mxu2 %v463_v62 }
 0x4d7   :  { %366 = vmax.xlane.f32.xlu1 %v365_v39 }
 0x4d8   :  { %v577_v26 = vpop.permute.xlu2 %576 }
 0x4e1   :  { %534 = vrot.lane.b32.xlu0 %v2663_v59, %s2537_s13 }
 0x4e9   :  { %659 = vrot.lane.b32.xlu0 %v2702_v44, %s2531_s8 }
 0x540   :  { %v433_v45 = vpop.xlane.xlu0 %432 }
 0x541   :  { %2411 = vrcp.f32 %v433_v45 }
 0x542   :  { %v530_v46 = vpop.xlane.xlu1 %529 }
 0x543   :  { %2413 = vrcp.f32 %v530_v46 }
 0x547   :  { %v2412_v47 = vpop.eup %2411 }
 0x548   :  { %v435_v48 = vmul.f32 %v2412_v47, %v2408_v30 }
 0x549   :  { %v2414_v53 = vpop.eup %2413 }
 0x54a   :  { %v436_v49 = vpack.c.bf16 %v435_v48, %v435_v48  ;;  %v367_v50 = vpop.xlane.xlu1 %366  ;;  %v532_v57 = vmul.f32 %v2414_v53, %v2410_v32 }
 0x54b   :  { %v368_v51 = vsub.f32 %v364_v38, %v367_v50 }
 0x54c   :  { %2178 = vmatmul.msk.bf16.vlgmr.msra.gmra.mxu1 %vm343_vm15, %v436_v49  ;;  %v533_v60 = vpack.c.bf16 %v532_v57, %v532_v57 }
 0x54d   :  { %v369_v52 = vmul.f32 1.442695, %v368_v51 }
 0x54f   :  { %2415 = vpow2.f32 %v369_v52 }
 0x553   :  { %v535_v54 = vpop.permute.xlu0 %534 }
 0x554   :  { %v540_v55 = vsel %vm382_vm2, %v535_v54, 0 }
 0x555   :  { %v2416_v56 = vpop.eup %2415  ;;  %549 = vmatpush.bf16.msrb.mxu1 %v540_v55 }
 0x556   :  { %v371_v58 = vsel %vm343_vm15, %v2416_v56, 0.0 }
 0x557   :  { %372 = vadd.xlane.f32.xlu1 %v371_v58 }
 0x55b   :  { %v660_v15 = vpop.permute.xlu0 %659 }
 0x55c   :  { %2182 = vmatmul.msk.bf16.vlgmr.msrb.gmra.mxu1 %vm343_vm15, %v533_v60  ;;  %v665_v18 = vsel %vm343_vm15, %v660_v15, 0  ;;  %v227_v15 = vld [vmem:[%s3166_s1 + $0x8c] sm:$0xf] }
 0x570   :  { %578 = vrot.lane.b32.xlu1 %v2663_v59, %s2538_s14 }
 0x578   :  { %694 = vrot.lane.b32.xlu1 %v2702_v44, %s2535_s11 }
 0x5c9   :  { %v454_v1 = vpop.f32.mrf.mxu1 }
 0x5ca   :  { %v373_v2 = vpop.xlane.xlu1 %372  ;;  %v458_v17 = vpack.c.bf16 %v454_v1, %v454_v1 }
 0x5cb   :  { %2417 = vrcp.f32 %v373_v2 }
 0x5d1   :  { %v2418_v3 = vpop.eup %2417  ;;  %v456_v5 = vpop.f32.mrf.mxu1 }
 0x5d2   :  { %v375_v7 = vmul.f32 %v2418_v3, %v2416_v56 }
 0x5d4   :  { %v376_v8 = vpack.c.bf16 %v375_v7, %v375_v7 }
 0x5d6   :  { %2176 = vmatmul.msk.bf16.vlgmr.msrb.gmra.mxu2 %vm343_vm15, %v376_v8 }
 0x5d7   :  { %569 = vmatpush.bf16.msrb.mxu2 %v560_v11 }
 0x5d9   :  { %v551_v12 = vpop.f32.mrf.mxu1 }
 0x5da   :  { %v555_v19 = vpack.c.bf16 %v551_v12, %v551_v12 }
 0x5e1   :  { %v553_v13 = vpop.f32.mrf.mxu1 }
 0x5e2   :  { %v579_v14 = vpop.permute.xlu1 %578 }
 0x5e3   :  { %v584_v16 = vsel %vm343_vm15, %v579_v14, 0 }
 0x5e4   :  { %593 = vmatpush.bf16.xpose.msra.mxu3 %v584_v16  ;;  %v2775_v16 = vsel %vm382_vm2, %v227_v15, 0 }
 0x5e5   :  { %648 = vmatpush.bf16.msra.mxu1 %v2775_v16 }
 0x5e6   :  { %2179 = vmatmul.msk.bf16.vlgmr.msra.gmra.mxu2 %vm343_vm15, %v458_v17 }
 0x5e7   :  { %674 = vmatpush.bf16.xpose.msra.mxu2 %v665_v18 }
 0x5ea   :  { %v695_v20 = vpop.permute.xlu1 %694 }
 0x5eb   :  { %v700_v23 = vsel %vm382_vm2, %v695_v20, 0 }
 0x5f6   :  { %2183 = vmatmul.msk.bf16.vlgmr.msrb.gmra.mxu2 %vm343_vm15, %v555_v19 }
 0x5f7   :  { %785 = vmatpush.bf16.msrb.mxu2 %v463_v62 }
 0x606   :  { %2187 = vmatmul.msk.bf16.vlgmr.msra.gmra.mxu2 %vm343_vm15, %v655_v42 }
 0x607   :  { %876 = vmatpush.bf16.msra.mxu2 %v560_v11 }
 0x659   :  { %v395_v21 = vpop.f32.mrf.mxu2 }
 0x65a   :  { %v399_v22 = vpack.c.bf16 %v395_v21, %v395_v21 }
 0x65c   :  { %2180 = vmatmul.msk.bf16.vlgmr.msrb.gmra.mxu3 %vm343_vm15, %v399_v22 }
 0x65d   :  { %709 = vmatpush.bf16.msrb.mxu3 %v700_v23 }
 0x661   :  { %v397_v24 = vpop.f32.mrf.mxu2 }
 0x669   :  { %v2734_v25 = vpop.f32.mrf.mxu2 }
 0x66c   :  { %2184 = vmatmul.msk.bf16.vlgmr.msra.gmra.mxu3 %vm343_vm15, %v577_v26 }
 0x66d   :  { %801 = vmatpush.bf16.msra.mxu3 %v482_v0 }
 0x671   :  { %v476_v27 = vpop.f32.mrf.mxu2 }
 0x679   :  { %v2737_v28 = vpop.f32.mrf.mxu2 }
 0x681   :  { %v573_v29 = vpop.f32.mrf.mxu2 }
 0x689   :  { %v676_v30 = vpop.f32.mrf.mxu2 }
 0x68a   :  { %v680_v31 = vmul.f32 0.35355338, %v676_v30 }
 0x68c   :  { %v681_v32 = vadd.f32 %v680_v31, %v2681_v9 }
 0x68e   :  { %v682_v33 = vsel %vm343_vm15, %v681_v32, -inf }
 0x68f   :  { %683 = vmax.xlane.f32.xlu0 %v682_v33 }
 0x691   :  { %v678_v34 = vpop.f32.mrf.mxu2 }
 0x6df   :  { %v2741_v36 = vpop.f32.mrf.mxu3 }
 0x6e7   :  { %v495_v37 = vpop.f32.mrf.mxu3 }
 0x6ef   :  { %v595_v38 = vpop.f32.mrf.mxu3 }
 0x6f0   :  { %v599_v39 = vmul.f32 0.35355338, %v595_v38 }
 0x6f2   :  { %v600_v40 = vadd.f32 %v599_v39, %v2681_v9 }
 0x6f4   :  { %v601_v41 = vsel %vm343_vm15, %v600_v40, -inf }
 0x6f5   :  { %602 = vmax.xlane.f32.xlu1 %v601_v41  ;;  %v494_v41 = vadd.f32 %v2741_v36, %v2734_v25 }
 0x6f7   :  { %v597_v42 = vpop.f32.mrf.mxu3 }
 0x6f8   :  { %v575_v42 = vadd.f32 %v2737_v28, %v494_v41 }
 0x702   :  { %v684_v43 = vpop.xlane.xlu0 %683 }
 0x703   :  { %v685_v45 = vsub.f32 %v681_v32, %v684_v43 }
 0x705   :  { %v686_v46 = vmul.f32 1.442695, %v685_v45 }
 0x707   :  { %2419 = vpow2.f32 %v686_v46  ;;  %v2795_v46 = vld [vmem:[%s3167_s2 + $0x13] ss:$0 sm:$0xff] }
 0x70d   :  { %v2420_v47 = vpop.eup %2419 }
 0x70e   :  { %716 = vrot.lane.b32.xlu1 %v2702_v44, %s2529_s6  ;;  %v688_v48 = vsel %vm343_vm15, %v2420_v47, 0.0 }
 0x70f   :  { %689 = vadd.xlane.f32.xlu2 %v688_v48 }
 0x727   :  { %613 = vrot.lane.b32.xlu2 %v2663_v59, %s2539_s20 }
 0x72f   :  { %885 = vrot.lane.b32.xlu2 %v2702_v44, %s2538_s14 }
 0x737   :  { %883 = vrot.lane.b32.xlu2 %v2702_v44, %s2536_s12 }
 0x768   :  { %v603_v49 = vpop.xlane.xlu1 %602 }
 0x769   :  { %v604_v50 = vsub.f32 %v600_v40, %v603_v49 }
 0x76b   :  { %v605_v51 = vmul.f32 1.442695, %v604_v50 }
 0x76d   :  { %2421 = vpow2.f32 %v605_v51 }
 0x773   :  { %v2422_v52 = vpop.eup %2421 }
 0x774   :  { %v607_v53 = vsel %vm343_vm15, %v2422_v52, 0.0 }
 0x775   :  { %608 = vadd.xlane.f32.xlu0 %v607_v53 }
 0x780   :  { %v717_v5 = vpop.permute.xlu1 %716 }
 0x782   :  { %v690_v54 = vpop.xlane.xlu2 %689 }
 0x783   :  { %2423 = vrcp.f32 %v690_v54 }
 0x789   :  { %v2424_v55 = vpop.eup %2423  ;;  %718 = vrot.lane.b32.xlu0 %v2702_v44, %s2530_s7 }
 0x78a   :  { %v692_v59 = vmul.f32 %v2424_v55, %v2420_v47  ;;  %v614_v56 = vpop.permute.xlu2 %613 }
 0x78b   :  { %v619_v57 = vsel %vm382_vm2, %v614_v56, 0 }
 0x78c   :  { %v693_v58 = vpack.c.bf16 %v692_v59, %v692_v59  ;;  %628 = vmatpush.bf16.msra.mxu0 %v619_v57 }
 0x78e   :  { %2188 = vmatmul.msk.bf16.vlgmr.msrb.gmra.mxu3 %vm343_vm15, %v693_v58 }
 0x791   :  { %809 = vrot.lane.b32.xlu0 %v2702_v44, %s2528_s5 }
 0x792   :  { %v886_v60 = vpop.permute.xlu2 %885 }
 0x793   :  { %v891_v61 = vsel %vm343_vm15, %v886_v60, 0 }
 0x794   :  { %900 = vmatpush.bf16.xpose.msrb.mxu3 %v891_v61 }
 0x799   :  { %807 = vrot.lane.b32.xlu0 %v2702_v44, %s2532_s9 }
 0x79a   :  { %v884_v14 = vpop.permute.xlu2 %883 }
 0x7e8   :  { %v609_v62 = vpop.xlane.xlu0 %608 }
 0x7e9   :  { %2425 = vrcp.f32 %v609_v62 }
 0x7ef   :  { %v2426_v63 = vpop.eup %2425 }
 0x7f0   :  { %v611_v0 = vmul.f32 %v2426_v63, %v2422_v52 }
 0x7f2   :  { %v612_v1 = vpack.c.bf16 %v611_v0, %v611_v0 }
 0x7f4   :  { %2185 = vmatmul.msk.bf16.vlgmr.msra.gmra.mxu0 %vm343_vm15, %v612_v1 }
 0x7fb   :  { %v719_v2 = vpop.permute.xlu0 %718 }
 0x7fc   :  { %v724_v3 = vsel %vm343_vm15, %v719_v2, 0 }
 0x7fd   :  { %733 = vmatpush.bf16.xpose.msrb.mxu0 %v724_v3 }
 0x803   :  { %v810_v6 = vpop.permute.xlu0 %809 }
 0x804   :  { %v815_v7 = vsel %vm343_vm15, %v810_v6, 0  ;;  %2189 = vmatmul.msk.bf16.vlgmr.msrb.gmra.mxu0 %vm343_vm15, %v717_v5 }
 0x805   :  { %824 = vmatpush.bf16.xpose.msra.mxu0 %v815_v7 }
 0x80b   :  { %v808_v12 = vpop.permute.xlu0 %807 }
 0x811   :  { %v711_v8 = vpop.f32.mrf.mxu3 }
 0x812   :  { %v715_v11 = vpack.c.bf16 %v711_v8, %v711_v8 }
 0x814   :  { %2192 = vmatmul.msk.bf16.vlgmr.msra.gmra.mxu3 %vm343_vm15, %v715_v11  ;;  %2193 = vmatmul.msk.bf16.vlgmr.msra.gmra.mxu0 %vm343_vm15, %v808_v12 }
 0x819   :  { %v713_v13 = vpop.f32.mrf.mxu3 }
 0x824   :  { %2196 = vmatmul.msk.bf16.vlgmr.msrb.gmra.mxu3 %vm343_vm15, %v884_v14 }
 0x871   :  { %v630_v17 = vpop.f32.mrf.mxu0 }
 0x872   :  { %v634_v18 = vpack.c.bf16 %v630_v17, %v630_v17 }
 0x874   :  { %2186 = vmatmul.msk.bf16.vlgmr.msra.gmra.mxu1 %vm343_vm15, %v634_v18 }
 0x879   :  { %v632_v19 = vpop.f32.mrf.mxu0 }
 0x881   :  { %v735_v20 = vpop.f32.mrf.mxu0 }
 0x882   :  { %v739_v21 = vmul.f32 0.35355338, %v735_v20 }
 0x884   :  { %v740_v22 = vadd.f32 %v739_v21, %v2681_v9 }
 0x886   :  { %v741_v23 = vsel %vm343_vm15, %v740_v22, -inf }
 0x887   :  { %742 = vmax.xlane.f32.xlu0 %v741_v23 }
 0x889   :  { %v737_v24 = vpop.f32.mrf.mxu0 }
 0x891   :  { %v826_v26 = vpop.f32.mrf.mxu0 }
 0x892   :  { %v830_v27 = vmul.f32 0.35355338, %v826_v26 }
 0x894   :  { %v831_v29 = vadd.f32 %v830_v27, %v2681_v9 }
 0x896   :  { %v832_v30 = vsel %vm343_vm15, %v831_v29, -inf }
 0x897   :  { %v2783_v31 = vpop.f32.mrf.mxu3  ;;  %833 = vmax.xlane.f32.xlu2 %v832_v30 }
 0x899   :  { %v828_v32 = vpop.f32.mrf.mxu0 }
 0x89f   :  { %v805_v33 = vpop.f32.mrf.mxu3 }
 0x8a7   :  { %v902_v34 = vpop.f32.mrf.mxu3 }
 0x8a8   :  { %v906_v37 = vmul.f32 0.35355338, %v902_v34 }
 0x8aa   :  { %v907_v38 = vadd.f32 %v906_v37, %v2681_v9 }
 0x8ac   :  { %v908_v39 = vsel %vm343_vm15, %v907_v38, -inf }
 0x8ad   :  { %909 = vmax.xlane.f32.xlu1 %v908_v39 }
 0x8af   :  { %v904_v40 = vpop.f32.mrf.mxu3  ;;  %753 = vrot.lane.b32.xlu2 %v2702_v44, %s2534_s10 }
 0x8f1   :  { %v650_v43 = vpop.f32.mrf.mxu1 }
 0x8f2   :  { %v654_v45 = vadd.f32 %v650_v43, %v575_v42 }
 0x8f4   :  { %v959_v47 = vadd.f32 %v654_v45, %v2628_v4 }
 0x8f6   :  { %v2799_v48 = vadd.f32 %v2795_v46, %v959_v47 }
 0x8f8   :  { %v964_v49 = vsel %vm162_vm1, %v2799_v48, 0.0 }
 0x8f9   :  { %v652_v50 = vpop.f32.mrf.mxu1  ;;  %965 = vadd.xlane.f32.xlu2 %v964_v49 }
 0x8fa   :  { %v743_v25 = vpop.xlane.xlu0 %742 }
 0x8fb   :  { %v744_v36 = vsub.f32 %v740_v22, %v743_v25 }
 0x8fd   :  { %v745_v28 = vmul.f32 1.442695, %v744_v36 }
 0x8ff   :  { %2427 = vpow2.f32 %v745_v28 }
 0x905   :  { %v2428_v51 = vpop.eup %2427 }
 0x906   :  { %v747_v52 = vsel %vm343_vm15, %v2428_v51, 0.0 }
 0x907   :  { %748 = vadd.xlane.f32.xlu0 %v747_v52 }
 0x90a   :  { %v834_v53 = vpop.xlane.xlu2 %833 }
 0x90b   :  { %v835_v54 = vsub.f32 %v831_v29, %v834_v53 }
 0x90d   :  { %v836_v55 = vmul.f32 1.442695, %v835_v54 }
 0x90f   :  { %2429 = vpow2.f32 %v836_v55 }
 0x912   :  { %v754_v4 = vpop.permute.xlu2 %753 }
 0x913   :  { %v759_v59 = vsel %vm382_vm2, %v754_v4, 0  ;;  %v2339_v4 = vld [vmem:[%s3166_s1 + $0x90] sm:$0xff] }
 0x914   :  { %768 = vmatpush.bf16.msrb.mxu1 %v759_v59 }
 0x915   :  { %v2430_v56 = vpop.eup %2429 }
 0x916   :  { %v838_v57 = vsel %vm343_vm15, %v2430_v56, 0.0 }
 0x917   :  { %839 = vadd.xlane.f32.xlu1 %v838_v57 }
 0x91b   :  { %844 = vrot.lane.b32.xlu0 %v2702_v44, %s2537_s13 }
 0x920   :  { %v910_v58 = vpop.xlane.xlu1 %909 }
 0x921   :  { %v911_v60 = vsub.f32 %v907_v38, %v910_v58 }
 0x923   :  { %v912_v61 = vmul.f32 1.442695, %v911_v60 }
 0x925   :  { %2431 = vpow2.f32 %v912_v61 }
 0x92b   :  { %v2432_v62 = vpop.eup %2431 }
 0x92c   :  { %v914_v63 = vsel %vm343_vm15, %v2432_v62, 0.0 }
 0x92d   :  { %915 = vadd.xlane.f32.xlu1 %v914_v63 }
 0x946   :  { %920 = vrot.lane.b32.xlu1 %v2702_v44, %s2539_s20 }
 0x96c   :  { %v966_v0 = vpop.xlane.xlu2 %965 }
 0x96d   :  { %v970_v1 = vmul.f32 %v966_v0, %v2614_v35 }
 0x96f   :  { %v2813_v2 = vsub.f32 %v2799_v48, %v970_v1 }
 0x971   :  { %v974_v3 = vmul.f32 %v2813_v2, %v2813_v2 }
 0x973   :  { %v976_v5 = vsel %vm162_vm1, %v974_v3, 0.0 }
 0x974   :  { %977 = vadd.xlane.f32.xlu1 %v976_v5 }
 0x97a   :  { %v749_v6 = vpop.xlane.xlu0 %748 }
 0x97b   :  { %2433 = vrcp.f32 %v749_v6 }
 0x981   :  { %v2434_v7 = vpop.eup %2433 }
 0x982   :  { %v751_v8 = vmul.f32 %v2434_v7, %v2428_v51 }
 0x984   :  { %v752_v11 = vpack.c.bf16 %v751_v8, %v751_v8  ;;  %v2383_v8 = vld [vmem:[%s3167_s2 + $0x14] ss:$0 sm:$0xff] }
 0x986   :  { %2190 = vmatmul.msk.bf16.vlgmr.msrb.gmra.mxu1 %vm343_vm15, %v752_v11 }
 0x98a   :  { %v840_v44 = vpop.xlane.xlu1 %839 }
 0x98b   :  { %2435 = vrcp.f32 %v840_v44 }
 0x98d   :  { %v845_v12 = vpop.permute.xlu0 %844 }
 0x98e   :  { %v850_v13 = vsel %vm382_vm2, %v845_v12, 0 }
 0x98f   :  { %859 = vmatpush.bf16.msra.mxu1 %v850_v13  ;;  %v2384_v13 = vld [vmem:[%s3167_s2 + $0x15] ss:$0 sm:$0xff] }
 0x991   :  { %v2436_v14 = vpop.eup %2435 }
 0x992   :  { %v842_v15 = vmul.f32 %v2436_v14, %v2430_v56 }
 0x993   :  { %952 = vmatpush.bf16.msrb.mxu1 %v2775_v16 }
 0x994   :  { %v843_v17 = vpack.c.bf16 %v842_v15, %v842_v15 }
 0x996   :  { %2194 = vmatmul.msk.bf16.vlgmr.msra.gmra.mxu1 %vm343_vm15, %v843_v17 }
 0x9a0   :  { %v916_v18 = vpop.xlane.xlu1 %915 }
 0x9a1   :  { %2437 = vrcp.f32 %v916_v18 }
 0x9a7   :  { %v2438_v19 = vpop.eup %2437 }
 0x9a8   :  { %v918_v20 = vmul.f32 %v2438_v19, %v2432_v62 }
 0x9aa   :  { %v919_v23 = vpack.c.bf16 %v918_v20, %v918_v20 }
 0x9b8   :  { %v921_v21 = vpop.permute.xlu1 %920 }
 0x9b9   :  { %v926_v22 = vsel %vm382_vm2, %v921_v21, 0  ;;  %v2347_v21 = vld [vmem:[%s3166_s1 + $0xd0] sm:$0xff] }
 0x9ba   :  { %935 = vmatpush.bf16.msrb.mxu0 %v926_v22  ;;  %v2346_v22 = vld [vmem:[%s3166_s1 + $0xc8] sm:$0xff] }
 0x9bd   :  { %2197 = vmatmul.msk.bf16.vlgmr.msrb.gmra.mxu0 %vm343_vm15, %v919_v23  ;;  %v2345_v23 = vld [vmem:[%s3166_s1 + $0xc0] sm:$0xff] }
 0x9e7   :  { %v978_v53 = vpop.xlane.xlu1 %977 }
 0xa03   :  { %v770_v24 = vpop.f32.mrf.mxu1 }
 0xa04   :  { %v774_v26 = vpack.c.bf16 %v770_v24, %v770_v24  ;;  %v2344_v24 = vld [vmem:[%s3166_s1 + $0xb8] sm:$0xff] }
 0xa06   :  { %2191 = vmatmul.msk.bf16.vlgmr.msrb.gmra.mxu2 %vm343_vm15, %v774_v26  ;;  %v2343_v26 = vld [vmem:[%s3166_s1 + $0xb0] sm:$0xff] }
 0xa0b   :  { %v772_v16 = vpop.f32.mrf.mxu1 }
 0xa0c   :  { %v2342_v16 = vld [vmem:[%s3166_s1 + $0xa8] sm:$0xff] }
 0xa13   :  { %v861_v27 = vpop.f32.mrf.mxu1 }
 0xa14   :  { %v865_v29 = vpack.c.bf16 %v861_v27, %v861_v27  ;;  %v2385_v27 = vld [vmem:[%s3167_s2 + $0x16] ss:$0 sm:$0xff] }
 0xa16   :  { %2195 = vmatmul.msk.bf16.vlgmr.msra.gmra.mxu2 %vm343_vm15, %v865_v29  ;;  %v2341_v29 = vld [vmem:[%s3166_s1 + $0xa0] sm:$0xff] }
 0xa1b   :  { %v863_v30 = vpop.f32.mrf.mxu1 }
 0xa3a   :  { %v937_v32 = vpop.f32.mrf.mxu0 }
 0xa3b   :  { %v941_v33 = vpack.c.bf16 %v937_v32, %v937_v32 }
 0xa3d   :  { %2198 = vmatmul.msk.bf16.vlgmr.msrb.gmra.mxu1 %vm343_vm15, %v941_v33 }
 0xa42   :  { %v939_v34 = vpop.f32.mrf.mxu0 }
 0xa89   :  { %v787_v37 = vpop.f32.mrf.mxu2 }
 0xa8a   :  { %v804_v41 = vadd.f32 %v2783_v31, %v787_v37 }
 0xa91   :  { %v789_v38 = vpop.f32.mrf.mxu2 }
 0xa99   :  { %v878_v39 = vpop.f32.mrf.mxu2 }
 0xa9a   :  { %v882_v42 = vadd.f32 %v878_v39, %v804_v41 }
 0xaa1   :  { %v880_v40 = vpop.f32.mrf.mxu2 }
 0xaba   :  { %v954_v43 = vpop.f32.mrf.mxu1 }
 0xabb   :  { %v958_v45 = vadd.f32 %v954_v43, %v882_v42 }
 0xabd   :  { %v960_v47 = vadd.f32 %v958_v45, %v2632_v10  ;;  %v982_v10 = vmul.f32 %v978_v53, %v2614_v35 }
 0xabf   :  { %v2830_v49 = vadd.f32 %v2795_v46, %v960_v47  ;;  %v984_v54 = vadd.f32 1e-05, %v982_v10  ;;  %v2340_v46 = vld [vmem:[%s3166_s1 + $0x98] sm:$0xff] }
 0xac0   :  { %1037 = vmatpush.bf16.msrb.mxu2 %v2340_v46 }
 0xac1   :  { %v967_v50 = vsel %vm162_vm1, %v2830_v49, 0.0  ;;  %2439 = vrsqrt.f32 %v984_v54  ;;  %vm992_vm4 = vweird.f32 %v984_v54 }
 0xac2   :  { %968 = vadd.xlane.f32.xlu0 %v967_v50  ;;  %v956_v25 = vpop.f32.mrf.mxu1 }
 0xac4   :  { %1038 = vmatpush.bf16.msrb.mxu2 %v2339_v4 }
 0xac7   :  { %v2440_v55 = vpop.eup %2439 }
 0xac8   :  { %v987_v59 = vmul.f32 %v2440_v55, %v984_v54  ;;  %vm993_vm3 = vweird.f32 %v2440_v55 }
 0xac9   :  { %vm994_vm5 = vmor %vm992_vm4, %vm993_vm3 }
 0xaca   :  { %v988_v56 = vmul.f32 %v2440_v55, %v987_v59 }
 0xacc   :  { %v989_v61 = vmul.f32 0.5, %v988_v56 }
 0xace   :  { %v990_v62 = vsub.f32 1.5, %v989_v61 }
 0xad0   :  { %v991_v0 = vmul.f32 %v2440_v55, %v990_v62 }
 0xad2   :  { %v995_v5 = vsel %vm994_vm5, %v2440_v55, %v991_v0  ;;  %v2350_v0 = vld [vmem:[%s3166_s1 + $0xe8] sm:$0xff] }
 0xad3   :  { %v1006_v11 = vmul.f32 %v995_v5, %v2813_v2  ;;  %v2348_v2 = vld [vmem:[%s3166_s1 + $0xd8] sm:$0xff]  ;;  %1232 = vmatpush.bf16.msra.mxu0 %v2350_v0 }
 0xad4   :  { %1107 = vmatpush.bf16.msra.mxu3 %v2348_v2 }
 0xad5   :  { %v1009_v14 = vmul.f32 %v2383_v8, %v1006_v11 }
 0xad7   :  { %v1012_v18 = vadd.f32 %v2384_v13, %v1009_v14 }
 0xad8   :  { %1108 = vmatpush.bf16.msra.mxu3 %v2347_v21 }
 0xadc   :  { %1109 = vmatpush.bf16.msra.mxu3 %v2346_v22 }
 0xae0   :  { %1110 = vmatpush.bf16.msra.mxu3 %v2345_v23  ;;  %v2387_v23 = vld [vmem:[%s3167_s2 + $0x18] ss:$0 sm:$0xff] }
 0xae4   :  { %1111 = vmatpush.bf16.msra.mxu3 %v2344_v24 }
 0xae8   :  { %1112 = vmatpush.bf16.msra.mxu3 %v2343_v26 }
 0xaec   :  { %1113 = vmatpush.bf16.msra.mxu3 %v2342_v16 }
 0xaf0   :  { %1114 = vmatpush.bf16.msra.mxu3 %v2341_v29 }
 0xb35   :  { %v969_v36 = vpop.xlane.xlu0 %968 }
 0xb36   :  { %v971_v28 = vmul.f32 %v969_v36, %v2614_v35 }
 0xb38   :  { %v973_v51 = vsub.f32 %v2830_v49, %v971_v28 }
 0xb3a   :  { %v975_v52 = vmul.f32 %v973_v51, %v973_v51 }
 0xb3c   :  { %v979_v31 = vsel %vm162_vm1, %v975_v52, 0.0 }
 0xb3d   :  { %980 = vadd.xlane.f32.xlu2 %v979_v31 }
 0xbb0   :  { %v981_v57 = vpop.xlane.xlu2 %980 }
 0xbb1   :  { %v983_v58 = vmul.f32 %v981_v57, %v2614_v35 }
 0xbb3   :  { %v985_v60 = vadd.f32 1e-05, %v983_v58 }
 0xbb5   :  { %2441 = vrsqrt.f32 %v985_v60  ;;  %vm1002_vm7 = vweird.f32 %v985_v60 }
 0xbbb   :  { %v2442_v63 = vpop.eup %2441 }
 0xbbc   :  { %v997_v1 = vmul.f32 %v2442_v63, %v985_v60  ;;  %vm1003_vm6 = vweird.f32 %v2442_v63 }
 0xbbd   :  { %vm1004_vm8 = vmor %vm1002_vm7, %vm1003_vm6  ;;  %vm2027_vm6 = vcmask 1040384   ;;  %vm2031_vm7 = vcmask 254976  }
 0xbbe   :  { %v998_v3 = vmul.f32 %v2442_v63, %v997_v1 }
 0xbc0   :  { %v999_v6 = vmul.f32 0.5, %v998_v3 }
 0xbc2   :  { %v1000_v7 = vsub.f32 1.5, %v999_v6  ;;  %v2349_v6 = vld [vmem:[%s3166_s1 + $0xe0] sm:$0xff] }
 0xbc3   :  { %1233 = vmatpush.bf16.msra.mxu0 %v2349_v6 }
 0xbc4   :  { %v1001_v44 = vmul.f32 %v2442_v63, %v1000_v7 }
 0xbc6   :  { %v1005_v12 = vsel %vm1004_vm8, %v2442_v63, %v1001_v44 }
 0xbc7   :  { %v1007_v15 = vmul.f32 %v1005_v12, %v973_v51  ;;  %v2386_v51 = vld [vmem:[%s3167_s2 + $0x17] ss:$0 sm:$0xff] }
 0xbc9   :  { %v1010_v17 = vmul.f32 %v2383_v8, %v1007_v15 }
 0xbcb   :  { %v1013_v19 = vadd.f32 %v2384_v13, %v1010_v17 }
 0xbcd   :  { %v1014_v20 = vpack.c.bf16 %v1013_v19, %v1012_v18 }
 0xbcf   :  { %2207 = vmatmul.msk.bf16.vlgmr.msrb.gmra.mxu2 %vm162_vm1, %v1014_v20 }
 0xc52   :  { %v1040_v30 = vpop.f32.mrf.mxu2 }
 0xc53   :  { %v1041_v32 = vadd.f32 %v2385_v27, %v1040_v30 }
 0xc55   :  { %v1045_v33 = vmul.f32 -1.702, %v1041_v32 }
 0xc57   :  { %v1047_v34 = vmul.f32 1.442695, %v1045_v33 }
 0xc59   :  { %2443 = vpow2.f32 %v1047_v34 }
 0xc5a   :  { %v1042_v37 = vpop.f32.mrf.mxu2 }
 0xc5b   :  { %v1043_v38 = vadd.f32 %v2385_v27, %v1042_v37  ;;  %v2388_v27 = vld [vmem:[%s3167_s2 + $0x19] ss:$0 sm:$0xff] }
 0xc5d   :  { %v1046_v39 = vmul.f32 -1.702, %v1043_v38 }
 0xc5f   :  { %v1049_v40 = vmul.f32 1.442695, %v1046_v39  ;;  %v2444_v41 = vpop.eup %2443 }
 0xc60   :  { %v1051_v42 = vadd.f32 1.0, %v2444_v41 }
 0xc61   :  { %2445 = vpow2.f32 %v1049_v40 }
 0xc62   :  { %2447 = vrcp.f32 %v1051_v42 }
 0xc67   :  { %v2446_v43 = vpop.eup %2445 }
 0xc68   :  { %v1052_v45 = vadd.f32 1.0, %v2446_v43  ;;  %v2448_v47 = vpop.eup %2447 }
 0xc69   :  { %v1055_v25 = vmul.f32 %v2448_v47, %v1041_v32 }
 0xc6a   :  { %2449 = vrcp.f32 %v1052_v45 }
 0xc70   :  { %v2450_v50 = vpop.eup %2449 }
 0xc71   :  { %v1056_v36 = vmul.f32 %v2450_v50, %v1043_v38  ;;  %v2917_v38 = vld [vmem:[%s3167_s2 + $0x1a] ss:$0 sm:$0xff] }
 0xc73   :  { %v1057_v28 = vpack.c.bf16 %v1056_v36, %v1055_v25 }
 0xc75   :  { %1115 = vmatmul.bf16.vlgmr.msra.gmra.mxu3 %v1057_v28 }
 0xcf8   :  { %v1116_v52 = vpop.f32.mrf.mxu3 }
 0xcf9   :  { %v1117_v31 = vadd.f32 %v2386_v51, %v1116_v52 }
 0xcfb   :  { %v2884_v53 = vadd.f32 %v1117_v31, %v2799_v48 }
 0xcfd   :  { %v1159_v10 = vsel %vm162_vm1, %v2884_v53, 0.0 }
 0xcfe   :  { %1160 = vadd.xlane.f32.xlu0 %v1159_v10 }
 0xd00   :  { %v1118_v54 = vpop.f32.mrf.mxu3 }
 0xd01   :  { %v1119_v46 = vadd.f32 %v2386_v51, %v1118_v54 }
 0xd03   :  { %v2889_v55 = vadd.f32 %v1119_v46, %v2830_v49 }
 0xd05   :  { %v1162_v4 = vsel %vm162_vm1, %v2889_v55, 0.0 }
 0xd06   :  { %1163 = vadd.xlane.f32.xlu2 %v1162_v4 }
 0xd71   :  { %v1161_v59 = vpop.xlane.xlu0 %1160 }
 0xd72   :  { %v1165_v56 = vmul.f32 %v1161_v59, %v2614_v35 }
 0xd74   :  { %v1167_v57 = vsub.f32 %v2884_v53, %v1165_v56 }
 0xd76   :  { %v1169_v48 = vmul.f32 %v1167_v57, %v1167_v57 }
 0xd78   :  { %v1171_v58 = vsel %vm162_vm1, %v1169_v48, 0.0 }
 0xd79   :  { %v1164_v60 = vpop.xlane.xlu2 %1163  ;;  %1172 = vadd.xlane.f32.xlu0 %v1171_v58 }
 0xd7a   :  { %v1166_v61 = vmul.f32 %v1164_v60, %v2614_v35 }
 0xd7c   :  { %v1168_v62 = vsub.f32 %v2889_v55, %v1166_v61 }
 0xd7e   :  { %v1170_v49 = vmul.f32 %v1168_v62, %v1168_v62 }
 0xd80   :  { %v1174_v63 = vsel %vm162_vm1, %v1170_v49, 0.0 }
 0xd81   :  { %1175 = vadd.xlane.f32.xlu2 %v1174_v63 }
 0xdec   :  { %v1173_v1 = vpop.xlane.xlu0 %1172 }
 0xded   :  { %v1177_v3 = vmul.f32 %v1173_v1, %v2614_v35 }
 0xdef   :  { %v1179_v5 = vadd.f32 1e-05, %v1177_v3 }
 0xdf1   :  { %2451 = vrsqrt.f32 %v1179_v5  ;;  %vm1187_vm10 = vweird.f32 %v1179_v5 }
 0xdf4   :  { %v1176_v7 = vpop.xlane.xlu2 %1175 }
 0xdf5   :  { %v1178_v8 = vmul.f32 %v1176_v7, %v2614_v35 }
 0xdf7   :  { %v2452_v11 = vpop.eup %2451  ;;  %v1180_v44 = vadd.f32 1e-05, %v1178_v8 }
 0xdf8   :  { %v1182_v12 = vmul.f32 %v2452_v11, %v1179_v5  ;;  %vm1188_vm9 = vweird.f32 %v2452_v11 }
 0xdf9   :  { %2453 = vrsqrt.f32 %v1180_v44  ;;  %vm1189_vm11 = vmor %vm1187_vm10, %vm1188_vm9  ;;  %vm1197_vm13 = vweird.f32 %v1180_v44 }
 0xdfa   :  { %v1183_v13 = vmul.f32 %v2452_v11, %v1182_v12 }
 0xdfc   :  { %v1184_v14 = vmul.f32 0.5, %v1183_v13 }
 0xdfe   :  { %v1185_v15 = vsub.f32 1.5, %v1184_v14 }
 0xdff   :  { %v2454_v17 = vpop.eup %2453 }
 0xe00   :  { %v1186_v18 = vmul.f32 %v2452_v11, %v1185_v15  ;;  %v1192_v19 = vmul.f32 %v2454_v17, %v1180_v44  ;;  %vm1198_vm12 = vweird.f32 %v2454_v17 }
 0xe01   :  { %vm1199_vm14 = vmor %vm1197_vm13, %vm1198_vm12 }
 0xe02   :  { %v1193_v20 = vmul.f32 %v2454_v17, %v1192_v19  ;;  %v1190_v2 = vsel %vm1189_vm11, %v2452_v11, %v1186_v18  ;;  %v1127_v19 = vld [vmem:[%s3166_s1 + $0xf0] sm:$0xf]  ;;  %vm2091_vm11 = vcmask 123904  }
 0xe03   :  { %v1201_v24 = vmul.f32 %v1190_v2, %v1167_v57 }
 0xe04   :  { %v1194_v21 = vmul.f32 0.5, %v1193_v20  ;;  %v2964_v20 = vsel %vm382_vm2, %v1127_v19, 0 }
 0xe05   :  { %v1204_v29 = vmul.f32 %v2387_v23, %v1201_v24  ;;  %1392 = vmatpush.bf16.msrb.mxu3 %v2964_v20 }
 0xe06   :  { %v1195_v22 = vsub.f32 1.5, %v1194_v21 }
 0xe07   :  { %v1207_v33 = vadd.f32 %v2388_v27, %v1204_v29 }
 0xe08   :  { %v1196_v26 = vmul.f32 %v2454_v17, %v1195_v22 }
 0xe0a   :  { %v1200_v16 = vsel %vm1199_vm14, %v2454_v17, %v1196_v26 }
 0xe0b   :  { %v1202_v30 = vmul.f32 %v1200_v16, %v1168_v62 }
 0xe0d   :  { %v1205_v32 = vmul.f32 %v2387_v23, %v1202_v30 }
 0xe0f   :  { %v1208_v34 = vadd.f32 %v2388_v27, %v1205_v32 }
 0xe11   :  { %v1209_v37 = vpack.c.bf16 %v1208_v34, %v1207_v33 }
 0xe13   :  { %2248 = vmatmul.msk.bf16.vlgmr.msra.gmra.mxu0 %vm162_vm1, %v1209_v37 }
 0xe90   :  { %v1235_v39 = vpop.f32.mrf.mxu0 }
 0xe91   :  { %v1236_v40 = vadd.f32 %v2917_v38, %v1235_v39 }
 0xe93   :  { %v1240_v41 = vpack.c.bf16 %v1236_v40, %v1236_v40 }
 0xe95   :  { %v1242_v42 = vunpack.c.l.b16 %v1240_v41 }
 0xe97   :  { %v2920_v43 = vpack.c.b16 %v1242_v42, %v1242_v42 }
 0xe98   :  { %v2938_v31 = vpop.f32.mrf.mxu0 }
 0xe99   :  { %1400 = vrot.lane.b32.xlu2 %v2920_v43, %s2528_s5  ;;  %1301 = vrot.lane.b32.xlu1 %v2920_v43, %s2529_s6  ;;  %v1238_v42 = vadd.f32 %v2917_v38, %v2938_v31 }
 0xe9a   :  { %1303 = vrot.lane.b32.xlu0 %v2920_v43, %s2530_s7 }
 0xea2   :  { %1398 = vrot.lane.b32.xlu0 %v2920_v43, %s2532_s9 }
 0xeaa   :  { %1244 = vrot.lane.b32.xlu0 %v2920_v43, %s2531_s8 }
 0xef3   :  { %v1401_v45 = vpop.permute.xlu2 %1400 }
 0xef4   :  { %v1406_v25 = vsel %vm343_vm15, %v1401_v45, 0  ;;  %v1556_v45 = vpack.c.bf16 %v1238_v42, %v1238_v42 }
 0xf0b   :  { %v1302_v36 = vpop.permute.xlu1 %1301 }
 0xf0c   :  { %v1304_v47 = vpop.permute.xlu0 %1303 }
 0xf0d   :  { %v1309_v50 = vsel %vm343_vm15, %v1304_v47, 0  ;;  %v1558_v47 = vunpack.c.l.b16 %v1556_v45 }
 0xf0e   :  { %1318 = vmatpush.bf16.xpose.msrb.mxu0 %v1309_v50 }
 0xf0f   :  { %v2974_v50 = vpack.c.b16 %v1558_v47, %v1558_v47 }
 0xf14   :  { %v1399_v28 = vpop.permute.xlu0 %1398 }
 0xf15   :  { %2251 = vmatmul.msk.bf16.vlgmr.msrb.gmra.mxu0 %vm343_vm15, %v1302_v36 }
 0xf16   :  { %1415 = vmatpush.bf16.xpose.msra.mxu0 %v1406_v25  ;;  %v1128_v25 = vld [vmem:[%s3166_s1 + $0xf4] sm:$0xf] }
 0xf17   :  { %v1364_v36 = vsel %vm382_vm2, %v1128_v25, 0 }
 0xf1c   :  { %v1245_v51 = vpop.permute.xlu0 %1244 }
 0xf1d   :  { %v1250_v52 = vsel %vm343_vm15, %v1245_v51, 0 }
 0xf1e   :  { %1259 = vmatpush.bf16.xpose.msra.mxu1 %v1250_v52 }
 0xf25   :  { %2249 = vmatmul.msk.bf16.vlgmr.msra.gmra.mxu1 %vm343_vm15, %v1240_v41  ;;  %2255 = vmatmul.msk.bf16.vlgmr.msra.gmra.mxu0 %vm343_vm15, %v1399_v28 }
 0xf92   :  { %v1320_v10 = vpop.f32.mrf.mxu0 }
 0xf93   :  { %v1324_v54 = vmul.f32 0.35355338, %v1320_v10  ;;  %v1129_v10 = vld [vmem:[%s3166_s1 + $0xf8] sm:$0xf] }
 0xf95   :  { %v1325_v46 = vadd.f32 %v1324_v54, %v2681_v9 }
 0xf97   :  { %v1326_v4 = vsel %vm343_vm15, %v1325_v46, -inf }
 0xf98   :  { %1327 = vmax.xlane.f32.xlu2 %v1326_v4 }
 0xf9a   :  { %v1322_v59 = vpop.f32.mrf.mxu0 }
 0xf9b   :  { %v1461_v59 = vsel %vm382_vm2, %v1129_v10, 0 }
 0xfa2   :  { %v1261_v56 = vpop.f32.mrf.mxu1  ;;  %v1417_v57 = vpop.f32.mrf.mxu0 }
 0xfa3   :  { %v1421_v48 = vmul.f32 0.35355338, %v1417_v57  ;;  %v1265_v14 = vmul.f32 0.35355338, %v1261_v56 }
 0xfa5   :  { %v1422_v58 = vadd.f32 %v1421_v48, %v2681_v9  ;;  %v1266_v17 = vadd.f32 %v1265_v14, %v2681_v9 }
 0xfa7   :  { %v1423_v60 = vsel %vm343_vm15, %v1422_v58, -inf  ;;  %v1267_v18 = vsel %vm343_vm15, %v1266_v17, -inf }
 0xfa8   :  { %1424 = vmax.xlane.f32.xlu1 %v1423_v60 }
 0xfaa   :  { %v1263_v61 = vpop.f32.mrf.mxu1  ;;  %v1419_v62 = vpop.f32.mrf.mxu0 }
 0xfb0   :  { %1338 = vrot.lane.b32.xlu2 %v2920_v43, %s2534_s10 }
 0xfb8   :  { %1279 = vrot.lane.b32.xlu2 %v2920_v43, %s2535_s11 }
 0xfc0   :  { %1477 = vrot.lane.b32.xlu2 %v2920_v43, %s2536_s12 }
0x100b   :  { %v1328_v49 = vpop.xlane.xlu2 %1327 }
0x100c   :  { %v1329_v63 = vsub.f32 %v1325_v46, %v1328_v49 }
0x100e   :  { %v1330_v0 = vmul.f32 1.442695, %v1329_v63 }
0x1010   :  { %2455 = vpow2.f32 %v1330_v0 }
0x1013   :  { %v1339_v1 = vpop.permute.xlu2 %1338 }
0x1014   :  { %v1344_v3 = vsel %vm382_vm2, %v1339_v1, 0 }
0x1015   :  { %1353 = vmatpush.bf16.msrb.mxu1 %v1344_v3 }
0x1016   :  { %v2456_v5 = vpop.eup %2455 }
0x1017   :  { %v1332_v6 = vsel %vm343_vm15, %v2456_v5, 0.0 }
0x1018   :  { %1333 = vadd.xlane.f32.xlu0 %v1332_v6 }
0x101b   :  { %v1280_v7 = vpop.permute.xlu2 %1279  ;;  %v1425_v8 = vpop.xlane.xlu1 %1424 }
0x101c   :  { %v1285_v11 = vsel %vm382_vm2, %v1280_v7, 0  ;;  %v1426_v44 = vsub.f32 %v1422_v58, %v1425_v8 }
0x101d   :  { %1294 = vmatpush.bf16.msra.mxu2 %v1285_v11 }
0x101e   :  { %v1427_v12 = vmul.f32 1.442695, %v1426_v44 }
0x1020   :  { %2457 = vpow2.f32 %v1427_v12 }
0x1021   :  { %1373 = vmatpush.bf16.msrb.mxu2 %v1364_v36 }
0x1023   :  { %v1478_v1 = vpop.permute.xlu2 %1477 }
0x1026   :  { %v2458_v13 = vpop.eup %2457 }
0x1027   :  { %v1429_v15 = vsel %vm343_vm15, %v2458_v13, 0.0 }
0x1028   :  { %1430 = vadd.xlane.f32.xlu1 %v1429_v15 }
0x102c   :  { %1435 = vrot.lane.b32.xlu0 %v2920_v43, %s2537_s13 }
0x1030   :  { %1268 = vmax.xlane.f32.xlu1 %v1267_v18 }
0x1034   :  { %1479 = vrot.lane.b32.xlu0 %v2920_v43, %s2538_s14 }
0x108b   :  { %v1334_v2 = vpop.xlane.xlu0 %1333 }
0x108c   :  { %2459 = vrcp.f32 %v1334_v2 }
0x1092   :  { %v2460_v21 = vpop.eup %2459 }
0x1093   :  { %v1336_v22 = vmul.f32 %v2460_v21, %v2456_v5 }
0x1095   :  { %v1337_v23 = vpack.c.bf16 %v1336_v22, %v1336_v22 }
0x1097   :  { %2252 = vmatmul.msk.bf16.vlgmr.msrb.gmra.mxu1 %vm343_vm15, %v1337_v23 }
0x109b   :  { %v1431_v24 = vpop.xlane.xlu1 %1430 }
0x109c   :  { %2461 = vrcp.f32 %v1431_v24 }
0x109e   :  { %v1436_v26 = vpop.permute.xlu0 %1435 }
0x109f   :  { %v1441_v16 = vsel %vm382_vm2, %v1436_v26, 0 }
0x10a0   :  { %1450 = vmatpush.bf16.msra.mxu1 %v1441_v16 }
0x10a2   :  { %v2462_v27 = vpop.eup %2461 }
0x10a3   :  { %v1433_v29 = vmul.f32 %v2462_v27, %v2458_v13  ;;  %v1269_v30 = vpop.xlane.xlu1 %1268 }
0x10a4   :  { %v1270_v32 = vsub.f32 %v1266_v17, %v1269_v30 }
0x10a5   :  { %v1434_v33 = vpack.c.bf16 %v1433_v29, %v1433_v29 }
0x10a6   :  { %v1271_v34 = vmul.f32 1.442695, %v1270_v32  ;;  %v1480_v37 = vpop.permute.xlu0 %1479 }
0x10a7   :  { %v1485_v39 = vsel %vm343_vm15, %v1480_v37, 0  ;;  %2256 = vmatmul.msk.bf16.vlgmr.msra.gmra.mxu1 %vm343_vm15, %v1434_v33 }
0x10a8   :  { %2463 = vpow2.f32 %v1271_v34  ;;  %1494 = vmatpush.bf16.xpose.msra.mxu3 %v1485_v39 }
0x10ae   :  { %v2464_v40 = vpop.eup %2463 }
0x10af   :  { %v1273_v41 = vsel %vm343_vm15, %v2464_v40, 0.0 }
0x10b0   :  { %1274 = vadd.xlane.f32.xlu1 %v1273_v41 }
0x10c9   :  { %1560 = vrot.lane.b32.xlu1 %v2974_v50, %s2531_s8 }
0x10d1   :  { %1595 = vrot.lane.b32.xlu1 %v2974_v50, %s2535_s11 }
0x1114   :  { %v1355_v28 = vpop.f32.mrf.mxu1 }
0x1115   :  { %v1359_v57 = vpack.c.bf16 %v1355_v28, %v1355_v28 }
0x111c   :  { %v1357_v51 = vpop.f32.mrf.mxu1 }
0x1123   :  { %v1275_v38 = vpop.xlane.xlu1 %1274 }
0x1124   :  { %2465 = vrcp.f32 %v1275_v38  ;;  %v1452_v52 = vpop.f32.mrf.mxu1 }
0x1125   :  { %v1456_v58 = vpack.c.bf16 %v1452_v52, %v1452_v52 }
0x112a   :  { %v2466_v31 = vpop.eup %2465 }
0x112b   :  { %v1277_v54 = vmul.f32 %v2466_v31, %v2464_v40 }
0x112c   :  { %v1454_v46 = vpop.f32.mrf.mxu1 }
0x112d   :  { %v1278_v4 = vpack.c.bf16 %v1277_v54, %v1277_v54 }
0x112f   :  { %2250 = vmatmul.msk.bf16.vlgmr.msra.gmra.mxu2 %vm343_vm15, %v1278_v4 }
0x1130   :  { %1470 = vmatpush.bf16.msra.mxu2 %v1461_v59 }
0x113b   :  { %v1561_v56 = vpop.permute.xlu1 %1560 }
0x113c   :  { %v1566_v48 = vsel %vm343_vm15, %v1561_v56, 0 }
0x113f   :  { %2253 = vmatmul.msk.bf16.vlgmr.msrb.gmra.mxu2 %vm343_vm15, %v1359_v57 }
0x1140   :  { %1575 = vmatpush.bf16.xpose.msrb.mxu2 %v1566_v48 }
0x1143   :  { %v1596_v60 = vpop.permute.xlu1 %1595 }
0x1144   :  { %v1601_v49 = vsel %vm382_vm2, %v1596_v60, 0 }
0x114f   :  { %2257 = vmatmul.msk.bf16.vlgmr.msra.gmra.mxu2 %vm343_vm15, %v1456_v58 }
0x1150   :  { %1686 = vmatpush.bf16.msra.mxu2 %v1364_v36 }
0x115f   :  { %2261 = vmatmul.msk.bf16.vlgmr.msrb.gmra.mxu2 %vm343_vm15, %v1556_v45 }
0x1160   :  { %1777 = vmatpush.bf16.msrb.mxu2 %v1461_v59  ;;  %v1130_v59 = vld [vmem:[%s3166_s1 + $0xfc] sm:$0xf] }
0x1161   :  { %v3037_v56 = vsel %vm382_vm2, %v1130_v59, 0 }
0x1162   :  { %1549 = vmatpush.bf16.msrb.mxu1 %v3037_v56 }
0x11b2   :  { %v1296_v61 = vpop.f32.mrf.mxu2 }
0x11b3   :  { %v1300_v62 = vpack.c.bf16 %v1296_v61, %v1296_v61 }
0x11b5   :  { %2254 = vmatmul.msk.bf16.vlgmr.msrb.gmra.mxu3 %vm343_vm15, %v1300_v62 }
0x11b6   :  { %1610 = vmatpush.bf16.msrb.mxu3 %v1601_v49 }
0x11ba   :  { %v1298_v63 = vpop.f32.mrf.mxu2 }
0x11c2   :  { %v2995_v0 = vpop.f32.mrf.mxu2 }
0x11c5   :  { %2258 = vmatmul.msk.bf16.vlgmr.msra.gmra.mxu3 %vm343_vm15, %v1478_v1 }
0x11c6   :  { %1702 = vmatpush.bf16.msra.mxu3 %v2964_v20 }
0x11ca   :  { %v1377_v3 = vpop.f32.mrf.mxu2 }
0x11d2   :  { %v2999_v5 = vpop.f32.mrf.mxu2 }
0x11da   :  { %v1474_v6 = vpop.f32.mrf.mxu2 }
0x11e2   :  { %v1577_v7 = vpop.f32.mrf.mxu2 }
0x11e3   :  { %v1581_v8 = vmul.f32 0.35355338, %v1577_v7 }
0x11e5   :  { %v1582_v11 = vadd.f32 %v1581_v8, %v2681_v9 }
0x11e7   :  { %v1583_v44 = vsel %vm343_vm15, %v1582_v11, -inf }
0x11e8   :  { %1584 = vmax.xlane.f32.xlu0 %v1583_v44 }
0x11ea   :  { %v1579_v12 = vpop.f32.mrf.mxu2 }
0x1238   :  { %v3003_v13 = vpop.f32.mrf.mxu3 }
0x1240   :  { %v1396_v14 = vpop.f32.mrf.mxu3 }
0x1248   :  { %v1496_v15 = vpop.f32.mrf.mxu3 }
0x1249   :  { %v1500_v17 = vmul.f32 0.35355338, %v1496_v15 }
0x124b   :  { %v1501_v18 = vadd.f32 %v1500_v17, %v2681_v9 }
0x124d   :  { %v1502_v19 = vsel %vm343_vm15, %v1501_v18, -inf }
0x124e   :  { %1503 = vmax.xlane.f32.xlu1 %v1502_v19  ;;  %v1395_v19 = vadd.f32 %v3003_v13, %v2995_v0 }
0x1250   :  { %v1498_v20 = vpop.f32.mrf.mxu3 }
0x1251   :  { %v1476_v20 = vadd.f32 %v2999_v5, %v1395_v19 }
0x125b   :  { %v1585_v2 = vpop.xlane.xlu0 %1584 }
0x125c   :  { %v1586_v21 = vsub.f32 %v1582_v11, %v1585_v2 }
0x125e   :  { %v1587_v22 = vmul.f32 1.442695, %v1586_v21 }
0x1260   :  { %2467 = vpow2.f32 %v1587_v22  ;;  %v3057_v22 = vld [vmem:[%s3167_s2 + $0x1b] ss:$0 sm:$0xff] }
0x1266   :  { %v2468_v23 = vpop.eup %2467 }
0x1267   :  { %1617 = vrot.lane.b32.xlu1 %v2974_v50, %s2529_s6  ;;  %v1589_v24 = vsel %vm343_vm15, %v2468_v23, 0.0 }
0x1268   :  { %1590 = vadd.xlane.f32.xlu2 %v1589_v24 }
0x1280   :  { %1514 = vrot.lane.b32.xlu2 %v2920_v43, %s2539_s20 }
0x1288   :  { %1710 = vrot.lane.b32.xlu2 %v2974_v50, %s2528_s5 }
0x1290   :  { %1708 = vrot.lane.b32.xlu2 %v2974_v50, %s2532_s9 }
0x12c1   :  { %v1504_v26 = vpop.xlane.xlu1 %1503 }
0x12c2   :  { %v1505_v16 = vsub.f32 %v1501_v18, %v1504_v26 }
0x12c4   :  { %v1506_v27 = vmul.f32 1.442695, %v1505_v16 }
0x12c6   :  { %2469 = vpow2.f32 %v1506_v27 }
0x12cc   :  { %v2470_v29 = vpop.eup %2469 }
0x12cd   :  { %v1508_v30 = vsel %vm343_vm15, %v2470_v29, 0.0 }
0x12ce   :  { %1509 = vadd.xlane.f32.xlu0 %v1508_v30 }
0x12d9   :  { %v1618_v51 = vpop.permute.xlu1 %1617 }
0x12db   :  { %v1591_v32 = vpop.xlane.xlu2 %1590 }
0x12dc   :  { %2471 = vrcp.f32 %v1591_v32 }
0x12e2   :  { %v2472_v33 = vpop.eup %2471  ;;  %1619 = vrot.lane.b32.xlu0 %v2974_v50, %s2530_s7 }
0x12e3   :  { %v1593_v43 = vmul.f32 %v2472_v33, %v2468_v23  ;;  %v1515_v34 = vpop.permute.xlu2 %1514 }
0x12e4   :  { %v1520_v37 = vsel %vm382_vm2, %v1515_v34, 0 }
0x12e5   :  { %v1594_v39 = vpack.c.bf16 %v1593_v43, %v1593_v43  ;;  %1529 = vmatpush.bf16.msrb.mxu0 %v1520_v37 }
0x12e7   :  { %2262 = vmatmul.msk.bf16.vlgmr.msrb.gmra.mxu3 %vm343_vm15, %v1594_v39 }
0x12ea   :  { %1786 = vrot.lane.b32.xlu0 %v2974_v50, %s2538_s14 }
0x12eb   :  { %v1711_v47 = vpop.permute.xlu2 %1710 }
0x12ec   :  { %v1716_v28 = vsel %vm343_vm15, %v1711_v47, 0 }
0x12f2   :  { %1784 = vrot.lane.b32.xlu0 %v2974_v50, %s2536_s12 }
0x12f3   :  { %v1709_v54 = vpop.permute.xlu2 %1708 }
0x1341   :  { %v1510_v40 = vpop.xlane.xlu0 %1509 }
0x1342   :  { %2473 = vrcp.f32 %v1510_v40 }
0x1348   :  { %v2474_v41 = vpop.eup %2473 }
0x1349   :  { %v1512_v42 = vmul.f32 %v2474_v41, %v2470_v29 }
0x134b   :  { %v1513_v45 = vpack.c.bf16 %v1512_v42, %v1512_v42 }
0x134d   :  { %2259 = vmatmul.msk.bf16.vlgmr.msrb.gmra.mxu0 %vm343_vm15, %v1513_v45 }
0x1354   :  { %v1620_v25 = vpop.permute.xlu0 %1619 }
0x1355   :  { %v1625_v36 = vsel %vm343_vm15, %v1620_v25, 0 }
0x1356   :  { %1634 = vmatpush.bf16.xpose.msra.mxu0 %v1625_v36 }
0x135c   :  { %v1787_v38 = vpop.permute.xlu0 %1786 }
0x135d   :  { %v1792_v52 = vsel %vm343_vm15, %v1787_v38, 0  ;;  %2263 = vmatmul.msk.bf16.vlgmr.msra.gmra.mxu0 %vm343_vm15, %v1618_v51 }
0x135e   :  { %1725 = vmatpush.bf16.xpose.msrb.mxu0 %v1716_v28  ;;  %1801 = vmatpush.bf16.xpose.msrb.mxu3 %v1792_v52 }
0x1364   :  { %v1785_v4 = vpop.permute.xlu0 %1784 }
0x136a   :  { %v1612_v31 = vpop.f32.mrf.mxu3 }
0x136b   :  { %v1616_v10 = vpack.c.bf16 %v1612_v31, %v1612_v31 }
0x136d   :  { %2266 = vmatmul.msk.bf16.vlgmr.msra.gmra.mxu3 %vm343_vm15, %v1616_v10  ;;  %2267 = vmatmul.msk.bf16.vlgmr.msrb.gmra.mxu0 %vm343_vm15, %v1709_v54 }
0x1372   :  { %v1614_v46 = vpop.f32.mrf.mxu3 }
0x137d   :  { %2270 = vmatmul.msk.bf16.vlgmr.msrb.gmra.mxu3 %vm343_vm15, %v1785_v4 }
0x13ca   :  { %v1531_v57 = vpop.f32.mrf.mxu0 }
0x13cb   :  { %v1535_v48 = vpack.c.bf16 %v1531_v57, %v1531_v57 }
0x13cd   :  { %2260 = vmatmul.msk.bf16.vlgmr.msrb.gmra.mxu1 %vm343_vm15, %v1535_v48 }
0x13d2   :  { %v1533_v58 = vpop.f32.mrf.mxu0 }
0x13da   :  { %v1636_v60 = vpop.f32.mrf.mxu0 }
0x13db   :  { %v1640_v61 = vmul.f32 0.35355338, %v1636_v60 }
0x13dd   :  { %v1641_v62 = vadd.f32 %v1640_v61, %v2681_v9 }
0x13df   :  { %v1642_v49 = vsel %vm343_vm15, %v1641_v62, -inf }
0x13e0   :  { %1643 = vmax.xlane.f32.xlu2 %v1642_v49 }
0x13e2   :  { %v1638_v63 = vpop.f32.mrf.mxu0 }
0x13ea   :  { %v1727_v1 = vpop.f32.mrf.mxu0 }
0x13eb   :  { %v1731_v3 = vmul.f32 0.35355338, %v1727_v1 }
0x13ed   :  { %v1732_v6 = vadd.f32 %v1731_v3, %v2681_v9 }
0x13ef   :  { %v1733_v7 = vsel %vm343_vm15, %v1732_v6, -inf }
0x13f0   :  { %v3045_v8 = vpop.f32.mrf.mxu3  ;;  %1734 = vmax.xlane.f32.xlu0 %v1733_v7 }
0x13f2   :  { %v1729_v11 = vpop.f32.mrf.mxu0 }
0x13f8   :  { %v1706_v44 = vpop.f32.mrf.mxu3 }
0x1400   :  { %v1803_v12 = vpop.f32.mrf.mxu3 }
0x1401   :  { %v1807_v14 = vmul.f32 0.35355338, %v1803_v12 }
0x1403   :  { %v1808_v15 = vadd.f32 %v1807_v14, %v2681_v9 }
0x1404   :  { %1654 = vrot.lane.b32.xlu0 %v2974_v50, %s2534_s10 }
0x1405   :  { %v1809_v17 = vsel %vm343_vm15, %v1808_v15, -inf }
0x1406   :  { %1810 = vmax.xlane.f32.xlu1 %v1809_v17 }
0x1408   :  { %v1805_v18 = vpop.f32.mrf.mxu3 }
0x144a   :  { %v1551_v2 = vpop.f32.mrf.mxu1 }
0x144b   :  { %v1555_v21 = vadd.f32 %v1551_v2, %v1476_v20 }
0x144d   :  { %v1860_v9 = vadd.f32 %v1555_v21, %v2884_v53 }
0x144f   :  { %v3061_v23 = vadd.f32 %v3057_v22, %v1860_v9 }
0x1451   :  { %v1865_v24 = vsel %vm162_vm1, %v3061_v23, 0.0 }
0x1452   :  { %v1553_v26 = vpop.f32.mrf.mxu1  ;;  %1866 = vadd.xlane.f32.xlu0 %v1865_v24 }
0x1453   :  { %v1644_v0 = vpop.xlane.xlu2 %1643 }
0x1454   :  { %v1645_v13 = vsub.f32 %v1641_v62, %v1644_v0 }
0x1456   :  { %v1646_v5 = vmul.f32 1.442695, %v1645_v13 }
0x1458   :  { %2475 = vpow2.f32 %v1646_v5 }
0x145e   :  { %v2476_v16 = vpop.eup %2475 }
0x145f   :  { %v1648_v27 = vsel %vm343_vm15, %v2476_v16, 0.0 }
0x1460   :  { %1649 = vadd.xlane.f32.xlu2 %v1648_v27 }
0x1463   :  { %v1735_v29 = vpop.xlane.xlu0 %1734 }
0x1464   :  { %v1736_v30 = vsub.f32 %v1732_v6, %v1735_v29 }
0x1466   :  { %v1737_v32 = vmul.f32 1.442695, %v1736_v30 }
0x1468   :  { %2477 = vpow2.f32 %v1737_v32  ;;  %v2351_v32 = vld [vmem:[%s3166_s1 + $0x100] sm:$0xff] }
0x146e   :  { %v2478_v53 = vpop.eup %2477 }
0x146f   :  { %v1739_v33 = vsel %vm343_vm15, %v2478_v53, 0.0 }
0x1470   :  { %1740 = vadd.xlane.f32.xlu1 %v1739_v33 }
0x1476   :  { %v1655_v43 = vpop.permute.xlu0 %1654 }
0x1477   :  { %v1660_v34 = vsel %vm382_vm2, %v1655_v43, 0 }
0x1478   :  { %1745 = vrot.lane.b32.xlu2 %v2974_v50, %s2537_s13  ;;  %1669 = vmatpush.bf16.msra.mxu1 %v1660_v34 }
0x1479   :  { %v1811_v37 = vpop.xlane.xlu1 %1810 }
0x147a   :  { %v1812_v39 = vsub.f32 %v1808_v15, %v1811_v37 }
0x147c   :  { %v1813_v40 = vmul.f32 1.442695, %v1812_v39 }
0x147e   :  { %2479 = vpow2.f32 %v1813_v40 }
0x1484   :  { %v2480_v41 = vpop.eup %2479 }
0x1485   :  { %v1815_v42 = vsel %vm343_vm15, %v2480_v41, 0.0 }
0x1486   :  { %1816 = vadd.xlane.f32.xlu1 %v1815_v42 }
0x149f   :  { %1821 = vrot.lane.b32.xlu1 %v2974_v50, %s2539_s20 }
0x14c5   :  { %v1867_v45 = vpop.xlane.xlu0 %1866 }
0x14c6   :  { %v1871_v47 = vmul.f32 %v1867_v45, %v2614_v35 }
0x14c8   :  { %v3075_v25 = vsub.f32 %v3061_v23, %v1871_v47 }
0x14ca   :  { %v1875_v36 = vmul.f32 %v3075_v25, %v3075_v25 }
0x14cc   :  { %v1877_v28 = vsel %vm162_vm1, %v1875_v36, 0.0 }
0x14cd   :  { %1878 = vadd.xlane.f32.xlu1 %v1877_v28 }
0x14d3   :  { %v1650_v51 = vpop.xlane.xlu2 %1649 }
0x14d4   :  { %2481 = vrcp.f32 %v1650_v51 }
0x14da   :  { %v2482_v38 = vpop.eup %2481 }
0x14db   :  { %v1652_v52 = vmul.f32 %v2482_v38, %v2476_v16  ;;  %v1746_v31 = vpop.permute.xlu2 %1745  ;;  %v2391_v38 = vld [vmem:[%s3167_s2 + $0x1c] ss:$0 sm:$0xff] }
0x14dc   :  { %v1751_v10 = vsel %vm382_vm2, %v1746_v31, 0 }
0x14dd   :  { %v1653_v50 = vpack.c.bf16 %v1652_v52, %v1652_v52  ;;  %1760 = vmatpush.bf16.msrb.mxu1 %v1751_v10 }
0x14df   :  { %2264 = vmatmul.msk.bf16.vlgmr.msra.gmra.mxu1 %vm343_vm15, %v1653_v50  ;;  %v2392_v50 = vld [vmem:[%s3167_s2 + $0x1d] ss:$0 sm:$0xff] }
0x14e1   :  { %1853 = vmatpush.bf16.msra.mxu1 %v3037_v56 }
0x14e3   :  { %v1741_v54 = vpop.xlane.xlu1 %1740 }
0x14e4   :  { %2483 = vrcp.f32 %v1741_v54 }
0x14ea   :  { %v2484_v46 = vpop.eup %2483 }
0x14eb   :  { %v1743_v4 = vmul.f32 %v2484_v46, %v2478_v53 }
0x14ed   :  { %v1744_v59 = vpack.c.bf16 %v1743_v4, %v1743_v4 }
0x14ef   :  { %2268 = vmatmul.msk.bf16.vlgmr.msrb.gmra.mxu1 %vm343_vm15, %v1744_v59 }
0x14f9   :  { %v1817_v57 = vpop.xlane.xlu1 %1816 }
0x14fa   :  { %2485 = vrcp.f32 %v1817_v57 }
0x1500   :  { %v2486_v48 = vpop.eup %2485 }
0x1501   :  { %v1819_v58 = vmul.f32 %v2486_v48, %v2480_v41 }
0x1503   :  { %v1820_v62 = vpack.c.bf16 %v1819_v58, %v1819_v58  ;;  %v2359_v58 = vld [vmem:[%s3166_s1 + $0x140] sm:$0xff] }
0x1511   :  { %v1822_v60 = vpop.permute.xlu1 %1821 }
0x1512   :  { %v1827_v61 = vsel %vm382_vm2, %v1822_v60, 0  ;;  %v2358_v60 = vld [vmem:[%s3166_s1 + $0x138] sm:$0xff] }
0x1513   :  { %1836 = vmatpush.bf16.msra.mxu0 %v1827_v61  ;;  %v2357_v61 = vld [vmem:[%s3166_s1 + $0x130] sm:$0xff] }
0x1516   :  { %2271 = vmatmul.msk.bf16.vlgmr.msra.gmra.mxu0 %vm343_vm15, %v1820_v62  ;;  %v2356_v62 = vld [vmem:[%s3166_s1 + $0x128] sm:$0xff] }
0x1540   :  { %v1879_v27 = vpop.xlane.xlu1 %1878 }
0x155c   :  { %v1671_v49 = vpop.f32.mrf.mxu1 }
0x155d   :  { %v1675_v56 = vpack.c.bf16 %v1671_v49, %v1671_v49  ;;  %v2355_v49 = vld [vmem:[%s3166_s1 + $0x120] sm:$0xff] }
0x155f   :  { %2265 = vmatmul.msk.bf16.vlgmr.msra.gmra.mxu2 %vm343_vm15, %v1675_v56  ;;  %v2354_v56 = vld [vmem:[%s3166_s1 + $0x118] sm:$0xff] }
0x1564   :  { %v1673_v63 = vpop.f32.mrf.mxu1 }
0x1565   :  { %v2393_v63 = vld [vmem:[%s3167_s2 + $0x1e] ss:$0 sm:$0xff] }
0x156c   :  { %v1762_v1 = vpop.f32.mrf.mxu1 }
0x156d   :  { %v1766_v3 = vpack.c.bf16 %v1762_v1, %v1762_v1  ;;  %v2353_v1 = vld [vmem:[%s3166_s1 + $0x110] sm:$0xff] }
0x156f   :  { %2269 = vmatmul.msk.bf16.vlgmr.msrb.gmra.mxu2 %vm343_vm15, %v1766_v3 }
0x1574   :  { %v1764_v6 = vpop.f32.mrf.mxu1 }
0x1593   :  { %v1838_v7 = vpop.f32.mrf.mxu0 }
0x1594   :  { %v1842_v11 = vpack.c.bf16 %v1838_v7, %v1838_v7 }
0x1596   :  { %2272 = vmatmul.msk.bf16.vlgmr.msra.gmra.mxu1 %vm343_vm15, %v1842_v11 }
0x159b   :  { %v1840_v44 = vpop.f32.mrf.mxu0 }
0x15e2   :  { %v1688_v12 = vpop.f32.mrf.mxu2 }
0x15e3   :  { %v1705_v18 = vadd.f32 %v3045_v8, %v1688_v12 }
0x15ea   :  { %v1690_v14 = vpop.f32.mrf.mxu2 }
0x15f2   :  { %v1779_v15 = vpop.f32.mrf.mxu2 }
0x15f3   :  { %v1783_v19 = vadd.f32 %v1779_v15, %v1705_v18 }
0x15fa   :  { %v1781_v17 = vpop.f32.mrf.mxu2 }
0x1613   :  { %v1855_v20 = vpop.f32.mrf.mxu1 }
0x1614   :  { %v1859_v2 = vadd.f32 %v1855_v20, %v1783_v19 }
0x1616   :  { %v1861_v21 = vadd.f32 %v1859_v2, %v2889_v55  ;;  %v1883_v55 = vmul.f32 %v1879_v27, %v2614_v35 }
0x1618   :  { %v3092_v9 = vadd.f32 %v3057_v22, %v1861_v21  ;;  %v1885_v29 = vadd.f32 1e-05, %v1883_v55  ;;  %v2352_v22 = vld [vmem:[%s3166_s1 + $0x108] sm:$0xff] }
0x1619   :  { %1938 = vmatpush.bf16.msra.mxu2 %v2352_v22 }
0x161a   :  { %v1868_v24 = vsel %vm162_vm1, %v3092_v9, 0.0  ;;  %2487 = vrsqrt.f32 %v1885_v29  ;;  %vm1893_vm0 = vweird.f32 %v1885_v29 }
0x161b   :  { %1869 = vadd.xlane.f32.xlu2 %v1868_v24  ;;  %v1857_v26 = vpop.f32.mrf.mxu1 }
0x161d   :  { %1939 = vmatpush.bf16.msra.mxu2 %v2351_v32 }
0x1620   :  { %v2488_v30 = vpop.eup %2487 }
0x1621   :  { %v1888_v53 = vmul.f32 %v2488_v30, %v1885_v29  ;;  %vm1894_vm15 = vweird.f32 %v2488_v30 }
0x1622   :  { %vm1895_vm2 = vmor %vm1893_vm0, %vm1894_vm15 }
0x1623   :  { %v1889_v33 = vmul.f32 %v2488_v30, %v1888_v53 }
0x1625   :  { %v1890_v39 = vmul.f32 0.5, %v1889_v33 }
0x1627   :  { %v1891_v40 = vsub.f32 1.5, %v1890_v39  ;;  %v2362_v39 = vld [vmem:[%s3166_s1 + $0x68] sm:$0xff] }
0x1628   :  { %2084 = vmatpush.bf16.msrb.mxu0 %v2362_v39 }
0x1629   :  { %v1892_v42 = vmul.f32 %v2488_v30, %v1891_v40 }
0x162b   :  { %v1896_v36 = vsel %vm1895_vm2, %v2488_v30, %v1892_v42 }
0x162c   :  { %v1907_v52 = vmul.f32 %v1896_v36, %v3075_v25  ;;  %v2360_v25 = vld [vmem:[%s3166_s1 + $0x148] sm:$0xff] }
0x162d   :  { %2008 = vmatpush.bf16.msra.mxu3 %v2360_v25 }
0x162e   :  { %v1910_v54 = vmul.f32 %v2391_v38, %v1907_v52 }
0x1630   :  { %v1913_v59 = vadd.f32 %v2392_v50, %v1910_v54 }
0x1631   :  { %2009 = vmatpush.bf16.msra.mxu3 %v2359_v58 }
0x1635   :  { %2010 = vmatpush.bf16.msra.mxu3 %v2358_v60 }
0x1639   :  { %2011 = vmatpush.bf16.msra.mxu3 %v2357_v61 }
0x163d   :  { %2012 = vmatpush.bf16.msra.mxu3 %v2356_v62 }
0x1641   :  { %2013 = vmatpush.bf16.msra.mxu3 %v2355_v49 }
0x1645   :  { %2014 = vmatpush.bf16.msra.mxu3 %v2354_v56 }
0x1649   :  { %2015 = vmatpush.bf16.msra.mxu3 %v2353_v1 }
0x168e   :  { %v1870_v0 = vpop.xlane.xlu2 %1869 }
0x168f   :  { %v1872_v13 = vmul.f32 %v1870_v0, %v2614_v35 }
0x1691   :  { %v1874_v5 = vsub.f32 %v3092_v9, %v1872_v13 }
0x1693   :  { %v1876_v16 = vmul.f32 %v1874_v5, %v1874_v5 }
0x1695   :  { %v1880_v8 = vsel %vm162_vm1, %v1876_v16, 0.0 }
0x1696   :  { %1881 = vadd.xlane.f32.xlu0 %v1880_v8 }
0x1709   :  { %v1882_v43 = vpop.xlane.xlu0 %1881 }
0x170a   :  { %v1884_v34 = vmul.f32 %v1882_v43, %v2614_v35 }
0x170c   :  { %v1886_v37 = vadd.f32 1e-05, %v1884_v34 }
0x170e   :  { %2489 = vrsqrt.f32 %v1886_v37  ;;  %vm1903_vm4 = vweird.f32 %v1886_v37 }
0x1714   :  { %v2490_v41 = vpop.eup %2489 }
0x1715   :  { %v1898_v45 = vmul.f32 %v2490_v41, %v1886_v37  ;;  %vm1904_vm3 = vweird.f32 %v2490_v41 }
0x1716   :  { %vm1905_vm5 = vmor %vm1903_vm4, %vm1904_vm3 }
0x1717   :  { %v1899_v47 = vmul.f32 %v2490_v41, %v1898_v45 }
0x1719   :  { %v1900_v28 = vmul.f32 0.5, %v1899_v47 }
0x171b   :  { %v1901_v51 = vsub.f32 1.5, %v1900_v28 }
0x171d   :  { %v1902_v31 = vmul.f32 %v2490_v41, %v1901_v51 }
0x171f   :  { %v1906_v10 = vsel %vm1905_vm5, %v2490_v41, %v1902_v31 }
0x1720   :  { %v1908_v46 = vmul.f32 %v1906_v10, %v1874_v5  ;;  %v2394_v5 = vld [vmem:[%s3167_s2 + $0x1f] ss:$0 sm:$0xff] }
0x1722   :  { %v1911_v4 = vmul.f32 %v2391_v38, %v1908_v46  ;;  %v2395_v38 = vld [vmem:[%s3167_s2 + $0xa] ss:$0 sm:$0xff] }
0x1724   :  { %v1914_v57 = vadd.f32 %v2392_v50, %v1911_v4 }
0x1726   :  { %v1915_v48 = vpack.c.bf16 %v1914_v57, %v1913_v59 }
0x1728   :  { %2281 = vmatmul.msk.bf16.vlgmr.msra.gmra.mxu2 %vm162_vm1, %v1915_v48 }
0x17ab   :  { %v1941_v3 = vpop.f32.mrf.mxu2 }
0x17ac   :  { %v1942_v6 = vadd.f32 %v2393_v63, %v1941_v3 }
0x17ae   :  { %v1946_v7 = vmul.f32 -1.702, %v1942_v6 }
0x17b0   :  { %v1948_v11 = vmul.f32 1.442695, %v1946_v7 }
0x17b2   :  { %2491 = vpow2.f32 %v1948_v11 }
0x17b3   :  { %v1943_v44 = vpop.f32.mrf.mxu2 }
0x17b4   :  { %v1944_v12 = vadd.f32 %v2393_v63, %v1943_v44 }
0x17b6   :  { %v1947_v14 = vmul.f32 -1.702, %v1944_v12 }
0x17b8   :  { %v1950_v15 = vmul.f32 1.442695, %v1947_v14  ;;  %v2492_v17 = vpop.eup %2491 }
0x17b9   :  { %v1952_v18 = vadd.f32 1.0, %v2492_v17 }
0x17ba   :  { %2493 = vpow2.f32 %v1950_v15 }
0x17bb   :  { %2495 = vrcp.f32 %v1952_v18 }
0x17c0   :  { %v2494_v19 = vpop.eup %2493 }
0x17c1   :  { %v1953_v20 = vadd.f32 1.0, %v2494_v19  ;;  %v2496_v2 = vpop.eup %2495 }
0x17c2   :  { %v1956_v24 = vmul.f32 %v2496_v2, %v1942_v6 }
0x17c3   :  { %2497 = vrcp.f32 %v1953_v20 }
0x17c9   :  { %v2498_v21 = vpop.eup %2497 }
0x17ca   :  { %v1957_v26 = vmul.f32 %v2498_v21, %v1944_v12 }
0x17cc   :  { %v1958_v0 = vpack.c.bf16 %v1957_v26, %v1956_v24 }
0x17ce   :  { %2016 = vmatmul.bf16.vlgmr.msra.gmra.mxu3 %v1958_v0 }
0x1851   :  { %v2017_v13 = vpop.f32.mrf.mxu3 }
0x1852   :  { %v2018_v8 = vadd.f32 %v2394_v5, %v2017_v13 }
0x1854   :  { %v2022_v29 = vadd.f32 %v2018_v8, %v3061_v23  ;;  %v2361_v23 = vld [vmem:[%s3166_s1 + $0x60] sm:$0xff] }
0x1855   :  { %2085 = vmatpush.bf16.msrb.mxu0 %v2361_v23 }
0x1859   :  { %v2019_v16 = vpop.f32.mrf.mxu3 }
0x185a   :  { %v2020_v27 = vadd.f32 %v2394_v5, %v2019_v16 }
0x185c   :  { %v2023_v55 = vadd.f32 %v2020_v27, %v3092_v9 }
0x185e   :  { %v2025_v22 = vrot.slane %v2023_v55, 7 }
0x1860   :  { %v2028_v30 = vsel %vm2027_vm6, %v2022_v29, %v2025_v22 }
0x1861   :  { %v2032_v32 = vsel %vm2031_vm7, %v2028_v30, 0.0 }
0x1862   :  { %2033 = vadd.xlane.f32.xlu0 %v2032_v32 }
0x18d5   :  { %v2034_v53 = vpop.xlane.xlu0 %2033 }
0x18d6   :  { %v2035_v33 = vmul.f32 %v2034_v53, %v2614_v35 }
0x18d8   :  { %v2036_v43 = vsub.f32 %v2028_v30, %v2035_v33 }
0x18da   :  { %v2037_v34 = vmul.f32 %v2036_v43, %v2036_v43 }
0x18dc   :  { %v2038_v37 = vsel %vm2031_vm7, %v2037_v34, 0.0 }
0x18dd   :  { %2039 = vadd.xlane.f32.xlu2 %v2038_v37 }
0x1950   :  { %v2040_v9 = vpop.xlane.xlu2 %2039 }
0x1951   :  { %v2041_v40 = vmul.f32 %v2040_v9, %v2614_v35  ;;  %v2396_v35 = vld [vmem:[%s3167_s2 + $0xb] ss:$0 sm:$0xff] }
0x1953   :  { %v2042_v41 = vadd.f32 1e-05, %v2041_v40 }
0x1955   :  { %2499 = vrsqrt.f32 %v2042_v41  ;;  %vm2049_vm9 = vweird.f32 %v2042_v41 }
0x195b   :  { %v2500_v42 = vpop.eup %2499 }
0x195c   :  { %v2044_v45 = vmul.f32 %v2500_v42, %v2042_v41  ;;  %vm2050_vm8 = vweird.f32 %v2500_v42 }
0x195d   :  { %vm2051_vm10 = vmor %vm2049_vm9, %vm2050_vm8 }
0x195e   :  { %v2045_v47 = vmul.f32 %v2500_v42, %v2044_v45 }
0x1960   :  { %v2046_v36 = vmul.f32 0.5, %v2045_v47 }
0x1962   :  { %v2047_v28 = vsub.f32 1.5, %v2046_v36 }
0x1964   :  { %v2048_v51 = vmul.f32 %v2500_v42, %v2047_v28 }
0x1966   :  { %v2052_v52 = vsel %vm2051_vm10, %v2500_v42, %v2048_v51 }
0x1967   :  { %v2053_v31 = vmul.f32 %v2052_v52, %v2036_v43 }
0x1969   :  { %v2055_v10 = vmul.f32 %v2395_v38, %v2053_v31 }
0x196b   :  { %v2057_v50 = vadd.f32 %v2396_v35, %v2055_v10 }
0x196d   :  { %v2062_v54 = vpack.c.bf16 %v2057_v50, %v2057_v50 }
0x196f   :  { %2322 = vmatmul.msk.bf16.vlgmr.msrb.gmra.mxu0 %vm162_vm1, %v2062_v54 }
0x19ec   :  { %v2087_v46 = vpop.f32.mrf.mxu0 }
0x19ed   :  { %2092 = vst.msk [vmem:[#allocation2] sm:$0x3] %vm2091_vm11, %v2087_v46 }
0x19ee   :  { %2103 = dma.vmem_to_hbm [thread:$0]  %s2099_s0, 32, %s2101_s22, [#allocation3]  }
0x19f4   :  { %v2089_v4 = vpop.f32.mrf.mxu0 }
0x19f5   :  { %2525 = dma.done.wait [#allocation3], 32  }
0x19f6   :  { %2526 = vsyncadd [#allocation3], 4294967264 }
0x19f7   :  { %2108 = vsyncpa [#allocation3], 1 }

</bundles_post_ra>
